<compile_context>
chip_gen: v5e
topology: v5e:2x2
jax: 0.10.0
libtpu: 0.0.40
codegen_flags: <defaults>
</compile_context>

<pallas_src>
import functools
import math

import jax
import jax.numpy as jnp
import numpy as np
from jax.experimental import pallas as pl
from jax.experimental.pallas import tpu as pltpu

jax.config.update("jax_default_matmul_precision", "float32")


# ----------------------------- Pallas kernel --------------------------------
def encoder_kernel(x_ref, line_ref,
                   wq_ref, wkv_ref, wo_ref, w1_ref, w2_ref,
                   bkv_ref, b1_ref, vec_ref,
                   out_ref,
                   *, num_heads, d_k, seq_len, eps):
    R, D = x_ref.shape                 # R = (batch chunk) * seq_len rows
    n_batch = R // seq_len

    vec = vec_ref[...]                 # (5, D): [gamma, beta, bq_f, bo, b2]
    g, beta = vec[0:1, :], vec[1:2, :]
    bq, bo, b2 = vec[2:3, :], vec[3:4, :], vec[4:5, :]

    def _norm_raw(t):                  # zero-mean / unit-variance rows (no affine)
        mu = jnp.mean(t, axis=-1, keepdims=True)
        var = jnp.mean(jnp.square(t - mu), axis=-1, keepdims=True)
        return (t - mu) * jax.lax.rsqrt(var + eps)

    x = x_ref[...]                     # (R, D) positional-encoded image features
    line = line_ref[...]               # (R, D) positional-encoded text-mask features

    nr_x = _norm_raw(x)
    nr_line = _norm_raw(line)
    normed_input = nr_x * g + beta     # full LayerNorm, needed for the residual

    # Projections.  gamma/beta and 1/sqrt(d_k) are folded into wq/bq; gamma/beta
    # folded into the fused K/V weight (wkv) and bias.
    q = jnp.dot(nr_line, wq_ref[...], preferred_element_type=jnp.float32) + bq
    kv = jnp.dot(nr_x, wkv_ref[...], preferred_element_type=jnp.float32) + bkv_ref[...]

    # Per-head output-projection row slices (d_k = one sublane group for f32).
    wo_rows = [wo_ref[hd * d_k:(hd + 1) * d_k, :] for hd in range(num_heads)]

    # Multi-head attention: query from text branch, key/value from input branch.
    # Accumulate (p @ v_h) @ wo_rows[h] directly at full lane width (no scratch).
    attn_chunks = []
    for bi in range(n_batch):                              # static loop over batch
        rows = slice(bi * seq_len, (bi + 1) * seq_len)
        acc = None
        for hd in range(num_heads):                        # static loop over heads
            cq = slice(hd * d_k, (hd + 1) * d_k)
            cv = slice(D + hd * d_k, D + (hd + 1) * d_k)
            qh = q[rows, cq]                               # (S, d_k), already scaled
            kh = kv[rows, cq]
            vh = kv[rows, cv]
            s = jax.lax.dot_general(qh, kh, (((1,), (1,)), ((), ())),
                                    preferred_element_type=jnp.float32)
            # source_mask is all ones -> masked_fill(-1e9) never fires.
            s = s - jnp.max(s, axis=-1, keepdims=True)
            p = jnp.exp(s)
            p = p * pl.reciprocal(jnp.sum(p, axis=-1, keepdims=True), approx=True)
            pv = jnp.dot(p, vh, preferred_element_type=jnp.float32)       # (S, d_k)
            contrib = jnp.dot(pv, wo_rows[hd], preferred_element_type=jnp.float32)
            acc = contrib if acc is None else acc + contrib
        attn_chunks.append(acc + bo)
    attn = attn_chunks[0] if n_batch == 1 else jnp.concatenate(attn_chunks, axis=0)

    output = normed_input + attn

    nr_out = _norm_raw(output)
    normed_output = nr_out * g + beta                       # residual path
    hid = jnp.maximum(
        jnp.dot(nr_out, w1_ref[...], preferred_element_type=jnp.float32) + b1_ref[...],
        0.0)
    ffn = jnp.dot(hid, w2_ref[...], preferred_element_type=jnp.float32) + b2
    output = normed_output + ffn

    out_ref[...] = (_norm_raw(output) * g + beta).astype(out_ref.dtype)  # final LN


def run_encoder_stack(x_pos, line_pos, packed, num_heads, batch, seq_len,
                      num_batch_blocks=1):
    """x_pos / line_pos: (B*S, D) f32.  Returns (B*S, D) f32."""
    R, D = x_pos.shape
    assert R == batch * seq_len
    assert batch % num_batch_blocks == 0
    rows_per_block = (batch // num_batch_blocks) * seq_len
    F_ = packed["w1"].shape[1]
    d_k = D // num_heads

    kernel = functools.partial(encoder_kernel, num_heads=num_heads, d_k=d_k,
                               seq_len=seq_len, eps=1e-6)

    seq_spec = pl.BlockSpec((rows_per_block, D), lambda i: (i, 0))

    def full_spec(shape):
        return pl.BlockSpec(shape, lambda i, _n=len(shape): (0,) * _n)

    in_specs = [
        seq_spec, seq_spec,
        full_spec((D, D)),        # wq   (gamma + 1/sqrt(d_k) folded)
        full_spec((D, 2 * D)),    # wkv  (gamma folded, K|V fused)
        full_spec((D, D)),        # wo
        full_spec((D, F_)),       # w1   (gamma folded)
        full_spec((F_, D)),       # w2
        full_spec((1, 2 * D)),    # bkv  (beta folded, K|V fused)
        full_spec((1, F_)),       # b1   (beta folded)
        full_spec((5, D)),        # packed D-vectors: gamma, beta, bq, bo, b2
    ]

    return pl.pallas_call(
        kernel,
        out_shape=jax.ShapeDtypeStruct((R, D), jnp.float32),
        grid_spec=pltpu.PrefetchScalarGridSpec(
            num_scalar_prefetch=0,
            grid=(num_batch_blocks,),
            in_specs=in_specs,
            out_specs=seq_spec,
        ),
        compiler_params=pltpu.CompilerParams(dimension_semantics=("parallel",)),
    )(x_pos, line_pos,
      packed["wq"], packed["wkv"], packed["wo"], packed["w1"], packed["w2"],
      packed["bkv"], packed["b1"], packed["vecd"])


# ------------------------------- glue ---------------------------------------
def positional_encoding(seq_len, dim):
    pos = jnp.arange(seq_len, dtype=jnp.float32)[:, None]
    div = jnp.exp(jnp.arange(0, dim, 2, dtype=jnp.float32) * (-math.log(10000.0) / dim))
    pe = jnp.zeros((seq_len, dim), jnp.float32)
    pe = pe.at[:, 0::2].set(jnp.sin(pos * div))
    pe = pe.at[:, 1::2].set(jnp.cos(pos * div))
    return pe


def pack_params(params, num_heads):
    """Host-side (one-time) weight prep: fuse K/V, fold gamma/beta and the
    attention scale into the projections, pack small bias vectors."""
    D = params["wq"].shape[0]
    d_k = D // num_heads
    scale = 1.0 / math.sqrt(d_k)
    g = params["ln_g"][0]        # (D,)
    beta = params["ln_b"][0]     # (D,)

    wq = params["wq"] * g[:, None] * scale
    bq = (beta @ params["wq"] + params["bq"][0]) * scale                 # (D,)

    wkv = jnp.concatenate([params["wk"], params["wv"]], axis=1) * g[:, None]
    bkv = jnp.concatenate([beta @ params["wk"] + params["bk"][0],
                           beta @ params["wv"] + params["bv"][0]])[None, :]

    w1 = params["w1"] * g[:, None]
    b1 = (beta @ params["w1"] + params["b1"][0])[None, :]

    vecd = jnp.stack([g, beta, bq, params["bo"][0], params["b2"][0]], axis=0)  # (5, D)

    return dict(wq=wq, wkv=wkv, wo=params["wo"], w1=w1, w2=params["w2"],
                bkv=bkv, b1=b1, vecd=vecd)


def text_query_encoder_forward(x, text_mask, params, num_heads, stacks,
                               num_batch_blocks=1):
    # num_batch_blocks=1 merges the batch into one grid step (best on single-TC
    # v5e/v6e); pass 2 on v7x so both TensorCores get a batch chunk.
    b, c, h, w = x.shape
    seq = h * w
    xt = x.reshape(b, c, seq).transpose(0, 2, 1).reshape(b * seq, c)       # (B*S, D)
    mt = text_mask.reshape(b, c, seq).transpose(0, 2, 1).reshape(b * seq, c)
    pe = jnp.tile(positional_encoding(seq, c), (b, 1))                     # (B*S, D)
    x_pos = xt + pe            # PositionalEncoding (dropout = identity in eval)
    line_pos = mt + pe
    assert stacks >= 1
    # Each stack iteration is independent of the previous `output` (see header
    # comment), so one kernel invocation reproduces the loop exactly.
    packed = pack_params(params, num_heads)
    out = run_encoder_stack(x_pos, line_pos, packed, num_heads, b, seq,
                            num_batch_blocks=num_batch_blocks)
    return out.reshape(b, seq, c).transpose(0, 2, 1).reshape(b, c, h, w)


# ---------------------- pure-JAX reference (for checking) -------------------
def reference_forward(x, text_mask, params, num_heads, stacks):
    b, c, h, w = x.shape
    S, D = h * w, c
    d_k = D // num_heads
    pe = positional_encoding(S, D)
    xt = x.reshape(b, c, S).transpose(0, 2, 1) + pe[None]
    mt = text_mask.reshape(b, c, S).transpose(0, 2, 1) + pe[None]

    def ln(t):
        mu = jnp.mean(t, axis=-1, keepdims=True)
        var = jnp.mean(jnp.square(t - mu), axis=-1, keepdims=True)
        return (t - mu) / jnp.sqrt(var + 1e-6) * params["ln_g"][0] + params["ln_b"][0]

    output = None
    for _ in range(stacks):
        ni = ln(xt)
        nl = ln(mt)
        q = nl @ params["wq"] + params["bq"][0]
        k = ni @ params["wk"] + params["bk"][0]
        v = ni @ params["wv"] + params["bv"][0]
        q = q.reshape(b, S, num_heads, d_k).transpose(0, 2, 1, 3)
        k = k.reshape(b, S, num_heads, d_k).transpose(0, 2, 1, 3)
        v = v.reshape(b, S, num_heads, d_k).transpose(0, 2, 1, 3)
        s = jnp.einsum("bhqd,bhkd->bhqk", q, k) / math.sqrt(d_k)
        p = jax.nn.softmax(s, axis=-1)
        a = jnp.einsum("bhqk,bhkd->bhqd", p, v).transpose(0, 2, 1, 3).reshape(b, S, D)
        a = a @ params["wo"] + params["bo"][0]
        output = ni + a
        no = ln(output)
        ffn = jnp.maximum(no @ params["w1"] + params["b1"][0], 0.0) @ params["w2"] + params["b2"][0]
        output = no + ffn
    output = ln(output)
    return output.transpose(0, 2, 1).reshape(b, c, h, w)


# ------------------------------- main ----------------------------------------
def init_params(key, dim, ff_dim):
    ks = jax.random.split(key, 12)
    n = lambda k, shp, s=0.02: (jax.random.normal(k, shp, jnp.float32) * s)
    return dict(
        wq=n(ks[0], (dim, dim)), bq=n(ks[1], (1, dim), 0.01),
        wk=n(ks[2], (dim, dim)), bk=n(ks[3], (1, dim), 0.01),
        wv=n(ks[4], (dim, dim)), bv=n(ks[5], (1, dim), 0.01),
        wo=n(ks[6], (dim, dim)), bo=n(ks[7], (1, dim), 0.01),
        w1=n(ks[8], (dim, ff_dim)), b1=n(ks[9], (1, ff_dim), 0.01),
        w2=n(ks[10], (ff_dim, dim)), b2=n(ks[11], (1, dim), 0.01),
        ln_g=jnp.ones((1, dim), jnp.float32),
        ln_b=jnp.zeros((1, dim), jnp.float32),
    )


if __name__ == "__main__":
    # Module config: heads=4, dimensions=32 (== channels c), stacks=2, ff=64.
    num_heads, dim, stacks, ff_dim = 4, 32, 2, 64
    b, c, h, w = 2, dim, 4, 4          # seq = h*w = 16

    key = jax.random.PRNGKey(0)
    k_x, k_m, k_p = jax.random.split(key, 3)
    x = jax.random.normal(k_x, (b, c, h, w), jnp.float32)
    text_mask = jax.random.normal(k_m, (b, c, h, w), jnp.float32)
    params = init_params(k_p, dim, ff_dim)

    out = text_query_encoder_forward(x, text_mask, params, num_heads, stacks)
    out = jax.block_until_ready(out)

    ref = jax.block_until_ready(reference_forward(x, text_mask, params, num_heads, stacks))
    assert out.shape == (b, c, h, w)
    np.testing.assert_allclose(np.asarray(out), np.asarray(ref), rtol=2e-3, atol=2e-3)

    print("KERNEL_OK")
</pallas_src>

<mosaic_0001>
module attributes {stable_mosaic.version = 11 : i64} {
  func.func @encoder_kernel(%arg0: i32, %arg1: memref<32x32xf32, #tpu.memory_space<vmem>>, %arg2: memref<32x32xf32, #tpu.memory_space<vmem>>, %arg3: memref<32x32xf32, #tpu.memory_space<vmem>>, %arg4: memref<32x64xf32, #tpu.memory_space<vmem>>, %arg5: memref<32x32xf32, #tpu.memory_space<vmem>>, %arg6: memref<32x64xf32, #tpu.memory_space<vmem>>, %arg7: memref<64x32xf32, #tpu.memory_space<vmem>>, %arg8: memref<1x64xf32, #tpu.memory_space<vmem>>, %arg9: memref<1x64xf32, #tpu.memory_space<vmem>>, %arg10: memref<5x32xf32, #tpu.memory_space<vmem>>, %arg11: memref<32x32xf32, #tpu.memory_space<vmem>>) attributes {dimension_semantics = [#tpu.dimension_semantics<parallel>], iteration_bounds = array<i64: 1>, scalar_prefetch = 0 : i64, scratch_operands = 0 : i64, tpu.core_type = #tpu.core_type<tc>, window_params = [{transform_indices = @transform_0, window_bounds = array<i64: 32, 32>}, {transform_indices = @transform_1, window_bounds = array<i64: 32, 32>}, {pipeline_mode = #tpu.pipeline_mode<synchronous>, transform_indices = @transform_2, window_bounds = array<i64: 32, 32>}, {pipeline_mode = #tpu.pipeline_mode<synchronous>, transform_indices = @transform_3, window_bounds = array<i64: 32, 64>}, {pipeline_mode = #tpu.pipeline_mode<synchronous>, transform_indices = @transform_4, window_bounds = array<i64: 32, 32>}, {pipeline_mode = #tpu.pipeline_mode<synchronous>, transform_indices = @transform_5, window_bounds = array<i64: 32, 64>}, {pipeline_mode = #tpu.pipeline_mode<synchronous>, transform_indices = @transform_6, window_bounds = array<i64: 64, 32>}, {pipeline_mode = #tpu.pipeline_mode<synchronous>, transform_indices = @transform_7, window_bounds = array<i64: 1, 64>}, {pipeline_mode = #tpu.pipeline_mode<synchronous>, transform_indices = @transform_8, window_bounds = array<i64: 1, 64>}, {pipeline_mode = #tpu.pipeline_mode<synchronous>, transform_indices = @transform_9, window_bounds = array<i64: 5, 32>}, {transform_indices = @transform_10, window_bounds = array<i64: 32, 32>}]} {
    %c0 = arith.constant 0 : index
    %c0_0 = arith.constant 0 : index
    %0 = vector.load %arg10[%c0, %c0_0] : memref<5x32xf32, #tpu.memory_space<vmem>>, vector<5x32xf32>
    %1 = vector.extract_strided_slice %0 {offsets = [0, 0], sizes = [1, 32], strides = [1, 1]} : vector<5x32xf32> to vector<1x32xf32>
    %2 = vector.extract_strided_slice %0 {offsets = [1, 0], sizes = [1, 32], strides = [1, 1]} : vector<5x32xf32> to vector<1x32xf32>
    %3 = vector.extract_strided_slice %0 {offsets = [2, 0], sizes = [1, 32], strides = [1, 1]} : vector<5x32xf32> to vector<1x32xf32>
    %4 = vector.extract_strided_slice %0 {offsets = [3, 0], sizes = [1, 32], strides = [1, 1]} : vector<5x32xf32> to vector<1x32xf32>
    %5 = vector.extract_strided_slice %0 {offsets = [4, 0], sizes = [1, 32], strides = [1, 1]} : vector<5x32xf32> to vector<1x32xf32>
    %c0_1 = arith.constant 0 : index
    %c0_2 = arith.constant 0 : index
    %6 = vector.load %arg1[%c0_1, %c0_2] : memref<32x32xf32, #tpu.memory_space<vmem>>, vector<32x32xf32>
    %c0_3 = arith.constant 0 : index
    %c0_4 = arith.constant 0 : index
    %7 = vector.load %arg2[%c0_3, %c0_4] : memref<32x32xf32, #tpu.memory_space<vmem>>, vector<32x32xf32>
    %cst = arith.constant dense<0.000000e+00> : vector<32xf32>
    %8 = vector.multi_reduction <add>, %6, %cst [1] : vector<32x32xf32> to vector<32xf32>
    %9 = vector.shape_cast %8 : vector<32xf32> to vector<32x1xf32>
    %cst_5 = arith.constant 3.200000e+01 : f32
    %10 = vector.broadcast %cst_5 : f32 to vector<32x1xf32>
    %11 = arith.divf %9, %10 : vector<32x1xf32>
    %12 = vector.broadcast %11 : vector<32x1xf32> to vector<32x32xf32>
    %13 = arith.subf %6, %12 : vector<32x32xf32>
    %14 = arith.mulf %13, %13 : vector<32x32xf32>
    %cst_6 = arith.constant dense<0.000000e+00> : vector<32xf32>
    %15 = vector.multi_reduction <add>, %14, %cst_6 [1] : vector<32x32xf32> to vector<32xf32>
    %16 = vector.shape_cast %15 : vector<32xf32> to vector<32x1xf32>
    %cst_7 = arith.constant 3.200000e+01 : f32
    %17 = vector.broadcast %cst_7 : f32 to vector<32x1xf32>
    %18 = arith.divf %16, %17 : vector<32x1xf32>
    %19 = vector.broadcast %11 : vector<32x1xf32> to vector<32x32xf32>
    %20 = arith.subf %6, %19 : vector<32x32xf32>
    %cst_8 = arith.constant 9.99999997E-7 : f32
    %21 = vector.broadcast %cst_8 : f32 to vector<32x1xf32>
    %22 = arith.addf %18, %21 : vector<32x1xf32>
    %23 = math.rsqrt %22 : vector<32x1xf32>
    %24 = vector.broadcast %23 : vector<32x1xf32> to vector<32x32xf32>
    %25 = arith.mulf %20, %24 : vector<32x32xf32>
    %cst_9 = arith.constant dense<0.000000e+00> : vector<32xf32>
    %26 = vector.multi_reduction <add>, %7, %cst_9 [1] : vector<32x32xf32> to vector<32xf32>
    %27 = vector.shape_cast %26 : vector<32xf32> to vector<32x1xf32>
    %cst_10 = arith.constant 3.200000e+01 : f32
    %28 = vector.broadcast %cst_10 : f32 to vector<32x1xf32>
    %29 = arith.divf %27, %28 : vector<32x1xf32>
    %30 = vector.broadcast %29 : vector<32x1xf32> to vector<32x32xf32>
    %31 = arith.subf %7, %30 : vector<32x32xf32>
    %32 = arith.mulf %31, %31 : vector<32x32xf32>
    %cst_11 = arith.constant dense<0.000000e+00> : vector<32xf32>
    %33 = vector.multi_reduction <add>, %32, %cst_11 [1] : vector<32x32xf32> to vector<32xf32>
    %34 = vector.shape_cast %33 : vector<32xf32> to vector<32x1xf32>
    %cst_12 = arith.constant 3.200000e+01 : f32
    %35 = vector.broadcast %cst_12 : f32 to vector<32x1xf32>
    %36 = arith.divf %34, %35 : vector<32x1xf32>
    %37 = vector.broadcast %29 : vector<32x1xf32> to vector<32x32xf32>
    %38 = arith.subf %7, %37 : vector<32x32xf32>
    %cst_13 = arith.constant 9.99999997E-7 : f32
    %39 = vector.broadcast %cst_13 : f32 to vector<32x1xf32>
    %40 = arith.addf %36, %39 : vector<32x1xf32>
    %41 = math.rsqrt %40 : vector<32x1xf32>
    %42 = vector.broadcast %41 : vector<32x1xf32> to vector<32x32xf32>
    %43 = arith.mulf %38, %42 : vector<32x32xf32>
    %44 = vector.broadcast %1 : vector<1x32xf32> to vector<32x32xf32>
    %45 = arith.mulf %25, %44 : vector<32x32xf32>
    %46 = vector.broadcast %2 : vector<1x32xf32> to vector<32x32xf32>
    %47 = arith.addf %45, %46 : vector<32x32xf32>
    %c0_14 = arith.constant 0 : index
    %c0_15 = arith.constant 0 : index
    %48 = vector.load %arg3[%c0_14, %c0_15] : memref<32x32xf32, #tpu.memory_space<vmem>>, vector<32x32xf32>
    %cst_16 = arith.constant dense<0.000000e+00> : vector<32x32xf32>
    %49 = tpu.matmul %43, %48, %cst_16 {dimension_numbers = #tpu.dot_dimension_numbers<[1], [0], [0], [1], [0, 0, 1, 1], [], []>, precision = #tpu.contract_precision<fp32>} : vector<32x32xf32>, vector<32x32xf32>, vector<32x32xf32> -> vector<32x32xf32>
    %50 = vector.broadcast %3 : vector<1x32xf32> to vector<32x32xf32>
    %51 = arith.addf %49, %50 : vector<32x32xf32>
    %c0_17 = arith.constant 0 : index
    %c0_18 = arith.constant 0 : index
    %52 = vector.load %arg4[%c0_17, %c0_18] : memref<32x64xf32, #tpu.memory_space<vmem>>, vector<32x64xf32>
    %cst_19 = arith.constant dense<0.000000e+00> : vector<32x64xf32>
    %53 = tpu.matmul %25, %52, %cst_19 {dimension_numbers = #tpu.dot_dimension_numbers<[1], [0], [0], [1], [0, 0, 1, 1], [], []>, precision = #tpu.contract_precision<fp32>} : vector<32x32xf32>, vector<32x64xf32>, vector<32x64xf32> -> vector<32x64xf32>
    %c0_20 = arith.constant 0 : index
    %c0_21 = arith.constant 0 : index
    %54 = vector.load %arg8[%c0_20, %c0_21] : memref<1x64xf32, #tpu.memory_space<vmem>>, vector<1x64xf32>
    %55 = vector.broadcast %54 : vector<1x64xf32> to vector<32x64xf32>
    %56 = arith.addf %53, %55 : vector<32x64xf32>
    %c0_22 = arith.constant 0 : index
    %c0_23 = arith.constant 0 : index
    %57 = vector.load %arg5[%c0_22, %c0_23] : memref<32x32xf32, #tpu.memory_space<vmem>>, vector<8x32xf32>
    %c8 = arith.constant 8 : index
    %c0_24 = arith.constant 0 : index
    %58 = vector.load %arg5[%c8, %c0_24] : memref<32x32xf32, #tpu.memory_space<vmem>>, vector<8x32xf32>
    %c16 = arith.constant 16 : index
    %c0_25 = arith.constant 0 : index
    %59 = vector.load %arg5[%c16, %c0_25] : memref<32x32xf32, #tpu.memory_space<vmem>>, vector<8x32xf32>
    %c24 = arith.constant 24 : index
    %c0_26 = arith.constant 0 : index
    %60 = vector.load %arg5[%c24, %c0_26] : memref<32x32xf32, #tpu.memory_space<vmem>>, vector<8x32xf32>
    %61 = vector.extract_strided_slice %51 {offsets = [0, 0], sizes = [16, 8], strides = [1, 1]} : vector<32x32xf32> to vector<16x8xf32>
    %62 = vector.extract_strided_slice %56 {offsets = [0, 0], sizes = [16, 8], strides = [1, 1]} : vector<32x64xf32> to vector<16x8xf32>
    %63 = vector.extract_strided_slice %56 {offsets = [0, 32], sizes = [16, 8], strides = [1, 1]} : vector<32x64xf32> to vector<16x8xf32>
    %cst_27 = arith.constant dense<0.000000e+00> : vector<16x16xf32>
    %64 = tpu.matmul %61, %62, %cst_27 {dimension_numbers = #tpu.dot_dimension_numbers<[1], [1], [0], [0], [0, 0, 1, 0], [], []>, precision = #tpu.contract_precision<fp32>} : vector<16x8xf32>, vector<16x8xf32>, vector<16x16xf32> -> vector<16x16xf32>
    %cst_28 = arith.constant dense<0xFF800000> : vector<16xf32>
    %65 = vector.multi_reduction <maximumf>, %64, %cst_28 [1] : vector<16x16xf32> to vector<16xf32>
    %66 = vector.shape_cast %65 : vector<16xf32> to vector<16x1xf32>
    %67 = vector.broadcast %66 : vector<16x1xf32> to vector<16x16xf32>
    %68 = arith.subf %64, %67 : vector<16x16xf32>
    %69 = math.exp %68 : vector<16x16xf32>
    %cst_29 = arith.constant dense<0.000000e+00> : vector<16xf32>
    %70 = vector.multi_reduction <add>, %69, %cst_29 [1] : vector<16x16xf32> to vector<16xf32>
    %71 = vector.shape_cast %70 : vector<16xf32> to vector<16x1xf32>
    %72 = tpu.reciprocal %71 {approx = true} : vector<16x1xf32> -> vector<16x1xf32>
    %73 = vector.broadcast %72 : vector<16x1xf32> to vector<16x16xf32>
    %74 = arith.mulf %69, %73 : vector<16x16xf32>
    %cst_30 = arith.constant dense<0.000000e+00> : vector<16x8xf32>
    %75 = tpu.matmul %74, %63, %cst_30 {dimension_numbers = #tpu.dot_dimension_numbers<[1], [0], [0], [1], [0, 0, 1, 1], [], []>, precision = #tpu.contract_precision<fp32>} : vector<16x16xf32>, vector<16x8xf32>, vector<16x8xf32> -> vector<16x8xf32>
    %cst_31 = arith.constant dense<0.000000e+00> : vector<16x32xf32>
    %76 = tpu.matmul %75, %57, %cst_31 {dimension_numbers = #tpu.dot_dimension_numbers<[1], [0], [0], [1], [0, 0, 1, 1], [], []>, precision = #tpu.contract_precision<fp32>} : vector<16x8xf32>, vector<8x32xf32>, vector<16x32xf32> -> vector<16x32xf32>
    %77 = vector.extract_strided_slice %51 {offsets = [0, 8], sizes = [16, 8], strides = [1, 1]} : vector<32x32xf32> to vector<16x8xf32>
    %78 = vector.extract_strided_slice %56 {offsets = [0, 8], sizes = [16, 8], strides = [1, 1]} : vector<32x64xf32> to vector<16x8xf32>
    %79 = vector.extract_strided_slice %56 {offsets = [0, 40], sizes = [16, 8], strides = [1, 1]} : vector<32x64xf32> to vector<16x8xf32>
    %cst_32 = arith.constant dense<0.000000e+00> : vector<16x16xf32>
    %80 = tpu.matmul %77, %78, %cst_32 {dimension_numbers = #tpu.dot_dimension_numbers<[1], [1], [0], [0], [0, 0, 1, 0], [], []>, precision = #tpu.contract_precision<fp32>} : vector<16x8xf32>, vector<16x8xf32>, vector<16x16xf32> -> vector<16x16xf32>
    %cst_33 = arith.constant dense<0xFF800000> : vector<16xf32>
    %81 = vector.multi_reduction <maximumf>, %80, %cst_33 [1] : vector<16x16xf32> to vector<16xf32>
    %82 = vector.shape_cast %81 : vector<16xf32> to vector<16x1xf32>
    %83 = vector.broadcast %82 : vector<16x1xf32> to vector<16x16xf32>
    %84 = arith.subf %80, %83 : vector<16x16xf32>
    %85 = math.exp %84 : vector<16x16xf32>
    %cst_34 = arith.constant dense<0.000000e+00> : vector<16xf32>
    %86 = vector.multi_reduction <add>, %85, %cst_34 [1] : vector<16x16xf32> to vector<16xf32>
    %87 = vector.shape_cast %86 : vector<16xf32> to vector<16x1xf32>
    %88 = tpu.reciprocal %87 {approx = true} : vector<16x1xf32> -> vector<16x1xf32>
    %89 = vector.broadcast %88 : vector<16x1xf32> to vector<16x16xf32>
    %90 = arith.mulf %85, %89 : vector<16x16xf32>
    %cst_35 = arith.constant dense<0.000000e+00> : vector<16x8xf32>
    %91 = tpu.matmul %90, %79, %cst_35 {dimension_numbers = #tpu.dot_dimension_numbers<[1], [0], [0], [1], [0, 0, 1, 1], [], []>, precision = #tpu.contract_precision<fp32>} : vector<16x16xf32>, vector<16x8xf32>, vector<16x8xf32> -> vector<16x8xf32>
    %cst_36 = arith.constant dense<0.000000e+00> : vector<16x32xf32>
    %92 = tpu.matmul %91, %58, %cst_36 {dimension_numbers = #tpu.dot_dimension_numbers<[1], [0], [0], [1], [0, 0, 1, 1], [], []>, precision = #tpu.contract_precision<fp32>} : vector<16x8xf32>, vector<8x32xf32>, vector<16x32xf32> -> vector<16x32xf32>
    %93 = arith.addf %76, %92 : vector<16x32xf32>
    %94 = vector.extract_strided_slice %51 {offsets = [0, 16], sizes = [16, 8], strides = [1, 1]} : vector<32x32xf32> to vector<16x8xf32>
    %95 = vector.extract_strided_slice %56 {offsets = [0, 16], sizes = [16, 8], strides = [1, 1]} : vector<32x64xf32> to vector<16x8xf32>
    %96 = vector.extract_strided_slice %56 {offsets = [0, 48], sizes = [16, 8], strides = [1, 1]} : vector<32x64xf32> to vector<16x8xf32>
    %cst_37 = arith.constant dense<0.000000e+00> : vector<16x16xf32>
    %97 = tpu.matmul %94, %95, %cst_37 {dimension_numbers = #tpu.dot_dimension_numbers<[1], [1], [0], [0], [0, 0, 1, 0], [], []>, precision = #tpu.contract_precision<fp32>} : vector<16x8xf32>, vector<16x8xf32>, vector<16x16xf32> -> vector<16x16xf32>
    %cst_38 = arith.constant dense<0xFF800000> : vector<16xf32>
    %98 = vector.multi_reduction <maximumf>, %97, %cst_38 [1] : vector<16x16xf32> to vector<16xf32>
    %99 = vector.shape_cast %98 : vector<16xf32> to vector<16x1xf32>
    %100 = vector.broadcast %99 : vector<16x1xf32> to vector<16x16xf32>
    %101 = arith.subf %97, %100 : vector<16x16xf32>
    %102 = math.exp %101 : vector<16x16xf32>
    %cst_39 = arith.constant dense<0.000000e+00> : vector<16xf32>
    %103 = vector.multi_reduction <add>, %102, %cst_39 [1] : vector<16x16xf32> to vector<16xf32>
    %104 = vector.shape_cast %103 : vector<16xf32> to vector<16x1xf32>
    %105 = tpu.reciprocal %104 {approx = true} : vector<16x1xf32> -> vector<16x1xf32>
    %106 = vector.broadcast %105 : vector<16x1xf32> to vector<16x16xf32>
    %107 = arith.mulf %102, %106 : vector<16x16xf32>
    %cst_40 = arith.constant dense<0.000000e+00> : vector<16x8xf32>
    %108 = tpu.matmul %107, %96, %cst_40 {dimension_numbers = #tpu.dot_dimension_numbers<[1], [0], [0], [1], [0, 0, 1, 1], [], []>, precision = #tpu.contract_precision<fp32>} : vector<16x16xf32>, vector<16x8xf32>, vector<16x8xf32> -> vector<16x8xf32>
    %cst_41 = arith.constant dense<0.000000e+00> : vector<16x32xf32>
    %109 = tpu.matmul %108, %59, %cst_41 {dimension_numbers = #tpu.dot_dimension_numbers<[1], [0], [0], [1], [0, 0, 1, 1], [], []>, precision = #tpu.contract_precision<fp32>} : vector<16x8xf32>, vector<8x32xf32>, vector<16x32xf32> -> vector<16x32xf32>
    %110 = arith.addf %93, %109 : vector<16x32xf32>
    %111 = vector.extract_strided_slice %51 {offsets = [0, 24], sizes = [16, 8], strides = [1, 1]} : vector<32x32xf32> to vector<16x8xf32>
    %112 = vector.extract_strided_slice %56 {offsets = [0, 24], sizes = [16, 8], strides = [1, 1]} : vector<32x64xf32> to vector<16x8xf32>
    %113 = vector.extract_strided_slice %56 {offsets = [0, 56], sizes = [16, 8], strides = [1, 1]} : vector<32x64xf32> to vector<16x8xf32>
    %cst_42 = arith.constant dense<0.000000e+00> : vector<16x16xf32>
    %114 = tpu.matmul %111, %112, %cst_42 {dimension_numbers = #tpu.dot_dimension_numbers<[1], [1], [0], [0], [0, 0, 1, 0], [], []>, precision = #tpu.contract_precision<fp32>} : vector<16x8xf32>, vector<16x8xf32>, vector<16x16xf32> -> vector<16x16xf32>
    %cst_43 = arith.constant dense<0xFF800000> : vector<16xf32>
    %115 = vector.multi_reduction <maximumf>, %114, %cst_43 [1] : vector<16x16xf32> to vector<16xf32>
    %116 = vector.shape_cast %115 : vector<16xf32> to vector<16x1xf32>
    %117 = vector.broadcast %116 : vector<16x1xf32> to vector<16x16xf32>
    %118 = arith.subf %114, %117 : vector<16x16xf32>
    %119 = math.exp %118 : vector<16x16xf32>
    %cst_44 = arith.constant dense<0.000000e+00> : vector<16xf32>
    %120 = vector.multi_reduction <add>, %119, %cst_44 [1] : vector<16x16xf32> to vector<16xf32>
    %121 = vector.shape_cast %120 : vector<16xf32> to vector<16x1xf32>
    %122 = tpu.reciprocal %121 {approx = true} : vector<16x1xf32> -> vector<16x1xf32>
    %123 = vector.broadcast %122 : vector<16x1xf32> to vector<16x16xf32>
    %124 = arith.mulf %119, %123 : vector<16x16xf32>
    %cst_45 = arith.constant dense<0.000000e+00> : vector<16x8xf32>
    %125 = tpu.matmul %124, %113, %cst_45 {dimension_numbers = #tpu.dot_dimension_numbers<[1], [0], [0], [1], [0, 0, 1, 1], [], []>, precision = #tpu.contract_precision<fp32>} : vector<16x16xf32>, vector<16x8xf32>, vector<16x8xf32> -> vector<16x8xf32>
    %cst_46 = arith.constant dense<0.000000e+00> : vector<16x32xf32>
    %126 = tpu.matmul %125, %60, %cst_46 {dimension_numbers = #tpu.dot_dimension_numbers<[1], [0], [0], [1], [0, 0, 1, 1], [], []>, precision = #tpu.contract_precision<fp32>} : vector<16x8xf32>, vector<8x32xf32>, vector<16x32xf32> -> vector<16x32xf32>
    %127 = arith.addf %110, %126 : vector<16x32xf32>
    %128 = vector.broadcast %4 : vector<1x32xf32> to vector<16x32xf32>
    %129 = arith.addf %127, %128 : vector<16x32xf32>
    %130 = vector.extract_strided_slice %51 {offsets = [16, 0], sizes = [16, 8], strides = [1, 1]} : vector<32x32xf32> to vector<16x8xf32>
    %131 = vector.extract_strided_slice %56 {offsets = [16, 0], sizes = [16, 8], strides = [1, 1]} : vector<32x64xf32> to vector<16x8xf32>
    %132 = vector.extract_strided_slice %56 {offsets = [16, 32], sizes = [16, 8], strides = [1, 1]} : vector<32x64xf32> to vector<16x8xf32>
    %cst_47 = arith.constant dense<0.000000e+00> : vector<16x16xf32>
    %133 = tpu.matmul %130, %131, %cst_47 {dimension_numbers = #tpu.dot_dimension_numbers<[1], [1], [0], [0], [0, 0, 1, 0], [], []>, precision = #tpu.contract_precision<fp32>} : vector<16x8xf32>, vector<16x8xf32>, vector<16x16xf32> -> vector<16x16xf32>
    %cst_48 = arith.constant dense<0xFF800000> : vector<16xf32>
    %134 = vector.multi_reduction <maximumf>, %133, %cst_48 [1] : vector<16x16xf32> to vector<16xf32>
    %135 = vector.shape_cast %134 : vector<16xf32> to vector<16x1xf32>
    %136 = vector.broadcast %135 : vector<16x1xf32> to vector<16x16xf32>
    %137 = arith.subf %133, %136 : vector<16x16xf32>
    %138 = math.exp %137 : vector<16x16xf32>
    %cst_49 = arith.constant dense<0.000000e+00> : vector<16xf32>
    %139 = vector.multi_reduction <add>, %138, %cst_49 [1] : vector<16x16xf32> to vector<16xf32>
    %140 = vector.shape_cast %139 : vector<16xf32> to vector<16x1xf32>
    %141 = tpu.reciprocal %140 {approx = true} : vector<16x1xf32> -> vector<16x1xf32>
    %142 = vector.broadcast %141 : vector<16x1xf32> to vector<16x16xf32>
    %143 = arith.mulf %138, %142 : vector<16x16xf32>
    %cst_50 = arith.constant dense<0.000000e+00> : vector<16x8xf32>
    %144 = tpu.matmul %143, %132, %cst_50 {dimension_numbers = #tpu.dot_dimension_numbers<[1], [0], [0], [1], [0, 0, 1, 1], [], []>, precision = #tpu.contract_precision<fp32>} : vector<16x16xf32>, vector<16x8xf32>, vector<16x8xf32> -> vector<16x8xf32>
    %cst_51 = arith.constant dense<0.000000e+00> : vector<16x32xf32>
    %145 = tpu.matmul %144, %57, %cst_51 {dimension_numbers = #tpu.dot_dimension_numbers<[1], [0], [0], [1], [0, 0, 1, 1], [], []>, precision = #tpu.contract_precision<fp32>} : vector<16x8xf32>, vector<8x32xf32>, vector<16x32xf32> -> vector<16x32xf32>
    %146 = vector.extract_strided_slice %51 {offsets = [16, 8], sizes = [16, 8], strides = [1, 1]} : vector<32x32xf32> to vector<16x8xf32>
    %147 = vector.extract_strided_slice %56 {offsets = [16, 8], sizes = [16, 8], strides = [1, 1]} : vector<32x64xf32> to vector<16x8xf32>
    %148 = vector.extract_strided_slice %56 {offsets = [16, 40], sizes = [16, 8], strides = [1, 1]} : vector<32x64xf32> to vector<16x8xf32>
    %cst_52 = arith.constant dense<0.000000e+00> : vector<16x16xf32>
    %149 = tpu.matmul %146, %147, %cst_52 {dimension_numbers = #tpu.dot_dimension_numbers<[1], [1], [0], [0], [0, 0, 1, 0], [], []>, precision = #tpu.contract_precision<fp32>} : vector<16x8xf32>, vector<16x8xf32>, vector<16x16xf32> -> vector<16x16xf32>
    %cst_53 = arith.constant dense<0xFF800000> : vector<16xf32>
    %150 = vector.multi_reduction <maximumf>, %149, %cst_53 [1] : vector<16x16xf32> to vector<16xf32>
    %151 = vector.shape_cast %150 : vector<16xf32> to vector<16x1xf32>
    %152 = vector.broadcast %151 : vector<16x1xf32> to vector<16x16xf32>
    %153 = arith.subf %149, %152 : vector<16x16xf32>
    %154 = math.exp %153 : vector<16x16xf32>
    %cst_54 = arith.constant dense<0.000000e+00> : vector<16xf32>
    %155 = vector.multi_reduction <add>, %154, %cst_54 [1] : vector<16x16xf32> to vector<16xf32>
    %156 = vector.shape_cast %155 : vector<16xf32> to vector<16x1xf32>
    %157 = tpu.reciprocal %156 {approx = true} : vector<16x1xf32> -> vector<16x1xf32>
    %158 = vector.broadcast %157 : vector<16x1xf32> to vector<16x16xf32>
    %159 = arith.mulf %154, %158 : vector<16x16xf32>
    %cst_55 = arith.constant dense<0.000000e+00> : vector<16x8xf32>
    %160 = tpu.matmul %159, %148, %cst_55 {dimension_numbers = #tpu.dot_dimension_numbers<[1], [0], [0], [1], [0, 0, 1, 1], [], []>, precision = #tpu.contract_precision<fp32>} : vector<16x16xf32>, vector<16x8xf32>, vector<16x8xf32> -> vector<16x8xf32>
    %cst_56 = arith.constant dense<0.000000e+00> : vector<16x32xf32>
    %161 = tpu.matmul %160, %58, %cst_56 {dimension_numbers = #tpu.dot_dimension_numbers<[1], [0], [0], [1], [0, 0, 1, 1], [], []>, precision = #tpu.contract_precision<fp32>} : vector<16x8xf32>, vector<8x32xf32>, vector<16x32xf32> -> vector<16x32xf32>
    %162 = arith.addf %145, %161 : vector<16x32xf32>
    %163 = vector.extract_strided_slice %51 {offsets = [16, 16], sizes = [16, 8], strides = [1, 1]} : vector<32x32xf32> to vector<16x8xf32>
    %164 = vector.extract_strided_slice %56 {offsets = [16, 16], sizes = [16, 8], strides = [1, 1]} : vector<32x64xf32> to vector<16x8xf32>
    %165 = vector.extract_strided_slice %56 {offsets = [16, 48], sizes = [16, 8], strides = [1, 1]} : vector<32x64xf32> to vector<16x8xf32>
    %cst_57 = arith.constant dense<0.000000e+00> : vector<16x16xf32>
    %166 = tpu.matmul %163, %164, %cst_57 {dimension_numbers = #tpu.dot_dimension_numbers<[1], [1], [0], [0], [0, 0, 1, 0], [], []>, precision = #tpu.contract_precision<fp32>} : vector<16x8xf32>, vector<16x8xf32>, vector<16x16xf32> -> vector<16x16xf32>
    %cst_58 = arith.constant dense<0xFF800000> : vector<16xf32>
    %167 = vector.multi_reduction <maximumf>, %166, %cst_58 [1] : vector<16x16xf32> to vector<16xf32>
    %168 = vector.shape_cast %167 : vector<16xf32> to vector<16x1xf32>
    %169 = vector.broadcast %168 : vector<16x1xf32> to vector<16x16xf32>
    %170 = arith.subf %166, %169 : vector<16x16xf32>
    %171 = math.exp %170 : vector<16x16xf32>
    %cst_59 = arith.constant dense<0.000000e+00> : vector<16xf32>
    %172 = vector.multi_reduction <add>, %171, %cst_59 [1] : vector<16x16xf32> to vector<16xf32>
    %173 = vector.shape_cast %172 : vector<16xf32> to vector<16x1xf32>
    %174 = tpu.reciprocal %173 {approx = true} : vector<16x1xf32> -> vector<16x1xf32>
    %175 = vector.broadcast %174 : vector<16x1xf32> to vector<16x16xf32>
    %176 = arith.mulf %171, %175 : vector<16x16xf32>
    %cst_60 = arith.constant dense<0.000000e+00> : vector<16x8xf32>
    %177 = tpu.matmul %176, %165, %cst_60 {dimension_numbers = #tpu.dot_dimension_numbers<[1], [0], [0], [1], [0, 0, 1, 1], [], []>, precision = #tpu.contract_precision<fp32>} : vector<16x16xf32>, vector<16x8xf32>, vector<16x8xf32> -> vector<16x8xf32>
    %cst_61 = arith.constant dense<0.000000e+00> : vector<16x32xf32>
    %178 = tpu.matmul %177, %59, %cst_61 {dimension_numbers = #tpu.dot_dimension_numbers<[1], [0], [0], [1], [0, 0, 1, 1], [], []>, precision = #tpu.contract_precision<fp32>} : vector<16x8xf32>, vector<8x32xf32>, vector<16x32xf32> -> vector<16x32xf32>
    %179 = arith.addf %162, %178 : vector<16x32xf32>
    %180 = vector.extract_strided_slice %51 {offsets = [16, 24], sizes = [16, 8], strides = [1, 1]} : vector<32x32xf32> to vector<16x8xf32>
    %181 = vector.extract_strided_slice %56 {offsets = [16, 24], sizes = [16, 8], strides = [1, 1]} : vector<32x64xf32> to vector<16x8xf32>
    %182 = vector.extract_strided_slice %56 {offsets = [16, 56], sizes = [16, 8], strides = [1, 1]} : vector<32x64xf32> to vector<16x8xf32>
    %cst_62 = arith.constant dense<0.000000e+00> : vector<16x16xf32>
    %183 = tpu.matmul %180, %181, %cst_62 {dimension_numbers = #tpu.dot_dimension_numbers<[1], [1], [0], [0], [0, 0, 1, 0], [], []>, precision = #tpu.contract_precision<fp32>} : vector<16x8xf32>, vector<16x8xf32>, vector<16x16xf32> -> vector<16x16xf32>
    %cst_63 = arith.constant dense<0xFF800000> : vector<16xf32>
    %184 = vector.multi_reduction <maximumf>, %183, %cst_63 [1] : vector<16x16xf32> to vector<16xf32>
    %185 = vector.shape_cast %184 : vector<16xf32> to vector<16x1xf32>
    %186 = vector.broadcast %185 : vector<16x1xf32> to vector<16x16xf32>
    %187 = arith.subf %183, %186 : vector<16x16xf32>
    %188 = math.exp %187 : vector<16x16xf32>
    %cst_64 = arith.constant dense<0.000000e+00> : vector<16xf32>
    %189 = vector.multi_reduction <add>, %188, %cst_64 [1] : vector<16x16xf32> to vector<16xf32>
    %190 = vector.shape_cast %189 : vector<16xf32> to vector<16x1xf32>
    %191 = tpu.reciprocal %190 {approx = true} : vector<16x1xf32> -> vector<16x1xf32>
    %192 = vector.broadcast %191 : vector<16x1xf32> to vector<16x16xf32>
    %193 = arith.mulf %188, %192 : vector<16x16xf32>
    %cst_65 = arith.constant dense<0.000000e+00> : vector<16x8xf32>
    %194 = tpu.matmul %193, %182, %cst_65 {dimension_numbers = #tpu.dot_dimension_numbers<[1], [0], [0], [1], [0, 0, 1, 1], [], []>, precision = #tpu.contract_precision<fp32>} : vector<16x16xf32>, vector<16x8xf32>, vector<16x8xf32> -> vector<16x8xf32>
    %cst_66 = arith.constant dense<0.000000e+00> : vector<16x32xf32>
    %195 = tpu.matmul %194, %60, %cst_66 {dimension_numbers = #tpu.dot_dimension_numbers<[1], [0], [0], [1], [0, 0, 1, 1], [], []>, precision = #tpu.contract_precision<fp32>} : vector<16x8xf32>, vector<8x32xf32>, vector<16x32xf32> -> vector<16x32xf32>
    %196 = arith.addf %179, %195 : vector<16x32xf32>
    %197 = vector.broadcast %4 : vector<1x32xf32> to vector<16x32xf32>
    %198 = arith.addf %196, %197 : vector<16x32xf32>
    %199 = tpu.concatenate %129, %198 in 0 : vector<16x32xf32>, vector<16x32xf32> -> vector<32x32xf32>
    %200 = arith.addf %47, %199 : vector<32x32xf32>
    %cst_67 = arith.constant dense<0.000000e+00> : vector<32xf32>
    %201 = vector.multi_reduction <add>, %200, %cst_67 [1] : vector<32x32xf32> to vector<32xf32>
    %202 = vector.shape_cast %201 : vector<32xf32> to vector<32x1xf32>
    %cst_68 = arith.constant 3.200000e+01 : f32
    %203 = vector.broadcast %cst_68 : f32 to vector<32x1xf32>
    %204 = arith.divf %202, %203 : vector<32x1xf32>
    %205 = vector.broadcast %204 : vector<32x1xf32> to vector<32x32xf32>
    %206 = arith.subf %200, %205 : vector<32x32xf32>
    %207 = arith.mulf %206, %206 : vector<32x32xf32>
    %cst_69 = arith.constant dense<0.000000e+00> : vector<32xf32>
    %208 = vector.multi_reduction <add>, %207, %cst_69 [1] : vector<32x32xf32> to vector<32xf32>
    %209 = vector.shape_cast %208 : vector<32xf32> to vector<32x1xf32>
    %cst_70 = arith.constant 3.200000e+01 : f32
    %210 = vector.broadcast %cst_70 : f32 to vector<32x1xf32>
    %211 = arith.divf %209, %210 : vector<32x1xf32>
    %212 = vector.broadcast %204 : vector<32x1xf32> to vector<32x32xf32>
    %213 = arith.subf %200, %212 : vector<32x32xf32>
    %cst_71 = arith.constant 9.99999997E-7 : f32
    %214 = vector.broadcast %cst_71 : f32 to vector<32x1xf32>
    %215 = arith.addf %211, %214 : vector<32x1xf32>
    %216 = math.rsqrt %215 : vector<32x1xf32>
    %217 = vector.broadcast %216 : vector<32x1xf32> to vector<32x32xf32>
    %218 = arith.mulf %213, %217 : vector<32x32xf32>
    %219 = vector.broadcast %1 : vector<1x32xf32> to vector<32x32xf32>
    %220 = arith.mulf %218, %219 : vector<32x32xf32>
    %221 = vector.broadcast %2 : vector<1x32xf32> to vector<32x32xf32>
    %222 = arith.addf %220, %221 : vector<32x32xf32>
    %c0_72 = arith.constant 0 : index
    %c0_73 = arith.constant 0 : index
    %223 = vector.load %arg6[%c0_72, %c0_73] : memref<32x64xf32, #tpu.memory_space<vmem>>, vector<32x64xf32>
    %cst_74 = arith.constant dense<0.000000e+00> : vector<32x64xf32>
    %224 = tpu.matmul %218, %223, %cst_74 {dimension_numbers = #tpu.dot_dimension_numbers<[1], [0], [0], [1], [0, 0, 1, 1], [], []>, precision = #tpu.contract_precision<fp32>} : vector<32x32xf32>, vector<32x64xf32>, vector<32x64xf32> -> vector<32x64xf32>
    %c0_75 = arith.constant 0 : index
    %c0_76 = arith.constant 0 : index
    %225 = vector.load %arg9[%c0_75, %c0_76] : memref<1x64xf32, #tpu.memory_space<vmem>>, vector<1x64xf32>
    %226 = vector.broadcast %225 : vector<1x64xf32> to vector<32x64xf32>
    %227 = arith.addf %224, %226 : vector<32x64xf32>
    %cst_77 = arith.constant 0.000000e+00 : f32
    %228 = vector.broadcast %cst_77 : f32 to vector<32x64xf32>
    %229 = arith.maximumf %227, %228 : vector<32x64xf32>
    %c0_78 = arith.constant 0 : index
    %c0_79 = arith.constant 0 : index
    %230 = vector.load %arg7[%c0_78, %c0_79] : memref<64x32xf32, #tpu.memory_space<vmem>>, vector<64x32xf32>
    %cst_80 = arith.constant dense<0.000000e+00> : vector<32x32xf32>
    %231 = tpu.matmul %229, %230, %cst_80 {dimension_numbers = #tpu.dot_dimension_numbers<[1], [0], [0], [1], [0, 0, 1, 1], [], []>, precision = #tpu.contract_precision<fp32>} : vector<32x64xf32>, vector<64x32xf32>, vector<32x32xf32> -> vector<32x32xf32>
    %232 = vector.broadcast %5 : vector<1x32xf32> to vector<32x32xf32>
    %233 = arith.addf %231, %232 : vector<32x32xf32>
    %234 = arith.addf %222, %233 : vector<32x32xf32>
    %cst_81 = arith.constant dense<0.000000e+00> : vector<32xf32>
    %235 = vector.multi_reduction <add>, %234, %cst_81 [1] : vector<32x32xf32> to vector<32xf32>
    %236 = vector.shape_cast %235 : vector<32xf32> to vector<32x1xf32>
    %cst_82 = arith.constant 3.200000e+01 : f32
    %237 = vector.broadcast %cst_82 : f32 to vector<32x1xf32>
    %238 = arith.divf %236, %237 : vector<32x1xf32>
    %239 = vector.broadcast %238 : vector<32x1xf32> to vector<32x32xf32>
    %240 = arith.subf %234, %239 : vector<32x32xf32>
    %241 = arith.mulf %240, %240 : vector<32x32xf32>
    %cst_83 = arith.constant dense<0.000000e+00> : vector<32xf32>
    %242 = vector.multi_reduction <add>, %241, %cst_83 [1] : vector<32x32xf32> to vector<32xf32>
    %243 = vector.shape_cast %242 : vector<32xf32> to vector<32x1xf32>
    %cst_84 = arith.constant 3.200000e+01 : f32
    %244 = vector.broadcast %cst_84 : f32 to vector<32x1xf32>
    %245 = arith.divf %243, %244 : vector<32x1xf32>
    %246 = vector.broadcast %238 : vector<32x1xf32> to vector<32x32xf32>
    %247 = arith.subf %234, %246 : vector<32x32xf32>
    %cst_85 = arith.constant 9.99999997E-7 : f32
    %248 = vector.broadcast %cst_85 : f32 to vector<32x1xf32>
    %249 = arith.addf %245, %248 : vector<32x1xf32>
    %250 = math.rsqrt %249 : vector<32x1xf32>
    %251 = vector.broadcast %250 : vector<32x1xf32> to vector<32x32xf32>
    %252 = arith.mulf %247, %251 : vector<32x32xf32>
    %253 = vector.broadcast %1 : vector<1x32xf32> to vector<32x32xf32>
    %254 = arith.mulf %252, %253 : vector<32x32xf32>
    %255 = vector.broadcast %2 : vector<1x32xf32> to vector<32x32xf32>
    %256 = arith.addf %254, %255 : vector<32x32xf32>
    %c0_86 = arith.constant 0 : index
    %c0_87 = arith.constant 0 : index
    %257 = vector.load %arg11[%c0_86, %c0_87] : memref<32x32xf32, #tpu.memory_space<vmem>>, vector<32x32xf32>
    tpu.vector_store %arg11[%c0_86, %c0_87], %256 {strides = array<i32>} : memref<32x32xf32, #tpu.memory_space<vmem>>, vector<32x32xf32>,
    return
  }
  func.func @transform_0(%arg0: i32) -> (i32, i32) {
    %c0_i32 = arith.constant 0 : i32
    %c0_i32_0 = arith.constant 0 : i32
    return %arg0, %c0_i32 : i32, i32
  }
  func.func @transform_1(%arg0: i32) -> (i32, i32) {
    %c0_i32 = arith.constant 0 : i32
    %c0_i32_0 = arith.constant 0 : i32
    return %arg0, %c0_i32 : i32, i32
  }
  func.func @transform_2(%arg0: i32) -> (i32, i32) {
    %c0_i32 = arith.constant 0 : i32
    %c0_i32_0 = arith.constant 0 : i32
    %c0_i32_1 = arith.constant 0 : i32
    return %c0_i32, %c0_i32_0 : i32, i32
  }
  func.func @transform_3(%arg0: i32) -> (i32, i32) {
    %c0_i32 = arith.constant 0 : i32
    %c0_i32_0 = arith.constant 0 : i32
    %c0_i32_1 = arith.constant 0 : i32
    return %c0_i32, %c0_i32_0 : i32, i32
  }
  func.func @transform_4(%arg0: i32) -> (i32, i32) {
    %c0_i32 = arith.constant 0 : i32
    %c0_i32_0 = arith.constant 0 : i32
    %c0_i32_1 = arith.constant 0 : i32
    return %c0_i32, %c0_i32_0 : i32, i32
  }
  func.func @transform_5(%arg0: i32) -> (i32, i32) {
    %c0_i32 = arith.constant 0 : i32
    %c0_i32_0 = arith.constant 0 : i32
    %c0_i32_1 = arith.constant 0 : i32
    return %c0_i32, %c0_i32_0 : i32, i32
  }
  func.func @transform_6(%arg0: i32) -> (i32, i32) {
    %c0_i32 = arith.constant 0 : i32
    %c0_i32_0 = arith.constant 0 : i32
    %c0_i32_1 = arith.constant 0 : i32
    return %c0_i32, %c0_i32_0 : i32, i32
  }
  func.func @transform_7(%arg0: i32) -> (i32, i32) {
    %c0_i32 = arith.constant 0 : i32
    %c0_i32_0 = arith.constant 0 : i32
    %c0_i32_1 = arith.constant 0 : i32
    return %c0_i32, %c0_i32_0 : i32, i32
  }
  func.func @transform_8(%arg0: i32) -> (i32, i32) {
    %c0_i32 = arith.constant 0 : i32
    %c0_i32_0 = arith.constant 0 : i32
    %c0_i32_1 = arith.constant 0 : i32
    return %c0_i32, %c0_i32_0 : i32, i32
  }
  func.func @transform_9(%arg0: i32) -> (i32, i32) {
    %c0_i32 = arith.constant 0 : i32
    %c0_i32_0 = arith.constant 0 : i32
    %c0_i32_1 = arith.constant 0 : i32
    return %c0_i32, %c0_i32_0 : i32, i32
  }
  func.func @transform_10(%arg0: i32) -> (i32, i32) {
    %c0_i32 = arith.constant 0 : i32
    %c0_i32_0 = arith.constant 0 : i32
    return %arg0, %c0_i32 : i32, i32
  }
}

</mosaic_0001>

<bundles_post_ra>
// kernel: tpu_custom_call.1
= control target key start
LH: loop header
LB: loop body
LE: loop exit
PB: predicated region body
PF: predicated region fallthrough
CT: control target
= control target key end

     0   :  { %15 = vsyncpa [#allocation3], 0  ;;  %s8460_s0 = inlined_call_operand.vmem [shape: f32[32,32], index: 0, kind: input, shape index: {}]   ;;  %s8461_s1 = inlined_call_operand.vmem [shape: f32[32,32], index: 1, kind: input, shape index: {}]   ;;  %s8462_s2 = inlined_call_operand.vmem [shape: f32[32,32], index: 2, kind: input, shape index: {}]   ;;  %s8463_s3 = inlined_call_operand.hbm [shape: f32[32,64], index: 3, kind: input, shape index: {}]   ;;  %s8464_s4 = inlined_call_operand.hbm [shape: f32[32,32], index: 4, kind: input, shape index: {}]   ;;  %s8465_s5 = inlined_call_operand.hbm [shape: f32[32,64], index: 5, kind: input, shape index: {}]   ;;  %s8466_s6 = inlined_call_operand.vmem [shape: f32[64,32], index: 6, kind: input, shape index: {}]   ;;  %s8467_s7 = inlined_call_operand.vmem [shape: f32[1,64], index: 7, kind: input, shape index: {}]   ;;  %s8468_s8 = inlined_call_operand.vmem [shape: f32[1,64], index: 8, kind: input, shape index: {}]   ;;  %s8469_s9 = inlined_call_operand.hbm [shape: f32[5,32], index: 9, kind: input, shape index: {}]   ;;  %s8470_s10 = inlined_call_operand.hbm [shape: f32[32,32], index: 10, kind: output, shape index: {}]  }
   0x1   :  { %16 = vsyncpa [#allocation6], 0 }
   0x2   :  { %17 = vsyncpa [#allocation9], 0 }
   0x3   :  { %18 = vsyncpa [#allocation4], 0  ;;  %s42_s15 = sshll.u32 %s8464_s4, 4  ;;  %s6933_s16 = smov [#allocation5]   ;;  %s43_s15 = int_to_ptr.hbm [resolvable:$true] %s42_s15 }
   0x4   :  { %s44_s17 = sshll.u32 %s6933_s16, 4  ;;  %s29_s20 = sshll.u32 %s8463_s3, 4  ;;  %s45_s17 = int_to_ptr.vmem [resolvable:$true] %s44_s17  ;;  %s30_s20 = int_to_ptr.hbm [resolvable:$true] %s29_s20 }
   0x5   :  { %s6934_s21 = smov 128   ;;  %s6935_s22 = smov 8  }
   0x6   :  { %50 = dma.hbm_to_vmem [thread:$0]  %s43_s15, 512, %s45_s17, [#allocation6], %s6934_s21, %s6934_s21, %s6935_s22  }
   0x7   :  { %s6936_s23 = smov [#allocation2]   ;;  %s55_s4 = sshll.u32 %s8465_s5, 4  ;;  %s56_s4 = int_to_ptr.hbm [resolvable:$true] %s55_s4 }
   0x8   :  { %s31_s24 = sshll.u32 %s6936_s23, 4  ;;  %s75_s28 = sshll.u32 %s8469_s9, 4  ;;  %s32_s24 = int_to_ptr.vmem [resolvable:$true] %s31_s24  ;;  %s76_s28 = int_to_ptr.hbm [resolvable:$true] %s75_s28 }
   0x9   :  { %37 = dma.hbm_to_vmem [thread:$0]  %s30_s20, 512, %s32_s24, [#allocation3], %s6934_s21, %s6934_s21, %s6935_s22  }
   0xa   :  { %s6937_s29 = smov [#allocation7]   ;;  %s6938_s11 = smov [#allocation8]  }
   0xb   :  { %s57_s30 = sshll.u32 %s6937_s29, 4  ;;  %s77_s5 = sshll.u32 %s6938_s11, 4  ;;  %s58_s30 = int_to_ptr.vmem [resolvable:$true] %s57_s30  ;;  %s78_s5 = int_to_ptr.vmem [resolvable:$true] %s77_s5 }
   0xc   :  { %63 = dma.hbm_to_vmem [thread:$0]  %s56_s4, 512, %s58_s30, [#allocation6], %s6934_s21, %s6934_s21, %s6935_s22  }
   0xd   :  { %80 = dma.hbm_to_vmem [thread:$0]  %s76_s28, 128, %s78_s5, [#allocation9]  }
   0xe   :  { %6925 = dma.done.wait [#allocation3], 512  }
   0xf   :  { %6926 = vsyncadd [#allocation3], 4294966784 }
  0x10   :  { %6927 = dma.done.wait [#allocation6], 1024  }
  0x11   :  { %6928 = vsyncadd [#allocation6], 4294966272 }
  0x12   :  { %6929 = dma.done.wait [#allocation9], 128  }
  0x13   :  { %6930 = vsyncadd [#allocation9], 4294967168  ;;  %vm106_vm0 = vcmask 261120   ;;  %v104_v0 = vld [vmem:[%s8461_s1 + $0x10] sm:$0xff]  ;;  %v102_v1 = vld [vmem:[%s8461_s1] sm:$0xff]  ;;  %v6939_v16 = vmov 32.0  }
  0x14   :  { %v208_v2 = vsel %vm106_vm0, %v104_v0, 0.0  ;;  %v202_v3 = vsel %vm106_vm0, %v102_v1, 0.0  ;;  %v98_v4 = vld [vmem:[%s8460_s0] sm:$0xff]  ;;  %v105_v6 = vld [vmem:[%s8461_s1 + $0x18] sm:$0xff]  ;;  %v103_v7 = vld [vmem:[%s8461_s1 + $0x8] sm:$0xff]  ;;  %6704 = vrcp.f32 %v6939_v16  ;;  %s6940_s12 = smov 96  }
  0x15   :  { %209 = vadd.xlane.f32.xlu1 %v208_v2  ;;  %203 = vadd.xlane.f32.xlu0 %v202_v3  ;;  %v107_v5 = vsel %vm106_vm0, %v98_v4, 0.0  ;;  %v99_v8 = vld [vmem:[%s8460_s0 + $0x8] sm:$0xff]  ;;  %v211_v9 = vsel %vm106_vm0, %v105_v6, 0.0  ;;  %v205_v10 = vsel %vm106_vm0, %v103_v7, 0.0  ;;  %v100_v12 = vld [vmem:[%s8460_s0 + $0x10] sm:$0xff]  ;;  %v101_v13 = vld [vmem:[%s8460_s0 + $0x18] sm:$0xff] }
  0x16   :  { %108 = vadd.xlane.f32.xlu2 %v107_v5  ;;  %v110_v11 = vsel %vm106_vm0, %v99_v8, 0.0  ;;  %v113_v14 = vsel %vm106_vm0, %v100_v12, 0.0  ;;  %v116_v15 = vsel %vm106_vm0, %v101_v13, 0.0  ;;  %v303_v63 = vld [vmem:[%s8462_s2 + $0x18] sm:$0xff]  ;;  %s6941_s13 = smov 120   ;;  %s6942_s14 = smov 88  }
  0x17   :  { %s6943_s15 = smov 112   ;;  %s6944_s16 = smov 80  }
  0x18   :  { %s6945_s17 = smov 104   ;;  %s6946_s18 = smov 72  }
  0x1a   :  { %v6705_v17 = vpop.eup %6704 }
  0x1b   :  { %v120_v18 = vmul.f32 32.0, %v6705_v17  ;;  %vm124_vm1 = vweird.f32 %v6705_v17 }
  0x1d   :  { %212 = vadd.xlane.f32.xlu1 %v211_v9  ;;  %206 = vadd.xlane.f32.xlu0 %v205_v10  ;;  %v121_v19 = vsub.f32 1.0, %v120_v18 }
  0x1e   :  { %111 = vadd.xlane.f32.xlu2 %v110_v11 }
  0x1f   :  { %v122_v20 = vmul.f32 %v6705_v17, %v121_v19 }
  0x21   :  { %v123_v21 = vadd.f32 %v6705_v17, %v122_v20 }
  0x23   :  { %v7056_v22 = vsel %vm124_vm1, %v6705_v17, %v123_v21 }
  0x24   :  { %8486 = vst [vmem:[#allocation15_spill] sm:$0xff] %v7056_v22 }
  0x25   :  { %114 = vadd.xlane.f32.xlu0 %v113_v14 }
  0x26   :  { %117 = vadd.xlane.f32.xlu2 %v116_v15 }
  0x88   :  { %v210_v23 = vpop.xlane.xlu1 %209  ;;  %v204_v24 = vpop.xlane.xlu0 %203 }
  0x89   :  { %v216_v25 = vmul.f32 %v210_v23, %v7056_v22  ;;  %v214_v26 = vmul.f32 %v204_v24, %v7056_v22  ;;  %v109_v27 = vpop.xlane.xlu2 %108 }
  0x8a   :  { %v126_v34 = vmul.f32 %v7056_v22, %v109_v27 }
  0x8b   :  { %v7060_v28 = vsub.f32 %v102_v1, %v214_v26  ;;  %v7062_v29 = vsub.f32 %v104_v0, %v216_v25  ;;  %v329_v0 = vand.u32 4294901760, %v303_v63  ;;  %v302_v1 = vld [vmem:[%s8462_s2 + $0x10] sm:$0xff] }
  0x8c   :  { %v7077_v42 = vsub.f32 %v98_v4, %v126_v34  ;;  %v331_v3 = vand.u32 4294901760, %v302_v1  ;;  %v301_v4 = vld [vmem:[%s8462_s2 + $0x8] sm:$0xff] }
  0x8d   :  { %v222_v30 = vmul.f32 %v7060_v28, %v7060_v28  ;;  %v224_v37 = vmul.f32 %v7062_v29, %v7062_v29  ;;  %v383_v2 = vsub.f32 %v303_v63, %v329_v0  ;;  %481 = vmatpush.msra.mxu3 %v329_v0  ;;  %330 = vmatpush.msra.mxu0 %v329_v0 }
  0x8e   :  { %v134_v51 = vmul.f32 %v7077_v42, %v7077_v42 }
  0x8f   :  { %v226_v31 = vsel %vm106_vm0, %v222_v30, 0.0  ;;  %v232_v43 = vsel %vm106_vm0, %v224_v37, 0.0  ;;  %v384_v5 = vand.u32 4294901760, %v383_v2  ;;  %437 = vmatpush.msra.mxu2 %v383_v2  ;;  %483 = vmatpush.msra.mxu3 %v331_v3 }
  0x90   :  { %v213_v32 = vpop.xlane.xlu1 %212  ;;  %227 = vadd.xlane.f32.xlu1 %v226_v31  ;;  %v207_v33 = vpop.xlane.xlu0 %206  ;;  %v138_v57 = vsel %vm106_vm0, %v134_v51, 0.0  ;;  %332 = vmatpush.msra.mxu0 %v331_v3 }
  0x91   :  { %v217_v35 = vmul.f32 %v213_v32, %v7056_v22  ;;  %v215_v36 = vmul.f32 %v207_v33, %v7056_v22  ;;  %v112_v38 = vpop.xlane.xlu2 %111  ;;  %v385_v9 = vsub.f32 %v383_v2, %v384_v5 }
  0x92   :  { %v127_v39 = vmul.f32 %v7056_v22, %v112_v38 }
  0x93   :  { %v7073_v40 = vsub.f32 %v105_v6, %v217_v35  ;;  %v7075_v41 = vsub.f32 %v103_v7, %v215_v36  ;;  %v389_v6 = vsub.f32 %v302_v1, %v331_v3  ;;  %v333_v7 = vand.u32 4294901760, %v301_v4 }
  0x94   :  { %v7084_v46 = vsub.f32 %v99_v8, %v127_v39  ;;  %v300_v8 = vld [vmem:[%s8462_s2] sm:$0xff] }
  0x95   :  { %v223_v44 = vmul.f32 %v7075_v41, %v7075_v41  ;;  %v225_v45 = vmul.f32 %v7073_v40, %v7073_v40  ;;  %v390_v10 = vand.u32 4294901760, %v389_v6  ;;  %v395_v11 = vsub.f32 %v301_v4, %v333_v7  ;;  %440 = vmatpush.msra.mxu2 %v389_v6  ;;  %485 = vmatpush.msra.mxu3 %v333_v7 }
  0x96   :  { %v135_v52 = vmul.f32 %v7084_v46, %v7084_v46  ;;  %334 = vmatpush.msra.mxu0 %v333_v7 }
  0x97   :  { %v229_v47 = vsel %vm106_vm0, %v223_v44, 0.0  ;;  %v235_v48 = vsel %vm106_vm0, %v225_v45, 0.0  ;;  %v391_v14 = vsub.f32 %v389_v6, %v390_v10  ;;  %v396_v15 = vand.u32 4294901760, %v395_v11  ;;  %443 = vmatpush.msra.mxu2 %v395_v11 }
  0x98   :  { %233 = vadd.xlane.f32.xlu1 %v232_v43  ;;  %230 = vadd.xlane.f32.xlu0 %v229_v47  ;;  %v115_v49 = vpop.xlane.xlu0 %114  ;;  %v141_v58 = vsel %vm106_vm0, %v135_v52, 0.0 }
  0x99   :  { %v128_v50 = vmul.f32 %v7056_v22, %v115_v49  ;;  %236 = vadd.xlane.f32.xlu2 %v235_v48  ;;  %v118_v53 = vpop.xlane.xlu2 %117  ;;  %v392_v17 = vand.u32 4294901760, %v391_v14  ;;  %v397_v18 = vsub.f32 %v395_v11, %v396_v15 }
  0x9a   :  { %v129_v54 = vmul.f32 %v7056_v22, %v118_v53 }
  0x9b   :  { %v7094_v55 = vsub.f32 %v100_v12, %v128_v50  ;;  %v335_v12 = vand.u32 4294901760, %v300_v8  ;;  %v398_v20 = vand.u32 4294901760, %v397_v18 }
  0x9c   :  { %v7100_v59 = vsub.f32 %v101_v13, %v129_v54  ;;  %v386_v13 = vand.u32 4294901760, %v385_v9  ;;  %v7159_v9 = vld [vmem:[#allocation2 + $0x10] sm:$0xff] }
  0x9d   :  { %v136_v56 = vmul.f32 %v7094_v55, %v7094_v55  ;;  %v401_v16 = vsub.f32 %v300_v8, %v335_v12  ;;  %487 = vmatpush.msra.mxu3 %v335_v12  ;;  %336 = vmatpush.msra.mxu0 %v335_v12 }
  0x9e   :  { %v137_v61 = vmul.f32 %v7100_v59, %v7100_v59  ;;  %387 = vmatpush.msra.mxu1 %v386_v13 }
  0x9f   :  { %v144_v60 = vsel %vm106_vm0, %v136_v56, 0.0  ;;  %v402_v19 = vand.u32 4294901760, %v401_v16  ;;  %446 = vmatpush.msra.mxu2 %v401_v16  ;;  %528 = vmatpush.msrb.mxu0 %v384_v5 }
  0xa0   :  { %139 = vadd.xlane.f32.xlu0 %v138_v57  ;;  %142 = vadd.xlane.f32.xlu1 %v141_v58  ;;  %v147_v62 = vsel %vm106_vm0, %v137_v61, 0.0 }
  0xa1   :  { %145 = vadd.xlane.f32.xlu2 %v144_v60  ;;  %393 = vmatpush.msra.mxu1 %v392_v17  ;;  %v403_v21 = vsub.f32 %v401_v16, %v402_v19  ;;  %v7169_v16 = vld [vmem:[#allocation2 + $0x8] sm:$0xff] }
  0xa2   :  { %532 = vmatpush.msrb.mxu0 %v390_v10 }
  0xa3   :  { %399 = vmatpush.msra.mxu1 %v398_v20  ;;  %v404_v23 = vand.u32 4294901760, %v403_v21  ;;  %v7178_v20 = vand.u32 4294901760, %v7159_v9 }
  0xa4   :  { %536 = vmatpush.msrb.mxu0 %v396_v15 }
  0xa5   :  { %405 = vmatpush.msra.mxu1 %v404_v23 }
  0xa6   :  { %540 = vmatpush.msrb.mxu0 %v402_v19 }
  0xa7   :  { %571 = vmatpush.msrb.mxu1 %v329_v0 }
  0xa8   :  { %148 = vadd.xlane.f32.xlu0 %v147_v62 }
  0xa9   :  { %573 = vmatpush.msrb.mxu1 %v331_v3  ;;  %v7150_v3 = vld [vmem:[#allocation2 + $0x18] sm:$0xff] }
  0xab   :  { %575 = vmatpush.msrb.mxu1 %v333_v7 }
  0xad   :  { %577 = vmatpush.msrb.mxu1 %v335_v12  ;;  %v7164_v12 = vand.u32 4294901760, %v7150_v3 }
  0xaf   :  { %628 = vmatpush.msrb.mxu2 %v7164_v12 }
  0xb1   :  { %630 = vmatpush.msrb.mxu2 %v7178_v20 }
 0x103   :  { %v228_v24 = vpop.xlane.xlu1 %227 }
 0x104   :  { %v238_v25 = vmul.f32 %v228_v24, %v7056_v22 }
 0x106   :  { %v242_v26 = vadd.f32 1e-06, %v238_v25 }
 0x108   :  { %6706 = vrsqrt.f32 %v242_v26  ;;  %vm252_vm3 = vweird.f32 %v242_v26 }
 0x10b   :  { %v234_v27 = vpop.xlane.xlu1 %233  ;;  %v231_v30 = vpop.xlane.xlu0 %230 }
 0x10c   :  { %v240_v31 = vmul.f32 %v234_v27, %v7056_v22  ;;  %v239_v32 = vmul.f32 %v231_v30, %v7056_v22  ;;  %v237_v33 = vpop.xlane.xlu2 %236 }
 0x10d   :  { %v241_v34 = vmul.f32 %v237_v33, %v7056_v22 }
 0x10e   :  { %v6707_v35 = vpop.eup %6706  ;;  %v244_v36 = vadd.f32 1e-06, %v240_v31  ;;  %v7122_v37 = vadd.f32 1e-06, %v239_v32  ;;  %v7205_v32 = vand.u32 4294901760, %v7169_v16 }
 0x10f   :  { %v247_v38 = vmul.f32 %v6707_v35, %v242_v26  ;;  %v7124_v39 = vadd.f32 1e-06, %v241_v34  ;;  %vm253_vm2 = vweird.f32 %v6707_v35 }
 0x110   :  { %6708 = vrsqrt.f32 %v244_v36  ;;  %vm254_vm4 = vmor %vm252_vm3, %vm253_vm2  ;;  %vm272_vm5 = vweird.f32 %v244_v36  ;;  %vm262_vm11 = vweird.f32 %v7122_v37  ;;  %632 = vmatpush.msrb.mxu2 %v7205_v32 }
 0x111   :  { %v248_v43 = vmul.f32 %v6707_v35, %v247_v38  ;;  %6710 = vrsqrt.f32 %v7122_v37  ;;  %vm282_vm6 = vweird.f32 %v7124_v39 }
 0x112   :  { %6712 = vrsqrt.f32 %v7124_v39 }
 0x113   :  { %v249_v44 = vmul.f32 0.5, %v248_v43  ;;  %v140_v45 = vpop.xlane.xlu0 %139  ;;  %v143_v47 = vpop.xlane.xlu1 %142 }
 0x114   :  { %v150_v48 = vmul.f32 %v140_v45, %v7056_v22  ;;  %v151_v49 = vmul.f32 %v143_v47, %v7056_v22  ;;  %v146_v50 = vpop.xlane.xlu2 %145 }
 0x115   :  { %v250_v51 = vsub.f32 1.5, %v249_v44  ;;  %v152_v52 = vmul.f32 %v146_v50, %v7056_v22 }
 0x116   :  { %v7131_v53 = vpop.eup %6708  ;;  %v7133_v54 = vadd.f32 1e-06, %v150_v48  ;;  %v7135_v56 = vadd.f32 1e-06, %v151_v49 }
 0x117   :  { %v7137_v57 = vpop.eup %6710  ;;  %v251_v58 = vmul.f32 %v6707_v35, %v250_v51  ;;  %v267_v60 = vmul.f32 %v7131_v53, %v244_v36  ;;  %v7140_v61 = vadd.f32 1e-06, %v152_v52  ;;  %vm273_vm7 = vweird.f32 %v7131_v53 }
 0x118   :  { %v7142_v62 = vpop.eup %6712  ;;  %v257_v63 = vmul.f32 %v7137_v57, %v7122_v37  ;;  %6714 = vrsqrt.f32 %v7133_v54  ;;  %vm263_vm8 = vweird.f32 %v7137_v57  ;;  %vm7184_vm10 = vmor %vm272_vm5, %vm273_vm7  ;;  %vm164_vm14 = vweird.f32 %v7133_v54 }
 0x119   :  { %v255_v0 = vsel %vm254_vm4, %v6707_v35, %v251_v58  ;;  %v268_v1 = vmul.f32 %v7131_v53, %v267_v60  ;;  %v277_v2 = vmul.f32 %v7142_v62, %v7124_v39  ;;  %6716 = vrsqrt.f32 %v7135_v56  ;;  %vm7197_vm12 = vmor %vm262_vm11, %vm263_vm8 }
 0x11a   :  { %v286_v4 = vmul.f32 %v255_v0, %v7060_v28  ;;  %v258_v5 = vmul.f32 %v7137_v57, %v257_v63  ;;  %6718 = vrsqrt.f32 %v7140_v61  ;;  %vm283_vm9 = vweird.f32 %v7142_v62 }
 0x11b   :  { %v269_v6 = vmul.f32 0.5, %v268_v1  ;;  %v278_v7 = vmul.f32 %v7142_v62, %v277_v2  ;;  %v149_v8 = vpop.xlane.xlu0 %148  ;;  %vm7218_vm13 = vmor %vm282_vm6, %vm283_vm9  ;;  %vm174_vm2 = vweird.f32 %v7135_v56  ;;  %v681_v2 = vsub.f32 %v7150_v3, %v7164_v12  ;;  %v595_v3 = vld [vmem:[#allocation2] sm:$0xff] }
 0x11c   :  { %v259_v10 = vmul.f32 0.5, %v258_v5  ;;  %v153_v11 = vmul.f32 %v149_v8, %v7056_v22  ;;  %v306_v28 = vsel %vm106_vm0, %v286_v4, 0  ;;  %vm184_vm5 = vweird.f32 %v7140_v61 }
 0x11d   :  { %v270_v13 = vsub.f32 1.5, %v269_v6  ;;  %v279_v14 = vmul.f32 0.5, %v278_v7  ;;  %v7167_v15 = vand.u32 4294901760, %v306_v28  ;;  %vm897_vm11 = vcmask 64512  }
 0x11e   :  { %v7171_v17 = vpop.eup %6714  ;;  %v260_v18 = vsub.f32 1.5, %v259_v10  ;;  %v7174_v19 = vadd.f32 1e-06, %v153_v11 }
 0x11f   :  { %v271_v21 = vmul.f32 %v7131_v53, %v270_v13  ;;  %v280_v24 = vsub.f32 1.5, %v279_v14  ;;  %v159_v25 = vmul.f32 %v7171_v17, %v7133_v54  ;;  %407 = vmatmul.f32.vlgmr.msra.gmra.mxu1 %v7167_v15  ;;  %v7192_v26 = vpop.eup %6716  ;;  %v338_v31 = vsub.f32 %v306_v28, %v7167_v15 }
 0x120   :  { %v261_v27 = vmul.f32 %v7137_v57, %v260_v18  ;;  %6720 = vrsqrt.f32 %v7174_v19  ;;  %779 = vmatpush.msra.mxu1 %v7164_v12  ;;  %v7208_v33 = vpop.eup %6718  ;;  %v169_v38 = vmul.f32 %v7192_v26, %v7135_v56  ;;  %vm165_vm15 = vweird.f32 %v7171_v17 }
 0x121   :  { %v275_v34 = vsel %vm7184_vm10, %v7131_v53, %v271_v21  ;;  %v281_v35 = vmul.f32 %v7142_v62, %v280_v24  ;;  %v160_v37 = vmul.f32 %v7171_v17, %v159_v25  ;;  %v179_v39 = vmul.f32 %v7208_v33, %v7140_v61  ;;  %449 = vmatmul.f32.vlgmr.msra.gmra.mxu2 %v338_v31  ;;  %vm7248_vm1 = vmor %vm164_vm14, %vm165_vm15 }
 0x122   :  { %v288_v43 = vmul.f32 %v275_v34, %v7062_v29  ;;  %v265_v44 = vsel %vm7197_vm12, %v7137_v57, %v261_v27  ;;  %781 = vmatpush.msra.mxu1 %v7178_v20  ;;  %v170_v48 = vmul.f32 %v7192_v26, %v169_v38  ;;  %v339_v50 = vand.u32 4294901760, %v338_v31 }
 0x123   :  { %v287_v45 = vmul.f32 %v265_v44, %v7075_v41  ;;  %v161_v47 = vmul.f32 0.5, %v160_v37  ;;  %v285_v29 = vsel %vm7218_vm13, %v7142_v62, %v281_v35  ;;  %v180_v49 = vmul.f32 %v7208_v33, %v179_v39 }
 0x124   :  { %783 = vmatpush.msra.mxu1 %v7205_v32  ;;  %v171_v52 = vmul.f32 0.5, %v170_v48  ;;  %v312_v53 = vsel %vm106_vm0, %v288_v43, 0  ;;  %491 = vmatmul.f32.vlgmr.msra.gmra.mxu3 %v339_v50  ;;  %v340_v60 = vsub.f32 %v338_v31, %v339_v50  ;;  %v289_v54 = vmul.f32 %v285_v29, %v7073_v40 }
 0x125   :  { %v162_v51 = vsub.f32 1.5, %v161_v47  ;;  %v309_v41 = vsel %vm106_vm0, %v287_v45, 0  ;;  %v7256_v1 = vand.u32 4294901760, %v312_v53  ;;  %vm175_vm3 = vweird.f32 %v7192_v26 }
 0x126   :  { %v7244_v57 = vpop.eup %6720  ;;  %v7253_v62 = vand.u32 4294901760, %v309_v41  ;;  %v172_v0 = vsub.f32 1.5, %v171_v52  ;;  %v341_v4 = vand.u32 4294901760, %v340_v60  ;;  %v181_v7 = vmul.f32 0.5, %v180_v49  ;;  %vm7275_vm4 = vmor %vm174_vm2, %vm175_vm3 }
 0x127   :  { %v163_v63 = vmul.f32 %v7171_v17, %v162_v51  ;;  %v189_v8 = vmul.f32 %v7244_v57, %v7174_v19  ;;  %v354_v13 = vsub.f32 %v312_v53, %v7256_v1  ;;  %v682_v14 = vand.u32 4294901760, %v681_v2 }
 0x128   :  { %411 = vmatmul.f32.gmra.mxu1 %v7253_v62  ;;  %v346_v5 = vsub.f32 %v309_v41, %v7253_v62  ;;  %v173_v10 = vmul.f32 %v7192_v26, %v172_v0  ;;  %342 = vmatmul.f32.vlgmr.msra.gmra.mxu0 %v341_v4  ;;  %vm185_vm6 = vweird.f32 %v7208_v33  ;;  %v315_v18 = vsel %vm106_vm0, %v289_v54, 0 }
 0x129   :  { %v167_v6 = vsel %vm7248_vm1, %v7171_v17, %v163_v63  ;;  %735 = vmatpush.msra.mxu0 %v681_v2  ;;  %v182_v21 = vsub.f32 1.5, %v181_v7  ;;  %v190_v56 = vmul.f32 %v7244_v57, %v189_v8  ;;  %v683_v23 = vsub.f32 %v681_v2, %v682_v14  ;;  %vm7311_vm7 = vmor %vm184_vm5, %vm185_vm6 }
 0x12a   :  { %454 = vmatmul.f32.gmra.mxu2 %v346_v5  ;;  %v347_v40 = vand.u32 4294901760, %v346_v5  ;;  %v7271_v11 = vmul.f32 %v167_v6, %v7077_v42  ;;  %v687_v42 = vsub.f32 %v7159_v9, %v7178_v20  ;;  %v7286_v24 = vand.u32 4294901760, %v595_v3 }
 0x12b   :  { %v177_v25 = vsel %vm7275_vm4, %v7192_v26, %v173_v10  ;;  %v693_v31 = vsub.f32 %v7169_v16, %v7205_v32  ;;  %v355_v34 = vand.u32 4294901760, %v354_v13  ;;  %v7293_v35 = vand.u32 4294901760, %v315_v18 }
 0x12c   :  { %8495 = vst [vmem:[#allocation16_spill] sm:$0xff] %v7271_v11  ;;  %v348_v17 = vsub.f32 %v346_v5, %v347_v40  ;;  %497 = vmatmul.f32.gmra.mxu3 %v347_v40  ;;  %v688_v30 = vand.u32 4294901760, %v687_v42  ;;  %738 = vmatpush.msra.mxu0 %v687_v42  ;;  %v684_v9 = vand.u32 4294901760, %v683_v23  ;;  %v604_v36 = vsel %vm106_vm0, %v7271_v11, 0 }
 0x12d   :  { %634 = vmatpush.msrb.mxu2 %v7286_v24  ;;  %785 = vmatpush.msra.mxu1 %v7286_v24  ;;  %v694_v37 = vand.u32 4294901760, %v693_v31  ;;  %v7300_v38 = vand.u32 4294901760, %v604_v36  ;;  %v699_v16 = vsub.f32 %v595_v3, %v7286_v24  ;;  %v183_v43 = vmul.f32 %v7208_v33, %v182_v21 }
 0x12e   :  { %v349_v27 = vand.u32 4294901760, %v348_v17  ;;  %v689_v26 = vsub.f32 %v687_v42, %v688_v30  ;;  %685 = vmatpush.msrb.mxu3 %v684_v9  ;;  %v7305_v44 = vmul.f32 %v177_v25, %v7084_v46  ;;  %v191_v39 = vmul.f32 0.5, %v190_v56  ;;  %741 = vmatpush.msra.mxu0 %v693_v31 }
 0x12f   :  { %826 = vmatpush.msra.mxu2 %v682_v14  ;;  %v695_v47 = vsub.f32 %v693_v31, %v694_v37  ;;  %v700_v48 = vand.u32 4294901760, %v699_v16  ;;  %v356_v49 = vsub.f32 %v354_v13, %v355_v34  ;;  %v362_v46 = vsub.f32 %v315_v18, %v7293_v35 }
 0x130   :  { %415 = vmatmul.f32.gmra.mxu1 %v7256_v1  ;;  %8498 = vst [vmem:[#allocation17_spill] sm:$0xff] %v7305_v44  ;;  %350 = vmatmul.f32.gmra.mxu0 %v349_v27  ;;  %v690_v45 = vand.u32 4294901760, %v689_v26  ;;  %v7317_v51 = vsub.f32 %v604_v36, %v7300_v38  ;;  %v607_v41 = vsel %vm106_vm0, %v7305_v44, 0  ;;  %v187_v61 = vsel %vm7311_vm7, %v7208_v33, %v183_v43 }
 0x131   :  { %830 = vmatpush.msra.mxu2 %v688_v30  ;;  %v696_v50 = vand.u32 4294901760, %v695_v47  ;;  %v701_v52 = vsub.f32 %v699_v16, %v700_v48  ;;  %744 = vmatpush.msra.mxu0 %v699_v16  ;;  %v192_v53 = vsub.f32 1.5, %v191_v39  ;;  %vm194_vm8 = vweird.f32 %v7174_v19 }
 0x132   :  { %459 = vmatmul.f32.gmra.mxu2 %v354_v13  ;;  %691 = vmatpush.msrb.mxu3 %v690_v45  ;;  %vm195_vm9 = vweird.f32 %v7244_v57  ;;  %v357_v60 = vand.u32 4294901760, %v356_v49  ;;  %v363_v63 = vand.u32 4294901760, %v362_v46  ;;  %v637_v0 = vand.u32 4294901760, %v7317_v51  ;;  %v97_v49 = vld [vmem:[#allocation8] sm:$0x1f] }
 0x133   :  { %834 = vmatpush.msra.mxu2 %v694_v37  ;;  %v702_v58 = vand.u32 4294901760, %v701_v52  ;;  %v643_v2 = vand.u32 4294901760, %v607_v41  ;;  %v7329_v54 = vmul.f32 %v187_v61, %v7094_v55  ;;  %v193_v33 = vmul.f32 %v7244_v57, %v192_v53  ;;  %vm196_vm10 = vmor %vm194_vm8, %vm195_vm9 }
 0x134   :  { %503 = vmatmul.f32.gmra.mxu3 %v355_v34  ;;  %v364_v19 = vsub.f32 %v362_v46, %v363_v63  ;;  %v638_v4 = vsub.f32 %v7317_v51, %v637_v0  ;;  %vm1100_vm12 = vcmask 130048  }
 0x135   :  { %697 = vmatpush.msrb.mxu3 %v696_v50  ;;  %838 = vmatpush.msra.mxu2 %v700_v48  ;;  %8501 = vst [vmem:[#allocation18_spill] sm:$0xff] %v7329_v54  ;;  %v644_v5 = vsub.f32 %v607_v41, %v643_v2  ;;  %v610_v6 = vsel %vm106_vm0, %v7329_v54, 0  ;;  %v197_v7 = vsel %vm196_vm10, %v7244_v57, %v193_v33  ;;  %vm6219_vm10 = vcmask 523264  }
 0x136   :  { %v365_v55 = vand.u32 4294901760, %v364_v19  ;;  %v639_v8 = vand.u32 4294901760, %v638_v4  ;;  %v7341_v40 = vmul.f32 %v197_v7, %v7100_v59 }
 0x137   :  { %703 = vmatpush.msrb.mxu3 %v702_v58  ;;  %v645_v10 = vand.u32 4294901760, %v644_v5 }
 0x138   :  { %419 = vmatmul.f32.gmra.mxu1 %v7293_v35  ;;  %358 = vmatmul.f32.gmra.mxu0 %v357_v60  ;;  %8502 = vst [vmem:[#allocation19_spill] sm:$0xff] %v7341_v40  ;;  %v613_v57 = vsel %vm106_vm0, %v7341_v40, 0  ;;  %v6702_v60 = vld [vmem:[%s8467_s7] ss:$0 sm:$0xff] }
 0x139   :  { %869 = vmatpush.msra.mxu3 %v7164_v12  ;;  %v651_v12 = vand.u32 4294901760, %v610_v6  ;;  %v646_v3 = vsub.f32 %v644_v5, %v645_v10  ;;  %v659_v13 = vand.u32 4294901760, %v613_v57 }
 0x13a   :  { %464 = vmatmul.f32.gmra.mxu2 %v362_v46  ;;  %v7373_v46 = vperm.slane %v97_v49, 2 }
 0x13b   :  { %871 = vmatpush.msra.mxu3 %v7178_v20  ;;  %v652_v20 = vsub.f32 %v610_v6, %v651_v12  ;;  %v660_v14 = vsub.f32 %v613_v57, %v659_v13 }
 0x13c   :  { %509 = vmatmul.f32.gmra.mxu3 %v363_v63 }
 0x13d   :  { %873 = vmatpush.msra.mxu3 %v7205_v32  ;;  %v647_v32 = vand.u32 4294901760, %v646_v3  ;;  %v653_v28 = vand.u32 4294901760, %v652_v20  ;;  %v661_v18 = vand.u32 4294901760, %v660_v14 }
 0x13f   :  { %875 = vmatpush.msra.mxu3 %v7286_v24  ;;  %v654_v59 = vsub.f32 %v652_v20, %v653_v28  ;;  %v662_v42 = vsub.f32 %v660_v14, %v661_v18 }
 0x140   :  { %579 = vmatmul.f32.vlgmr.msrb.gmra.mxu1 %v7167_v15  ;;  %366 = vmatmul.f32.gmra.mxu0 %v365_v55 }
 0x141   :  { %v655_v17 = vand.u32 4294901760, %v654_v59  ;;  %v663_v21 = vand.u32 4294901760, %v662_v42 }
 0x142   :  { %640 = vmatmul.f32.vlgmr.msrb.gmra.mxu2 %v639_v8 }
 0x144   :  { %705 = vmatmul.f32.vlgmr.msrb.gmra.mxu3 %v7300_v38 }
 0x148   :  { %583 = vmatmul.f32.gmra.mxu1 %v7253_v62  ;;  %542 = vmatmul.f32.vlgmr.msrb.gmra.mxu0 %v7167_v15 }
 0x14a   :  { %648 = vmatmul.f32.gmra.mxu2 %v647_v32 }
 0x14c   :  { %709 = vmatmul.f32.gmra.mxu3 %v643_v2 }
 0x150   :  { %587 = vmatmul.f32.gmra.mxu1 %v7256_v1  ;;  %546 = vmatmul.f32.gmra.mxu0 %v7253_v62 }
 0x152   :  { %656 = vmatmul.f32.gmra.mxu2 %v655_v17 }
 0x154   :  { %713 = vmatmul.f32.gmra.mxu3 %v651_v12 }
 0x158   :  { %591 = vmatmul.f32.gmra.mxu1 %v7293_v35  ;;  %550 = vmatmul.f32.gmra.mxu0 %v7256_v1 }
 0x15a   :  { %664 = vmatmul.f32.gmra.mxu2 %v663_v21 }
 0x15c   :  { %717 = vmatmul.f32.gmra.mxu3 %v659_v13 }
 0x160   :  { %789 = vmatmul.f32.vlgmr.msra.gmra.mxu1 %v637_v0  ;;  %554 = vmatmul.f32.gmra.mxu0 %v7293_v35 }
 0x162   :  { %840 = vmatmul.f32.vlgmr.msra.gmra.mxu2 %v7300_v38 }
 0x164   :  { %877 = vmatmul.f32.vlgmr.msra.gmra.mxu3 %v7300_v38 }
 0x168   :  { %795 = vmatmul.f32.gmra.mxu1 %v645_v10  ;;  %747 = vmatmul.f32.vlgmr.msra.gmra.mxu0 %v7317_v51 }
 0x16a   :  { %844 = vmatmul.f32.gmra.mxu2 %v643_v2 }
 0x16c   :  { %881 = vmatmul.f32.gmra.mxu3 %v643_v2 }
 0x170   :  { %801 = vmatmul.f32.gmra.mxu1 %v653_v28  ;;  %752 = vmatmul.f32.gmra.mxu0 %v644_v5 }
 0x172   :  { %848 = vmatmul.f32.gmra.mxu2 %v651_v12 }
 0x174   :  { %885 = vmatmul.f32.gmra.mxu3 %v651_v12 }
 0x178   :  { %807 = vmatmul.f32.gmra.mxu1 %v661_v18  ;;  %757 = vmatmul.f32.gmra.mxu0 %v652_v20 }
 0x17a   :  { %852 = vmatmul.f32.gmra.mxu2 %v659_v13 }
 0x17c   :  { %889 = vmatmul.f32.gmra.mxu3 %v659_v13 }
 0x180   :  { %762 = vmatmul.f32.gmra.mxu0 %v660_v14 }
 0x19c   :  { %v408_v15 = vpop.f32.mrf.mxu1 }
 0x1a4   :  { %v450_v1 = vpop.f32.mrf.mxu2 }
 0x1a5   :  { %v412_v62 = vpop.f32.mrf.mxu1  ;;  %v343_v56 = vpop.f32.mrf.mxu0 }
 0x1a6   :  { %v344_v52 = vadd.f32 %v343_v56, %v7373_v46 }
 0x1a7   :  { %v492_v23 = vpop.f32.mrf.mxu3 }
 0x1a8   :  { %v409_v53 = vadd.f32 %v408_v15, %v344_v52 }
 0x1aa   :  { %v451_v63 = vadd.f32 %v450_v1, %v409_v53 }
 0x1ac   :  { %v493_v5 = vadd.f32 %v492_v23, %v451_v63 }
 0x1ad   :  { %v7357_v24 = vpop.f32.mrf.mxu1  ;;  %v455_v25 = vpop.f32.mrf.mxu2 }
 0x1ae   :  { %v351_v27 = vpop.f32.mrf.mxu0 }
 0x1af   :  { %v498_v30 = vpop.f32.mrf.mxu3  ;;  %v352_v0 = vadd.f32 %v351_v27, %v7373_v46 }
 0x1b1   :  { %v413_v6 = vadd.f32 %v412_v62, %v352_v0 }
 0x1b3   :  { %v456_v8 = vadd.f32 %v455_v25, %v413_v6 }
 0x1b5   :  { %v7359_v31 = vpop.f32.mrf.mxu1  ;;  %v7361_v34 = vpop.f32.mrf.mxu2  ;;  %v499_v13 = vadd.f32 %v498_v30, %v456_v8 }
 0x1b6   :  { %v7363_v35 = vpop.f32.mrf.mxu0 }
 0x1b7   :  { %v7365_v9 = vpop.f32.mrf.mxu3 }
 0x1bd   :  { %v7367_v36 = vpop.f32.mrf.mxu2  ;;  %v580_v37 = vpop.f32.mrf.mxu1 }
 0x1be   :  { %v7369_v26 = vpop.f32.mrf.mxu0 }
 0x1bf   :  { %v7371_v38 = vpop.f32.mrf.mxu3 }
 0x1c5   :  { %v641_v16 = vpop.f32.mrf.mxu2  ;;  %v584_v39 = vpop.f32.mrf.mxu1 }
 0x1c6   :  { %v543_v43 = vpop.f32.mrf.mxu0  ;;  %v642_v4 = vadd.f32 %v6702_v60, %v641_v16 }
 0x1c7   :  { %v706_v45 = vpop.f32.mrf.mxu3  ;;  %v544_v7 = vadd.f32 %v543_v43, %v493_v5 }
 0x1c8   :  { %v707_v55 = vadd.f32 %v706_v45, %v642_v4 }
 0x1c9   :  { %v7396_v20 = vadd.f32 %v580_v37, %v544_v7 }
 0x1cb   :  { %v899_v17 = vsel %vm897_vm11, %v7396_v20, 0 }
 0x1cc   :  { %v928_v62 = vand.u32 4294901760, %v899_v17 }
 0x1cd   :  { %v649_v47 = vpop.f32.mrf.mxu2  ;;  %v7375_v50 = vpop.f32.mrf.mxu1 }
 0x1ce   :  { %v547_v48 = vpop.f32.mrf.mxu0  ;;  %v650_v32 = vadd.f32 %v6702_v60, %v649_v47  ;;  %v929_v16 = vsub.f32 %v899_v17, %v928_v62 }
 0x1cf   :  { %v710_v29 = vpop.f32.mrf.mxu3  ;;  %v548_v18 = vadd.f32 %v547_v48, %v499_v13 }
 0x1d0   :  { %v711_v42 = vadd.f32 %v710_v29, %v650_v32 }
 0x1d1   :  { %v7404_v56 = vadd.f32 %v584_v39, %v548_v18  ;;  %v930_v39 = vand.u32 4294901760, %v929_v16 }
 0x1d3   :  { %v902_v47 = vsel %vm897_vm11, %v7404_v56, 0  ;;  %v931_v63 = vsub.f32 %v929_v16, %v930_v39 }
 0x1d4   :  { %v936_v49 = vand.u32 4294901760, %v902_v47 }
 0x1d5   :  { %v7377_v51 = vpop.f32.mrf.mxu2  ;;  %v7384_v58 = vpop.f32.mrf.mxu1  ;;  %v932_v7 = vand.u32 4294901760, %v931_v63 }
 0x1d6   :  { %v7380_v41 = vpop.f32.mrf.mxu0  ;;  %v937_v0 = vsub.f32 %v902_v47, %v936_v49 }
 0x1d7   :  { %v7382_v61 = vpop.f32.mrf.mxu3 }
 0x1dd   :  { %v7392_v33 = vpop.f32.mrf.mxu2  ;;  %v790_v10 = vpop.f32.mrf.mxu1 }
 0x1de   :  { %v7390_v2 = vpop.f32.mrf.mxu0 }
 0x1df   :  { %v7394_v19 = vpop.f32.mrf.mxu3 }
 0x1e5   :  { %v841_v57 = vpop.f32.mrf.mxu2  ;;  %v796_v23 = vpop.f32.mrf.mxu1 }
 0x1e6   :  { %v748_v12 = vpop.f32.mrf.mxu0 }
 0x1e7   :  { %v749_v3 = vadd.f32 %v748_v12, %v707_v55  ;;  %v878_v59 = vpop.f32.mrf.mxu3  ;;  %v938_v55 = vand.u32 4294901760, %v937_v0 }
 0x1e9   :  { %v791_v28 = vadd.f32 %v790_v10, %v749_v3  ;;  %v939_v12 = vsub.f32 %v937_v0, %v938_v55 }
 0x1eb   :  { %v842_v14 = vadd.f32 %v841_v57, %v791_v28  ;;  %v940_v57 = vand.u32 4294901760, %v939_v12 }
 0x1ed   :  { %v7400_v21 = vadd.f32 %v878_v59, %v842_v14  ;;  %v845_v30 = vpop.f32.mrf.mxu2  ;;  %v7416_v28 = vpop.f32.mrf.mxu1 }
 0x1ee   :  { %v753_v15 = vpop.f32.mrf.mxu0 }
 0x1ef   :  { %v754_v1 = vadd.f32 %v753_v15, %v711_v42  ;;  %1123 = vrot.lane.b32.xlu0 %v7400_v21, %s6940_s12  ;;  %v905_v27 = vsel %vm897_vm11, %v7400_v21, 0  ;;  %v882_v43 = vpop.f32.mrf.mxu3 }
 0x1f0   :  { %v926_v45 = vand.u32 4294901760, %v905_v27 }
 0x1f1   :  { %v797_v25 = vadd.f32 %v796_v23, %v754_v1 }
 0x1f2   :  { %v966_v53 = vsub.f32 %v905_v27, %v926_v45 }
 0x1f3   :  { %v846_v37 = vadd.f32 %v845_v30, %v797_v25 }
 0x1f4   :  { %v967_v5 = vand.u32 4294901760, %v966_v53 }
 0x1f5   :  { %v7410_v48 = vadd.f32 %v882_v43, %v846_v37  ;;  %v7420_v59 = vpop.f32.mrf.mxu2  ;;  %v7422_v14 = vpop.f32.mrf.mxu1 }
 0x1f6   :  { %v968_v10 = vsub.f32 %v966_v53, %v967_v5  ;;  %v7414_v32 = vpop.f32.mrf.mxu0 }
 0x1f7   :  { %v908_v29 = vsel %vm897_vm11, %v7410_v48, 0  ;;  %v7424_v17 = vpop.f32.mrf.mxu3 }
 0x1f8   :  { %v924_v52 = vand.u32 4294901760, %v908_v29  ;;  %v969_v3 = vand.u32 4294901760, %v968_v10 }
 0x1fa   :  { %925 = vmatpush.xpose.msrb.mxu0 %v924_v52  ;;  %1026 = vmatpush.xpose.msrb.mxu3 %v924_v52  ;;  %v960_v60 = vsub.f32 %v908_v29, %v924_v52 }
 0x1fc   :  { %996 = vmatpush.xpose.msrb.mxu2 %v960_v60  ;;  %v961_v4 = vand.u32 4294901760, %v960_v60 }
 0x1fd   :  { %v7426_v42 = vpop.f32.mrf.mxu2 }
 0x1fe   :  { %927 = vmatpush.xpose.msrb.mxu0 %v926_v45  ;;  %1028 = vmatpush.xpose.msrb.mxu3 %v926_v45  ;;  %v962_v6 = vsub.f32 %v960_v60, %v961_v4  ;;  %v7418_v13 = vpop.f32.mrf.mxu0 }
 0x1ff   :  { %v7428_v23 = vpop.f32.mrf.mxu3 }
 0x200   :  { %999 = vmatpush.xpose.msrb.mxu2 %v966_v53  ;;  %v963_v8 = vand.u32 4294901760, %v962_v6 }
 0x201   :  { %933 = vmatmul.f32.vlgmr.msrb.gmra.mxu0 %v932_v7  ;;  %1032 = vmatmul.f32.vlgmr.msrb.gmra.mxu3 %v930_v39 }
 0x202   :  { %1059 = vmatpush.xpose.msra.mxu0 %v961_v4  ;;  %964 = vmatpush.xpose.msrb.mxu1 %v963_v8 }
 0x203   :  { %1002 = vmatmul.f32.vlgmr.msrb.gmra.mxu2 %v929_v16 }
 0x206   :  { %1063 = vmatpush.xpose.msra.mxu0 %v967_v5  ;;  %970 = vmatpush.xpose.msrb.mxu1 %v969_v3 }
 0x209   :  { %941 = vmatmul.f32.gmra.mxu0 %v940_v57  ;;  %972 = vmatmul.f32.vlgmr.msrb.gmra.mxu1 %v928_v62 }
 0x20a   :  { %1088 = vmatpush.xpose.msra.mxu1 %v924_v52  ;;  %1038 = vmatmul.f32.gmra.mxu3 %v938_v55 }
 0x20b   :  { %1007 = vmatmul.f32.gmra.mxu2 %v937_v0 }
 0x20e   :  { %1090 = vmatpush.xpose.msra.mxu1 %v926_v45 }
 0x211   :  { %976 = vmatmul.f32.gmra.mxu1 %v936_v49  ;;  %1065 = vmatmul.f32.vlgmr.msra.gmra.mxu0 %v928_v62 }
 0x219   :  { %1069 = vmatmul.f32.gmra.mxu0 %v936_v49  ;;  %1092 = vmatmul.f32.vlgmr.msra.gmra.mxu1 %v928_v62 }
 0x221   :  { %1096 = vmatmul.f32.gmra.mxu1 %v936_v49 }
 0x261   :  { %v1124_v12 = vpop.permute.xlu0 %1123 }
 0x27e   :  { %v934_v18 = vpop.f32.mrf.mxu0 }
 0x284   :  { %v1033_v37 = vpop.f32.mrf.mxu3 }
 0x286   :  { %v942_v15 = vpop.f32.mrf.mxu0  ;;  %v973_v1 = vpop.f32.mrf.mxu1 }
 0x287   :  { %v974_v62 = vadd.f32 %v973_v1, %v934_v18  ;;  %v1003_v25 = vpop.f32.mrf.mxu2 }
 0x289   :  { %v1004_v30 = vadd.f32 %v1003_v25, %v974_v62 }
 0x28b   :  { %v1034_v45 = vadd.f32 %v1033_v37, %v1004_v30 }
 0x28d   :  { %v1039_v60 = vpop.f32.mrf.mxu3 }
 0x28e   :  { %v977_v27 = vpop.f32.mrf.mxu1  ;;  %v1066_v16 = vpop.f32.mrf.mxu0 }
 0x28f   :  { %v978_v43 = vadd.f32 %v977_v27, %v942_v15  ;;  %v1067_v47 = vadd.f32 %v1066_v16, %v1034_v45  ;;  %v1008_v29 = vpop.f32.mrf.mxu2  ;;  %v1151_v15 = vand.u32 4294901760, %v1124_v12 }
 0x291   :  { %v1009_v49 = vadd.f32 %v1008_v29, %v978_v43  ;;  %v1191_v25 = vsub.f32 %v1124_v12, %v1151_v15 }
 0x293   :  { %v1040_v0 = vadd.f32 %v1039_v60, %v1009_v49  ;;  %v1192_v43 = vand.u32 4294901760, %v1191_v25 }
 0x296   :  { %v1093_v39 = vpop.f32.mrf.mxu1  ;;  %v1070_v63 = vpop.f32.mrf.mxu0 }
 0x297   :  { %v1094_v52 = vadd.f32 %v1093_v39, %v1067_v47  ;;  %v1071_v4 = vadd.f32 %v1070_v63, %v1040_v0  ;;  %v1193_v39 = vsub.f32 %v1191_v25, %v1192_v43 }
 0x299   :  { %v1101_v53 = vsel %vm1100_vm12, %v1094_v52, -inf }
 0x29a   :  { %1102 = vmax.xlane.f32.xlu1 %v1101_v53 }
 0x29e   :  { %v1097_v5 = vpop.f32.mrf.mxu1 }
 0x29f   :  { %v1098_v6 = vadd.f32 %v1097_v5, %v1071_v4 }
 0x2a1   :  { %v1104_v7 = vsel %vm1100_vm12, %v1098_v6, -inf }
 0x2a2   :  { %1105 = vmax.xlane.f32.xlu2 %v1104_v7 }
 0x2ba   :  { %1125 = vrot.lane.b32.xlu2 %v7410_v48, %s6940_s12 }
 0x2c2   :  { %1329 = vrot.lane.b32.xlu2 %v7400_v21, %s6941_s13 }
 0x2ca   :  { %1327 = vrot.lane.b32.xlu2 %v7404_v56, %s6941_s13 }
 0x30d   :  { %v1103_v55 = vpop.xlane.xlu1 %1102 }
 0x30e   :  { %v1107_v8 = vsub.f32 %v1094_v52, %v1103_v55  ;;  %v1194_v52 = vand.u32 4294901760, %v1193_v39 }
 0x310   :  { %v1109_v10 = vmul.f32 1.442695, %v1107_v8 }
 0x312   :  { %6722 = vpow2.f32 %v1109_v10 }
 0x315   :  { %v1106_v3 = vpop.xlane.xlu2 %1105 }
 0x316   :  { %v1108_v57 = vsub.f32 %v1098_v6, %v1106_v3 }
 0x318   :  { %v6723_v18 = vpop.eup %6722  ;;  %v1111_v1 = vmul.f32 1.442695, %v1108_v57 }
 0x319   :  { %v1113_v62 = vsel %vm1100_vm12, %v6723_v18, 0.0 }
 0x31a   :  { %6724 = vpow2.f32 %v1111_v1  ;;  %1114 = vadd.xlane.f32.xlu0 %v1113_v62 }
 0x31d   :  { %v1126_v27 = vpop.permute.xlu2 %1125 }
 0x31e   :  { %v1149_v30 = vand.u32 4294901760, %v1126_v27 }
 0x320   :  { %v6725_v37 = vpop.eup %6724  ;;  %v1185_v16 = vsub.f32 %v1126_v27, %v1149_v30  ;;  %1150 = vmatpush.msra.mxu2 %v1149_v30  ;;  %1251 = vmatpush.msrb.mxu1 %v1149_v30 }
 0x321   :  { %v1116_v45 = vsel %vm1100_vm12, %v6725_v37, 0.0 }
 0x322   :  { %v1186_v47 = vand.u32 4294901760, %v1185_v16  ;;  %1117 = vadd.xlane.f32.xlu1 %v1116_v45  ;;  %1152 = vmatpush.msra.mxu2 %v1151_v15 }
 0x323   :  { %1221 = vmatpush.msrb.mxu0 %v1185_v16  ;;  %1253 = vmatpush.msrb.mxu1 %v1151_v15 }
 0x324   :  { %v1187_v29 = vsub.f32 %v1185_v16, %v1186_v47  ;;  %1284 = vmatpush.msrb.mxu2 %v1186_v47 }
 0x325   :  { %1224 = vmatpush.msrb.mxu0 %v1191_v25  ;;  %v1330_v10 = vpop.permute.xlu2 %1329 }
 0x326   :  { %v1188_v49 = vand.u32 4294901760, %v1187_v29  ;;  %1288 = vmatpush.msrb.mxu2 %v1192_v43 }
 0x328   :  { %1189 = vmatpush.msra.mxu3 %v1188_v49 }
 0x32a   :  { %1195 = vmatpush.msra.mxu3 %v1194_v52 }
 0x32c   :  { %1313 = vmatpush.msrb.mxu3 %v1149_v30 }
 0x32d   :  { %v1328_v16 = vpop.permute.xlu2 %1327 }
 0x32e   :  { %1315 = vmatpush.msrb.mxu3 %v1151_v15  ;;  %1325 = vrot.lane.b32.xlu0 %v7396_v20, %s6941_s13  ;;  %v1335_v29 = vsel %vm897_vm11, %v1328_v16, 0 }
 0x32f   :  { %v1367_v49 = vand.u32 4294901760, %v1335_v29 }
 0x33b   :  { %1331 = vrot.lane.b32.xlu1 %v7410_v48, %s6941_s13 }
 0x38d   :  { %v1115_v53 = vpop.xlane.xlu0 %1114 }
 0x38e   :  { %6726 = vrcp.f32 %v1115_v53 }
 0x394   :  { %v6727_v60 = vpop.eup %6726 }
 0x395   :  { %v1121_v63 = vmul.f32 %v6727_v60, %v6723_v18  ;;  %v1118_v0 = vpop.xlane.xlu1 %1117 }
 0x396   :  { %6728 = vrcp.f32 %v1118_v0 }
 0x397   :  { %v1130_v4 = vsel %vm1100_vm12, %v1121_v63, 0 }
 0x398   :  { %v1153_v5 = vand.u32 4294901760, %v1130_v4 }
 0x39a   :  { %1197 = vmatmul.f32.vlgmr.msra.gmra.mxu3 %v1153_v5  ;;  %v1154_v6 = vsub.f32 %v1130_v4, %v1153_v5  ;;  %v1368_v4 = vsub.f32 %v1335_v29, %v1367_v49 }
 0x39c   :  { %v6729_v7 = vpop.eup %6728  ;;  %1227 = vmatmul.f32.vlgmr.msrb.gmra.mxu0 %v1154_v6  ;;  %v1155_v55 = vand.u32 4294901760, %v1154_v6 }
 0x39d   :  { %v1122_v8 = vmul.f32 %v6729_v7, %v6725_v37  ;;  %v1337_v37 = vsel %vm897_vm11, %v1330_v10, 0 }
 0x39e   :  { %1257 = vmatmul.f32.vlgmr.msrb.gmra.mxu1 %v1155_v55  ;;  %v1156_v12 = vsub.f32 %v1154_v6, %v1155_v55  ;;  %v1357_v47 = vand.u32 4294901760, %v1337_v37 }
 0x39f   :  { %v1133_v3 = vsel %vm1100_vm12, %v1122_v8, 0 }
 0x3a0   :  { %v1326_v57 = vpop.permute.xlu0 %1325  ;;  %v1157_v15 = vand.u32 4294901760, %v1156_v12  ;;  %v1161_v1 = vand.u32 4294901760, %v1133_v3  ;;  %v1397_v60 = vsub.f32 %v1337_v37, %v1357_v47  ;;  %v1369_v12 = vand.u32 4294901760, %v1368_v4 }
 0x3a1   :  { %v1333_v62 = vsel %vm897_vm11, %v1326_v57, 0 }
 0x3a2   :  { %1158 = vmatmul.f32.vlgmr.msra.gmra.mxu2 %v1157_v15  ;;  %1201 = vmatmul.f32.gmra.mxu3 %v1161_v1  ;;  %v1162_v18 = vsub.f32 %v1133_v3, %v1161_v1  ;;  %v1359_v27 = vand.u32 4294901760, %v1333_v62  ;;  %v1398_v55 = vand.u32 4294901760, %v1397_v60  ;;  %v1370_v15 = vsub.f32 %v1368_v4, %v1369_v12 }
 0x3a4   :  { %1232 = vmatmul.f32.gmra.mxu0 %v1162_v18  ;;  %v1163_v25 = vand.u32 4294901760, %v1162_v18  ;;  %v1360_v45 = vsub.f32 %v1333_v62, %v1359_v27  ;;  %v1399_v57 = vsub.f32 %v1397_v60, %v1398_v55 }
 0x3a6   :  { %1263 = vmatmul.f32.gmra.mxu1 %v1163_v25  ;;  %v1164_v30 = vsub.f32 %v1162_v18, %v1163_v25  ;;  %v1361_v52 = vand.u32 4294901760, %v1360_v45  ;;  %v1371_v18 = vand.u32 4294901760, %v1370_v15 }
 0x3a8   :  { %v1165_v43 = vand.u32 4294901760, %v1164_v30  ;;  %v1362_v6 = vsub.f32 %v1360_v45, %v1361_v52 }
 0x3aa   :  { %1166 = vmatmul.f32.gmra.mxu2 %v1165_v43  ;;  %1317 = vmatmul.f32.vlgmr.msrb.gmra.mxu3 %v1153_v5  ;;  %v1363_v10 = vand.u32 4294901760, %v1362_v6 }
 0x3ad   :  { %v1332_v39 = vpop.permute.xlu1 %1331 }
 0x3ae   :  { %v1339_v53 = vsel %vm897_vm11, %v1332_v39, 0 }
 0x3af   :  { %v1355_v63 = vand.u32 4294901760, %v1339_v53 }
 0x3b1   :  { %v1391_v0 = vsub.f32 %v1339_v53, %v1355_v63  ;;  %1356 = vmatpush.xpose.msra.mxu0 %v1355_v63  ;;  %1457 = vmatpush.xpose.msra.mxu3 %v1355_v63 }
 0x3b2   :  { %1290 = vmatmul.f32.vlgmr.msrb.gmra.mxu2 %v1153_v5  ;;  %1321 = vmatmul.f32.gmra.mxu3 %v1161_v1  ;;  %v1400_v5 = vand.u32 4294901760, %v1399_v57 }
 0x3b3   :  { %v1392_v7 = vand.u32 4294901760, %v1391_v0  ;;  %1427 = vmatpush.xpose.msra.mxu2 %v1391_v0 }
 0x3b5   :  { %v1393_v8 = vsub.f32 %v1391_v0, %v1392_v7  ;;  %1358 = vmatpush.xpose.msra.mxu0 %v1357_v47  ;;  %1459 = vmatpush.xpose.msra.mxu3 %v1357_v47 }
 0x3b7   :  { %v1394_v3 = vand.u32 4294901760, %v1393_v8  ;;  %1430 = vmatpush.xpose.msra.mxu2 %v1397_v60 }
 0x3b8   :  { %1364 = vmatmul.f32.vlgmr.msra.gmra.mxu0 %v1363_v10 }
 0x3b9   :  { %1490 = vmatpush.xpose.msrb.mxu0 %v1392_v7  ;;  %1395 = vmatpush.xpose.msra.mxu1 %v1394_v3 }
 0x3ba   :  { %1294 = vmatmul.f32.gmra.mxu2 %v1161_v1  ;;  %1463 = vmatmul.f32.vlgmr.msra.gmra.mxu3 %v1361_v52 }
 0x3bd   :  { %1494 = vmatpush.xpose.msrb.mxu0 %v1398_v55  ;;  %1401 = vmatpush.xpose.msra.mxu1 %v1400_v5 }
 0x3c0   :  { %1372 = vmatmul.f32.gmra.mxu0 %v1371_v18  ;;  %1403 = vmatmul.f32.vlgmr.msra.gmra.mxu1 %v1359_v27 }
 0x3c1   :  { %1519 = vmatpush.xpose.msrb.mxu1 %v1355_v63 }
 0x3c2   :  { %1433 = vmatmul.f32.vlgmr.msra.gmra.mxu2 %v1360_v45  ;;  %1469 = vmatmul.f32.gmra.mxu3 %v1369_v12 }
 0x3c5   :  { %1521 = vmatpush.xpose.msrb.mxu1 %v1357_v47 }
 0x3c8   :  { %1407 = vmatmul.f32.gmra.mxu1 %v1367_v49  ;;  %1496 = vmatmul.f32.vlgmr.msrb.gmra.mxu0 %v1359_v27 }
 0x3ca   :  { %1438 = vmatmul.f32.gmra.mxu2 %v1368_v4 }
 0x3d0   :  { %1500 = vmatmul.f32.gmra.mxu0 %v1367_v49  ;;  %1523 = vmatmul.f32.vlgmr.msrb.gmra.mxu1 %v1359_v27 }
 0x3d8   :  { %1527 = vmatmul.f32.gmra.mxu1 %v1367_v49 }
 0x419   :  { %v7452_v1 = vpop.f32.mrf.mxu0 }
 0x41b   :  { %v7458_v37 = vpop.f32.mrf.mxu1 }
 0x41d   :  { %v7450_v62 = vpop.f32.mrf.mxu3 }
 0x421   :  { %v7462_v43 = vpop.f32.mrf.mxu0 }
 0x423   :  { %v7466_v47 = vpop.f32.mrf.mxu1 }
 0x425   :  { %v7454_v25 = vpop.f32.mrf.mxu2  ;;  %v7456_v30 = vpop.f32.mrf.mxu3 }
 0x42d   :  { %v7460_v16 = vpop.f32.mrf.mxu2  ;;  %v7464_v45 = vpop.f32.mrf.mxu3 }
 0x435   :  { %v7468_v27 = vpop.f32.mrf.mxu2  ;;  %v1365_v29 = vpop.f32.mrf.mxu0 }
 0x436   :  { %v7470_v39 = vpop.f32.mrf.mxu3 }
 0x43d   :  { %v7472_v49 = vpop.f32.mrf.mxu2  ;;  %v1404_v52 = vpop.f32.mrf.mxu1 }
 0x43e   :  { %v1373_v53 = vpop.f32.mrf.mxu0  ;;  %v1405_v60 = vadd.f32 %v1404_v52, %v1365_v29  ;;  %v1464_v63 = vpop.f32.mrf.mxu3 }
 0x445   :  { %v1408_v0 = vpop.f32.mrf.mxu1  ;;  %v1434_v4 = vpop.f32.mrf.mxu2 }
 0x446   :  { %v1435_v6 = vadd.f32 %v1434_v4, %v1405_v60  ;;  %v1497_v55 = vpop.f32.mrf.mxu0  ;;  %v1409_v8 = vadd.f32 %v1408_v0, %v1373_v53  ;;  %v1470_v5 = vpop.f32.mrf.mxu3 }
 0x448   :  { %v1465_v7 = vadd.f32 %v1464_v63, %v1435_v6 }
 0x44a   :  { %v1498_v10 = vadd.f32 %v1497_v55, %v1465_v7 }
 0x44d   :  { %v1439_v12 = vpop.f32.mrf.mxu2  ;;  %v1524_v3 = vpop.f32.mrf.mxu1 }
 0x44e   :  { %v1440_v57 = vadd.f32 %v1439_v12, %v1409_v8  ;;  %v1525_v15 = vadd.f32 %v1524_v3, %v1498_v10  ;;  %v1501_v54 = vpop.f32.mrf.mxu0 }
 0x450   :  { %v1471_v18 = vadd.f32 %v1470_v5, %v1440_v57  ;;  %v1531_v40 = vsel %vm1100_vm12, %v1525_v15, -inf }
 0x451   :  { %1532 = vmax.xlane.f32.xlu1 %v1531_v40 }
 0x452   :  { %v1502_v22 = vadd.f32 %v1501_v54, %v1471_v18 }
 0x455   :  { %v1528_v29 = vpop.f32.mrf.mxu1 }
 0x456   :  { %v1529_v52 = vadd.f32 %v1528_v29, %v1502_v22 }
 0x458   :  { %v1534_v44 = vsel %vm1100_vm12, %v1529_v52, -inf }
 0x459   :  { %1535 = vmax.xlane.f32.xlu0 %v1534_v44 }
 0x46d   :  { %1555 = vrot.lane.b32.xlu0 %v7410_v48, %s6942_s14 }
 0x475   :  { %2125 = vrot.lane.b32.xlu0 %v7400_v21, %s6943_s15 }
 0x47d   :  { %2123 = vrot.lane.b32.xlu0 %v7404_v56, %s6943_s15 }
 0x4c4   :  { %v1533_v53 = vpop.xlane.xlu1 %1532 }
 0x4c5   :  { %v1537_v40 = vsub.f32 %v1525_v15, %v1533_v53 }
 0x4c7   :  { %v1539_v60 = vmul.f32 1.442695, %v1537_v40 }
 0x4c9   :  { %6730 = vpow2.f32 %v1539_v60 }
 0x4cc   :  { %v1536_v54 = vpop.xlane.xlu0 %1535 }
 0x4cd   :  { %v1538_v22 = vsub.f32 %v1529_v52, %v1536_v54 }
 0x4cf   :  { %v6731_v63 = vpop.eup %6730  ;;  %v1541_v0 = vmul.f32 1.442695, %v1538_v22 }
 0x4d0   :  { %v1543_v44 = vsel %vm1100_vm12, %v6731_v63, 0.0 }
 0x4d1   :  { %6732 = vpow2.f32 %v1541_v0  ;;  %1544 = vadd.xlane.f32.xlu2 %v1543_v44 }
 0x4d7   :  { %v6733_v4 = vpop.eup %6732 }
 0x4d8   :  { %v1546_v6 = vsel %vm1100_vm12, %v6733_v4, 0.0 }
 0x4d9   :  { %1547 = vadd.xlane.f32.xlu1 %v1546_v6 }
 0x4df   :  { %v1556_v7 = vpop.permute.xlu0 %1555 }
 0x4e0   :  { %v1579_v55 = vand.u32 4294901760, %v1556_v7 }
 0x4e2   :  { %v1615_v8 = vsub.f32 %v1556_v7, %v1579_v55  ;;  %1580 = vmatpush.msrb.mxu2 %v1579_v55  ;;  %1681 = vmatpush.msra.mxu1 %v1579_v55 }
 0x4e4   :  { %v1616_v10 = vand.u32 4294901760, %v1615_v8  ;;  %1651 = vmatpush.msra.mxu0 %v1615_v8 }
 0x4e6   :  { %v1617_v12 = vsub.f32 %v1615_v8, %v1616_v10 }
 0x4e8   :  { %v1618_v3 = vand.u32 4294901760, %v1617_v12 }
 0x4e9   :  { %1553 = vrot.lane.b32.xlu2 %v7400_v21, %s6942_s14 }
 0x4ea   :  { %1619 = vmatpush.msrb.mxu3 %v1618_v3 }
 0x4f1   :  { %2121 = vrot.lane.b32.xlu2 %v7396_v20, %s6943_s15 }
 0x4f2   :  { %2127 = vrot.lane.b32.xlu1 %v7410_v48, %s6943_s15 }
 0x544   :  { %v1545_v57 = vpop.xlane.xlu2 %1544 }
 0x545   :  { %6734 = vrcp.f32 %v1545_v57 }
 0x54b   :  { %v6735_v15 = vpop.eup %6734 }
 0x54c   :  { %v1551_v5 = vmul.f32 %v6735_v15, %v6731_v63  ;;  %v1554_v18 = vpop.permute.xlu2 %1553  ;;  %v1548_v29 = vpop.xlane.xlu1 %1547 }
 0x54d   :  { %v1581_v52 = vand.u32 4294901760, %v1554_v18  ;;  %6736 = vrcp.f32 %v1548_v29 }
 0x54e   :  { %v1560_v53 = vsel %vm1100_vm12, %v1551_v5, 0 }
 0x54f   :  { %v1621_v40 = vsub.f32 %v1554_v18, %v1581_v52  ;;  %1582 = vmatpush.msrb.mxu2 %v1581_v52  ;;  %1683 = vmatpush.msra.mxu1 %v1581_v52  ;;  %v1583_v60 = vand.u32 4294901760, %v1560_v53 }
 0x551   :  { %1714 = vmatpush.msra.mxu2 %v1616_v10  ;;  %1654 = vmatpush.msra.mxu0 %v1621_v40  ;;  %v1584_v54 = vsub.f32 %v1560_v53, %v1583_v60  ;;  %v1622_v22 = vand.u32 4294901760, %v1621_v40 }
 0x553   :  { %v6737_v0 = vpop.eup %6736  ;;  %1657 = vmatmul.f32.vlgmr.msra.gmra.mxu0 %v1584_v54  ;;  %1718 = vmatpush.msra.mxu2 %v1622_v22  ;;  %v1585_v44 = vand.u32 4294901760, %v1584_v54  ;;  %v1623_v6 = vsub.f32 %v1621_v40, %v1622_v22  ;;  %v1199_v22 = vadd.f32 %v7450_v62, %v7454_v25  ;;  %v1203_v62 = vadd.f32 %v7456_v30, %v7460_v16 }
 0x554   :  { %v1552_v63 = vmul.f32 %v6737_v0, %v6733_v4  ;;  %v894_v4 = vld [vmem:[#allocation5 + $0x8] sm:$0xff]  ;;  %v893_v0 = vld [vmem:[#allocation5] sm:$0xff] }
 0x555   :  { %1687 = vmatmul.f32.vlgmr.msra.gmra.mxu1 %v1585_v44  ;;  %v1624_v7 = vand.u32 4294901760, %v1623_v6  ;;  %v1586_v8 = vsub.f32 %v1584_v54, %v1585_v44  ;;  %v7492_v29 = vand.u32 4294901760, %v894_v4  ;;  %v7512_v44 = vand.u32 4294901760, %v893_v0 }
 0x556   :  { %v1563_v12 = vsel %vm1100_vm12, %v1552_v63, 0  ;;  %v1229_v6 = vadd.f32 %v7452_v1, %v1199_v22 }
 0x557   :  { %1625 = vmatpush.msrb.mxu3 %v1624_v7  ;;  %v1587_v3 = vand.u32 4294901760, %v1586_v8  ;;  %v1591_v57 = vand.u32 4294901760, %v1563_v12  ;;  %v7495_v53 = vsub.f32 %v894_v4, %v7492_v29  ;;  %1777 = vmatpush.msrb.mxu0 %v7492_v29  ;;  %v7517_v8 = vsub.f32 %v893_v0, %v7512_v44 }
 0x558   :  { %1627 = vmatmul.f32.vlgmr.msrb.gmra.mxu3 %v1583_v60  ;;  %v1259_v25 = vadd.f32 %v7458_v37, %v1229_v6  ;;  %v1234_v4 = vadd.f32 %v7462_v43, %v1203_v62 }
 0x559   :  { %1743 = vmatpush.msra.mxu3 %v1579_v55  ;;  %1588 = vmatmul.f32.vlgmr.msrb.gmra.mxu2 %v1587_v3  ;;  %v1592_v10 = vsub.f32 %v1563_v12, %v1591_v57  ;;  %v7500_v55 = vand.u32 4294901760, %v7495_v53 }
 0x55a   :  { %1842 = vmatpush.msrb.mxu2 %v7495_v53  ;;  %v1265_v6 = vadd.f32 %v7466_v47, %v1234_v4 }
 0x55b   :  { %1745 = vmatpush.msra.mxu3 %v1581_v52  ;;  %1662 = vmatmul.f32.gmra.mxu0 %v1592_v10  ;;  %v1593_v15 = vand.u32 4294901760, %v1592_v10  ;;  %v1813_v52 = vsub.f32 %v7495_v53, %v7500_v55 }
 0x55c   :  { %1902 = vmatpush.msra.mxu0 %v7500_v55  ;;  %v1296_v43 = vadd.f32 %v7472_v49, %v1265_v6 }
 0x55d   :  { %1693 = vmatmul.f32.gmra.mxu1 %v1593_v15  ;;  %v1594_v5 = vsub.f32 %v1592_v10, %v1593_v15  ;;  %1870 = vmatpush.msrb.mxu3 %v7492_v29  ;;  %v7506_v40 = vand.u32 4294901760, %v1813_v52 }
 0x55f   :  { %v1595_v18 = vand.u32 4294901760, %v1594_v5  ;;  %1815 = vmatpush.msrb.mxu1 %v7506_v40  ;;  %v1292_v5 = vadd.f32 %v7468_v27, %v1259_v25 }
 0x560   :  { %1631 = vmatmul.f32.gmra.mxu3 %v1591_v57 }
 0x561   :  { %1596 = vmatmul.f32.gmra.mxu2 %v1595_v18  ;;  %1928 = vmatpush.msra.mxu1 %v7492_v29  ;;  %v1319_v30 = vadd.f32 %v7464_v45, %v1292_v5 }
 0x563   :  { %v1939_v25 = vsel %vm897_vm11, %v1319_v30, 0 }
 0x564   :  { %v2128_v37 = vpop.permute.xlu1 %2127 }
 0x565   :  { %v2135_v27 = vsel %vm897_vm11, %v2128_v37, 0 }
 0x568   :  { %1747 = vmatmul.f32.vlgmr.msra.gmra.mxu3 %v1583_v60 }
 0x569   :  { %1720 = vmatmul.f32.vlgmr.msra.gmra.mxu2 %v1583_v60 }
 0x56a   :  { %1960 = vmatpush.msra.mxu2 %v7512_v44 }
 0x570   :  { %1751 = vmatmul.f32.gmra.mxu3 %v1591_v57 }
 0x571   :  { %1724 = vmatmul.f32.gmra.mxu2 %v1591_v57  ;;  %v7520_v57 = vand.u32 4294901760, %v7517_v8 }
 0x573   :  { %v1996_v1 = vsub.f32 %v7517_v8, %v7520_v57 }
 0x575   :  { %v7528_v18 = vand.u32 4294901760, %v1996_v1  ;;  %v7538_v1 = vand.u32 4294901760, %v2135_v27 }
 0x577   :  { %1998 = vmatpush.msra.mxu3 %v7528_v18  ;;  %v7546_v30 = vsub.f32 %v2135_v27, %v7538_v1 }
 0x5d0   :  { %v1658_v12 = vpop.f32.mrf.mxu0 }
 0x5d2   :  { %v1688_v15 = vpop.f32.mrf.mxu1 }
 0x5d8   :  { %v1663_v0 = vpop.f32.mrf.mxu0 }
 0x5da   :  { %v1694_v62 = vpop.f32.mrf.mxu1 }
 0x5db   :  { %v1628_v60 = vpop.f32.mrf.mxu3 }
 0x5dc   :  { %v1589_v54 = vpop.f32.mrf.mxu2 }
 0x5dd   :  { %v1629_v63 = vadd.f32 %v1628_v60, %v1589_v54 }
 0x5df   :  { %v1659_v10 = vadd.f32 %v1658_v12, %v1629_v63 }
 0x5e1   :  { %v1689_v60 = vadd.f32 %v1688_v15, %v1659_v10  ;;  %v7540_v15 = vand.u32 4294901760, %v1939_v25 }
 0x5e3   :  { %v1632_v7 = vpop.f32.mrf.mxu3 }
 0x5e4   :  { %v1597_v3 = vpop.f32.mrf.mxu2 }
 0x5e5   :  { %v1633_v52 = vadd.f32 %v1632_v7, %v1597_v3  ;;  %v2126_v7 = vpop.permute.xlu0 %2125 }
 0x5e6   :  { %v2133_v47 = vsel %vm897_vm11, %v2126_v7, 0  ;;  %v2188_v7 = vand.u32 4294901760, %v7546_v30 }
 0x5e7   :  { %v1664_v63 = vadd.f32 %v1663_v0, %v1633_v52  ;;  %v1323_v52 = vadd.f32 %v7470_v39, %v1296_v43 }
 0x5e9   :  { %v1695_v45 = vadd.f32 %v1694_v62, %v1664_v63  ;;  %v1942_v6 = vsel %vm897_vm11, %v1323_v52, 0 }
 0x5eb   :  { %v1748_v54 = vpop.f32.mrf.mxu3 }
 0x5ec   :  { %v1721_v22 = vpop.f32.mrf.mxu2 }
 0x5ed   :  { %v1722_v16 = vadd.f32 %v1721_v22, %v1689_v60  ;;  %v2153_v22 = vand.u32 4294901760, %v2133_v47 }
 0x5ef   :  { %v1749_v12 = vadd.f32 %v1748_v54, %v1722_v16  ;;  %v1962_v16 = vsub.f32 %v1939_v25, %v7540_v15  ;;  %v2193_v43 = vsub.f32 %v2133_v47, %v2153_v22 }
 0x5f1   :  { %v1756_v3 = vsel %vm897_vm11, %v1749_v12, 0  ;;  %v1963_v27 = vand.u32 4294901760, %v1962_v16 }
 0x5f2   :  { %v1778_v10 = vand.u32 4294901760, %v1756_v3 }
 0x5f3   :  { %v1752_v54 = vpop.f32.mrf.mxu3 }
 0x5f4   :  { %v1779_v5 = vsub.f32 %v1756_v3, %v1778_v10  ;;  %v1725_v4 = vpop.f32.mrf.mxu2  ;;  %1817 = vmatmul.f32.vlgmr.msrb.gmra.mxu1 %v1778_v10  ;;  %v1969_v3 = vand.u32 4294901760, %v1942_v6 }
 0x5f5   :  { %v1726_v60 = vadd.f32 %v1725_v4, %v1695_v45  ;;  %2053 = vmatpush.msrb.mxu1 %v7512_v44  ;;  %v2194_v45 = vand.u32 4294901760, %v2193_v43  ;;  %v1964_v4 = vsub.f32 %v1962_v16, %v1963_v27 }
 0x5f6   :  { %v1780_v49 = vand.u32 4294901760, %v1779_v5  ;;  %1845 = vmatmul.f32.vlgmr.msrb.gmra.mxu2 %v1779_v5  ;;  %v1970_v52 = vsub.f32 %v1942_v6, %v1969_v3 }
 0x5f7   :  { %v1753_v37 = vadd.f32 %v1752_v54, %v1726_v60  ;;  %2085 = vmatpush.msrb.mxu2 %v7520_v57  ;;  %v2195_v54 = vsub.f32 %v2193_v43, %v2194_v45 }
 0x5f8   :  { %v1781_v0 = vsub.f32 %v1779_v5, %v1780_v49  ;;  %1874 = vmatmul.f32.vlgmr.msrb.gmra.mxu3 %v1780_v49  ;;  %v2189_v5 = vsub.f32 %v7546_v30, %v2188_v7 }
 0x5f9   :  { %v1759_v39 = vsel %vm897_vm11, %v1753_v37, 0  ;;  %2111 = vmatpush.msrb.mxu3 %v7512_v44  ;;  %v1965_v37 = vand.u32 4294901760, %v1964_v4 }
 0x5fa   :  { %v1782_v63 = vand.u32 4294901760, %v1781_v0  ;;  %v1786_v12 = vand.u32 4294901760, %v1759_v39  ;;  %v2190_v47 = vand.u32 4294901760, %v2189_v5  ;;  %v1971_v0 = vand.u32 4294901760, %v1970_v52 }
 0x5fc   :  { %1783 = vmatmul.f32.vlgmr.msrb.gmra.mxu0 %v1782_v63  ;;  %1821 = vmatmul.f32.gmra.mxu1 %v1786_v12  ;;  %v1787_v62 = vsub.f32 %v1759_v39, %v1786_v12  ;;  %v2196_v39 = vand.u32 4294901760, %v2195_v54  ;;  %v1972_v63 = vsub.f32 %v1970_v52, %v1971_v0 }
 0x5fd   :  { %2025 = vmatpush.msrb.mxu0 %v7517_v8 }
 0x5fe   :  { %1850 = vmatmul.f32.gmra.mxu2 %v1787_v62  ;;  %v1788_v25 = vand.u32 4294901760, %v1787_v62  ;;  %v1973_v6 = vand.u32 4294901760, %v1972_v63 }
 0x600   :  { %1880 = vmatmul.f32.gmra.mxu3 %v1788_v25  ;;  %v1789_v60 = vsub.f32 %v1787_v62, %v1788_v25  ;;  %v2122_v62 = vpop.permute.xlu2 %2121 }
 0x602   :  { %v1790_v49 = vand.u32 4294901760, %v1789_v60 }
 0x604   :  { %1791 = vmatmul.f32.gmra.mxu0 %v1790_v49  ;;  %1930 = vmatmul.f32.vlgmr.msra.gmra.mxu1 %v1778_v10 }
 0x605   :  { %2191 = vmatpush.xpose.msra.mxu1 %v2190_v47 }
 0x606   :  { %1966 = vmatmul.f32.vlgmr.msra.gmra.mxu2 %v1965_v37 }
 0x607   :  { %2223 = vmatpush.xpose.msra.mxu2 %v7546_v30  ;;  %v2129_v30 = vsel %vm897_vm11, %v2122_v62, 0 }
 0x608   :  { %2000 = vmatmul.f32.vlgmr.msra.gmra.mxu3 %v7540_v15 }
 0x609   :  { %2197 = vmatpush.xpose.msra.mxu1 %v2196_v39  ;;  %2253 = vmatpush.xpose.msra.mxu3 %v7538_v1 }
 0x60b   :  { %2226 = vmatpush.xpose.msra.mxu2 %v2193_v43  ;;  %v2124_v43 = vpop.permute.xlu0 %2123 }
 0x60c   :  { %1904 = vmatmul.f32.vlgmr.msra.gmra.mxu0 %v1778_v10  ;;  %1934 = vmatmul.f32.gmra.mxu1 %v1786_v12  ;;  %v2155_v10 = vand.u32 4294901760, %v2129_v30  ;;  %v2131_v5 = vsel %vm897_vm11, %v2124_v43, 0 }
 0x60d   :  { %2152 = vmatpush.xpose.msra.mxu0 %v7538_v1  ;;  %2255 = vmatpush.xpose.msra.mxu3 %v2153_v22 }
 0x60e   :  { %1974 = vmatmul.f32.gmra.mxu2 %v1973_v6  ;;  %v2156_v25 = vsub.f32 %v2129_v30, %v2155_v10 }
 0x610   :  { %2004 = vmatmul.f32.gmra.mxu3 %v1969_v3 }
 0x611   :  { %2154 = vmatpush.xpose.msra.mxu0 %v2153_v22 }
 0x614   :  { %1908 = vmatmul.f32.gmra.mxu0 %v1786_v12  ;;  %2057 = vmatmul.f32.vlgmr.msrb.gmra.mxu1 %v1963_v27  ;;  %v2163_v12 = vand.u32 4294901760, %v2131_v5 }
 0x615   :  { %2315 = vmatpush.xpose.msrb.mxu1 %v7538_v1  ;;  %v2157_v1 = vand.u32 4294901760, %v2156_v25 }
 0x616   :  { %2087 = vmatmul.f32.vlgmr.msrb.gmra.mxu2 %v7540_v15  ;;  %v2164_v27 = vsub.f32 %v2131_v5, %v2163_v12 }
 0x617   :  { %v2158_v4 = vsub.f32 %v2156_v25, %v2157_v1 }
 0x618   :  { %2113 = vmatmul.f32.vlgmr.msrb.gmra.mxu3 %v7540_v15 }
 0x619   :  { %2317 = vmatpush.xpose.msrb.mxu1 %v2153_v22  ;;  %v2159_v15 = vand.u32 4294901760, %v2158_v4  ;;  %v2165_v22 = vand.u32 4294901760, %v2164_v27 }
 0x61c   :  { %2028 = vmatmul.f32.vlgmr.msrb.gmra.mxu0 %v1962_v16  ;;  %2063 = vmatmul.f32.gmra.mxu1 %v1971_v0  ;;  %v2166_v16 = vsub.f32 %v2164_v27, %v2165_v22 }
 0x61d   :  { %2286 = vmatpush.xpose.msrb.mxu0 %v2188_v7 }
 0x61e   :  { %2091 = vmatmul.f32.gmra.mxu2 %v1969_v3  ;;  %v2167_v7 = vand.u32 4294901760, %v2166_v16 }
 0x620   :  { %2117 = vmatmul.f32.gmra.mxu3 %v1969_v3 }
 0x621   :  { %2290 = vmatpush.xpose.msrb.mxu0 %v2194_v45 }
 0x624   :  { %2033 = vmatmul.f32.gmra.mxu0 %v1970_v52  ;;  %2199 = vmatmul.f32.vlgmr.msra.gmra.mxu1 %v2155_v10 }
 0x626   :  { %2229 = vmatmul.f32.vlgmr.msra.gmra.mxu2 %v2156_v25 }
 0x628   :  { %2259 = vmatmul.f32.vlgmr.msra.gmra.mxu3 %v2157_v1 }
 0x62c   :  { %2160 = vmatmul.f32.vlgmr.msra.gmra.mxu0 %v2159_v15  ;;  %2203 = vmatmul.f32.gmra.mxu1 %v2163_v12 }
 0x62e   :  { %2234 = vmatmul.f32.gmra.mxu2 %v2164_v27 }
 0x630   :  { %2265 = vmatmul.f32.gmra.mxu3 %v2165_v22 }
 0x634   :  { %2168 = vmatmul.f32.gmra.mxu0 %v2167_v7  ;;  %2319 = vmatmul.f32.vlgmr.msrb.gmra.mxu1 %v2155_v10 }
 0x63c   :  { %2292 = vmatmul.f32.vlgmr.msrb.gmra.mxu0 %v2155_v10  ;;  %2323 = vmatmul.f32.gmra.mxu1 %v2163_v12 }
 0x644   :  { %2296 = vmatmul.f32.gmra.mxu0 %v2163_v12 }
 0x671   :  { %v7565_v3 = vpop.f32.mrf.mxu1 }
 0x672   :  { %8503 = vst [vmem:[#allocation20_spill] sm:$0xff] %v7565_v3 }
 0x679   :  { %v7567_v45 = vpop.f32.mrf.mxu0  ;;  %v7569_v52 = vpop.f32.mrf.mxu1 }
 0x67a   :  { %8504 = vst [vmem:[#allocation21_spill] sm:$0xff] %v7567_v45  ;;  %v7571_v60 = vpop.f32.mrf.mxu2 }
 0x67b   :  { %8505 = vst [vmem:[#allocation22_spill] sm:$0xff] %v7569_v52  ;;  %v7573_v49 = vpop.f32.mrf.mxu3 }
 0x67c   :  { %8506 = vst [vmem:[#allocation23_spill] sm:$0xff] %v7571_v60 }
 0x67d   :  { %8507 = vst [vmem:[#allocation24_spill] sm:$0xff] %v7573_v49 }
 0x681   :  { %v7575_v47 = vpop.f32.mrf.mxu0  ;;  %v7577_v54 = vpop.f32.mrf.mxu1 }
 0x682   :  { %8508 = vst [vmem:[#allocation25_spill] sm:$0xff] %v7575_v47  ;;  %v7579_v37 = vpop.f32.mrf.mxu2 }
 0x683   :  { %8509 = vst [vmem:[#allocation26_spill] sm:$0xff] %v7577_v54  ;;  %v7581_v0 = vpop.f32.mrf.mxu3 }
 0x684   :  { %8510 = vst [vmem:[#allocation27_spill] sm:$0xff] %v7579_v37 }
 0x685   :  { %8511 = vst [vmem:[#allocation28_spill] sm:$0xff] %v7581_v0 }
 0x689   :  { %v7583_v39 = vpop.f32.mrf.mxu0  ;;  %v7585_v63 = vpop.f32.mrf.mxu1 }
 0x68a   :  { %8512 = vst [vmem:[#allocation29_spill] sm:$0xff] %v7583_v39  ;;  %v7587_v6 = vpop.f32.mrf.mxu2 }
 0x68b   :  { %8513 = vst [vmem:[#allocation30_spill] sm:$0xff] %v7585_v63  ;;  %v7589_v62 = vpop.f32.mrf.mxu3 }
 0x68c   :  { %8514 = vst [vmem:[#allocation31_spill] sm:$0xff] %v7587_v6 }
 0x68d   :  { %8515 = vst [vmem:[#allocation32_spill] sm:$0xff] %v7589_v62 }
 0x691   :  { %v7591_v30 = vpop.f32.mrf.mxu0  ;;  %v7593_v10 = vpop.f32.mrf.mxu1 }
 0x692   :  { %8516 = vst [vmem:[#allocation33_spill] sm:$0xff] %v7591_v30  ;;  %v7595_v43 = vpop.f32.mrf.mxu2 }
 0x693   :  { %8517 = vst [vmem:[#allocation34_spill] sm:$0xff] %v7593_v10  ;;  %v7597_v25 = vpop.f32.mrf.mxu3 }
 0x694   :  { %8518 = vst [vmem:[#allocation35_spill] sm:$0xff] %v7595_v43 }
 0x695   :  { %8519 = vst [vmem:[#allocation36_spill] sm:$0xff] %v7597_v25 }
 0x699   :  { %v7599_v5 = vpop.f32.mrf.mxu0  ;;  %v7601_v12 = vpop.f32.mrf.mxu1 }
 0x69a   :  { %8520 = vst [vmem:[#allocation37_spill] sm:$0xff] %v7599_v5  ;;  %v7603_v1 = vpop.f32.mrf.mxu2 }
 0x69b   :  { %8521 = vst [vmem:[#allocation38_spill] sm:$0xff] %v7601_v12  ;;  %v7605_v27 = vpop.f32.mrf.mxu3 }
 0x69c   :  { %8522 = vst [vmem:[#allocation39_spill] sm:$0xff] %v7603_v1 }
 0x69d   :  { %8523 = vst [vmem:[#allocation40_spill] sm:$0xff] %v7605_v27 }
 0x6a1   :  { %v7607_v4 = vpop.f32.mrf.mxu0  ;;  %v2200_v15 = vpop.f32.mrf.mxu1 }
 0x6a2   :  { %8524 = vst [vmem:[#allocation41_spill] sm:$0xff] %v7607_v4  ;;  %v7609_v22 = vpop.f32.mrf.mxu2 }
 0x6a3   :  { %8525 = vst [vmem:[#allocation42_spill] sm:$0xff] %v7609_v22  ;;  %v7611_v7 = vpop.f32.mrf.mxu3 }
 0x6a4   :  { %8526 = vst [vmem:[#allocation43_spill] sm:$0xff] %v7611_v7 }
 0x6a9   :  { %v2161_v16 = vpop.f32.mrf.mxu0  ;;  %v2204_v11 = vpop.f32.mrf.mxu1 }
 0x6aa   :  { %v2201_v10 = vadd.f32 %v2200_v15, %v2161_v16  ;;  %v2230_v43 = vpop.f32.mrf.mxu2 }
 0x6ab   :  { %v2260_v5 = vpop.f32.mrf.mxu3 }
 0x6ac   :  { %v2231_v63 = vadd.f32 %v2230_v43, %v2201_v10 }
 0x6ae   :  { %v2261_v62 = vadd.f32 %v2260_v5, %v2231_v63 }
 0x6b1   :  { %v2169_v25 = vpop.f32.mrf.mxu0  ;;  %v2320_v30 = vpop.f32.mrf.mxu1 }
 0x6b2   :  { %v2205_v12 = vadd.f32 %v2204_v11, %v2169_v25  ;;  %v2235_v27 = vpop.f32.mrf.mxu2 }
 0x6b3   :  { %v2266_v22 = vpop.f32.mrf.mxu3 }
 0x6b4   :  { %v2236_v0 = vadd.f32 %v2235_v27, %v2205_v12 }
 0x6b6   :  { %v2267_v37 = vadd.f32 %v2266_v22, %v2236_v0 }
 0x6b9   :  { %v2293_v1 = vpop.f32.mrf.mxu0  ;;  %v2324_v15 = vpop.f32.mrf.mxu1 }
 0x6ba   :  { %v2294_v6 = vadd.f32 %v2293_v1, %v2261_v62 }
 0x6bc   :  { %v2321_v4 = vadd.f32 %v2320_v30, %v2294_v6 }
 0x6be   :  { %v2327_v54 = vsel %vm1100_vm12, %v2321_v4, -inf }
 0x6bf   :  { %2328 = vmax.xlane.f32.xlu1 %v2327_v54 }
 0x6c1   :  { %v2297_v7 = vpop.f32.mrf.mxu0 }
 0x6c2   :  { %v2298_v39 = vadd.f32 %v2297_v7, %v2267_v37 }
 0x6c4   :  { %v2325_v16 = vadd.f32 %v2324_v15, %v2298_v39 }
 0x6c6   :  { %v2330_v10 = vsel %vm1100_vm12, %v2325_v16, -inf }
 0x6c7   :  { %2331 = vmax.xlane.f32.xlu2 %v2330_v10 }
 0x6df   :  { %2351 = vrot.lane.b32.xlu2 %v7410_v48, %s6944_s16 }
 0x6e7   :  { %2736 = vrot.lane.b32.xlu2 %v7396_v20, %s6945_s17 }
 0x732   :  { %v2329_v11 = vpop.xlane.xlu1 %2328 }
 0x733   :  { %v2333_v63 = vsub.f32 %v2321_v4, %v2329_v11 }
 0x735   :  { %v2335_v6 = vmul.f32 1.442695, %v2333_v63 }
 0x737   :  { %6738 = vpow2.f32 %v2335_v6 }
 0x73a   :  { %v2332_v54 = vpop.xlane.xlu2 %2331 }
 0x73b   :  { %v2334_v0 = vsub.f32 %v2325_v16, %v2332_v54 }
 0x73d   :  { %v6739_v37 = vpop.eup %6738  ;;  %v2337_v62 = vmul.f32 1.442695, %v2334_v0  ;;  %v895_v0 = vld [vmem:[#allocation5 + $0x10] sm:$0xff] }
 0x73e   :  { %v2339_v39 = vsel %vm1100_vm12, %v6739_v37, 0.0 }
 0x73f   :  { %6740 = vpow2.f32 %v2337_v62  ;;  %2340 = vadd.xlane.f32.xlu0 %v2339_v39 }
 0x742   :  { %v2352_v30 = vpop.permute.xlu2 %2351 }
 0x743   :  { %v2375_v43 = vand.u32 4294901760, %v2352_v30 }
 0x745   :  { %v6741_v25 = vpop.eup %6740  ;;  %v2411_v5 = vsub.f32 %v2352_v30, %v2375_v43  ;;  %2376 = vmatpush.msrb.mxu2 %v2375_v43  ;;  %2477 = vmatpush.msra.mxu1 %v2375_v43 }
 0x746   :  { %v2342_v20 = vsel %vm1100_vm12, %v6741_v25, 0.0 }
 0x747   :  { %v2412_v12 = vand.u32 4294901760, %v2411_v5  ;;  %2343 = vadd.xlane.f32.xlu1 %v2342_v20  ;;  %2447 = vmatpush.msra.mxu0 %v2411_v5 }
 0x749   :  { %v2413_v1 = vsub.f32 %v2411_v5, %v2412_v12 }
 0x74b   :  { %v2414_v27 = vand.u32 4294901760, %v2413_v1 }
 0x74d   :  { %2415 = vmatpush.msrb.mxu3 %v2414_v27 }
 0x753   :  { %2349 = vrot.lane.b32.xlu0 %v7400_v21, %s6944_s16 }
 0x75b   :  { %2740 = vrot.lane.b32.xlu0 %v7400_v21, %s6945_s17 }
 0x760   :  { %2742 = vrot.lane.b32.xlu1 %v7410_v48, %s6945_s17 }
 0x768   :  { %2738 = vrot.lane.b32.xlu1 %v7404_v56, %s6945_s17  ;;  %v7631_v56 = vand.u32 4294901760, %v895_v0 }
 0x76a   :  { %8527 = vst [vmem:[#allocation44_spill] sm:$0xff] %v7631_v56 }
 0x7b2   :  { %v2341_v4 = vpop.xlane.xlu0 %2340 }
 0x7b3   :  { %6742 = vrcp.f32 %v2341_v4 }
 0x7b9   :  { %v6743_v22 = vpop.eup %6742 }
 0x7ba   :  { %v2347_v7 = vmul.f32 %v6743_v22, %v6739_v37  ;;  %v2344_v15 = vpop.xlane.xlu1 %2343  ;;  %v7634_v22 = vsub.f32 %v895_v0, %v7631_v56 }
 0x7bb   :  { %6744 = vrcp.f32 %v2344_v15 }
 0x7bc   :  { %v2356_v16 = vsel %vm1100_vm12, %v2347_v7, 0  ;;  %8528 = vst [vmem:[#allocation45_spill] sm:$0xff] %v7634_v22 }
 0x7bd   :  { %v2379_v10 = vand.u32 4294901760, %v2356_v16 }
 0x7bf   :  { %v2380_v11 = vsub.f32 %v2356_v16, %v2379_v10 }
 0x7c1   :  { %v6745_v63 = vpop.eup %6744  ;;  %v2381_v6 = vand.u32 4294901760, %v2380_v11 }
 0x7c2   :  { %v2348_v54 = vmul.f32 %v6745_v63, %v6741_v25 }
 0x7c3   :  { %v2382_v62 = vsub.f32 %v2380_v11, %v2381_v6 }
 0x7c4   :  { %v2359_v39 = vsel %vm1100_vm12, %v2348_v54, 0 }
 0x7c5   :  { %v2387_v30 = vand.u32 4294901760, %v2359_v39  ;;  %v2350_v5 = vpop.permute.xlu0 %2349  ;;  %v2383_v1 = vand.u32 4294901760, %v2382_v62 }
 0x7c6   :  { %v2377_v20 = vand.u32 4294901760, %v2350_v5 }
 0x7c7   :  { %v2388_v37 = vsub.f32 %v2359_v39, %v2387_v30 }
 0x7c8   :  { %v2417_v27 = vsub.f32 %v2350_v5, %v2377_v20  ;;  %2378 = vmatpush.msrb.mxu2 %v2377_v20  ;;  %2479 = vmatpush.msra.mxu1 %v2377_v20 }
 0x7c9   :  { %2384 = vmatmul.f32.vlgmr.msrb.gmra.mxu2 %v2383_v1  ;;  %2483 = vmatmul.f32.vlgmr.msra.gmra.mxu1 %v2381_v6  ;;  %v2389_v4 = vand.u32 4294901760, %v2388_v37 }
 0x7ca   :  { %2510 = vmatpush.msra.mxu2 %v2412_v12  ;;  %2450 = vmatpush.msra.mxu0 %v2417_v27  ;;  %v2418_v25 = vand.u32 4294901760, %v2417_v27 }
 0x7cb   :  { %2453 = vmatmul.f32.vlgmr.msra.gmra.mxu0 %v2380_v11  ;;  %v2390_v7 = vsub.f32 %v2388_v37, %v2389_v4 }
 0x7cc   :  { %2514 = vmatpush.msra.mxu2 %v2418_v25  ;;  %v2419_v15 = vsub.f32 %v2417_v27, %v2418_v25  ;;  %2573 = vmatpush.msrb.mxu0 %v7631_v56  ;;  %v7658_v25 = vand.u32 4294901760, %v7634_v22 }
 0x7cd   :  { %v2741_v16 = vpop.permute.xlu0 %2740  ;;  %v2391_v54 = vand.u32 4294901760, %v2390_v7 }
 0x7ce   :  { %2638 = vmatpush.msrb.mxu2 %v7634_v22  ;;  %v2420_v63 = vand.u32 4294901760, %v2419_v15  ;;  %v2748_v6 = vsel %vm897_vm11, %v2741_v16, 0  ;;  %8529 = vst [vmem:[#allocation46_spill] sm:$0xff] %v7658_v25  ;;  %v2609_v7 = vsub.f32 %v7634_v22, %v7658_v25  ;;  %2698 = vmatpush.msra.mxu0 %v7658_v25 }
 0x7cf   :  { %v7640_v0 = vand.u32 4294901760, %v2748_v6 }
 0x7d0   :  { %2421 = vmatpush.msrb.mxu3 %v2420_v63  ;;  %v7663_v15 = vand.u32 4294901760, %v2609_v7 }
 0x7d1   :  { %2392 = vmatmul.f32.gmra.mxu2 %v2391_v54  ;;  %2423 = vmatmul.f32.vlgmr.msrb.gmra.mxu3 %v2379_v10  ;;  %v7649_v5 = vsub.f32 %v2748_v6, %v7640_v0 }
 0x7d2   :  { %2489 = vmatmul.f32.gmra.mxu1 %v2389_v4  ;;  %2539 = vmatpush.msra.mxu3 %v2375_v43  ;;  %v2743_v12 = vpop.permute.xlu1 %2742 }
 0x7d3   :  { %v2750_v11 = vsel %vm897_vm11, %v2743_v12, 0  ;;  %2458 = vmatmul.f32.gmra.mxu0 %v2388_v37  ;;  %v2809_v43 = vand.u32 4294901760, %v7649_v5  ;;  %2611 = vmatpush.msrb.mxu1 %v7663_v15 }
 0x7d4   :  { %v7642_v62 = vand.u32 4294901760, %v2750_v11  ;;  %2541 = vmatpush.msra.mxu3 %v2377_v20 }
 0x7d5   :  { %v2810_v27 = vsub.f32 %v7649_v5, %v2809_v43  ;;  %2724 = vmatpush.msra.mxu1 %v7631_v56 }
 0x7d6   :  { %2666 = vmatpush.msrb.mxu3 %v7631_v56  ;;  %v7646_v39 = vsub.f32 %v2750_v11, %v7642_v62 }
 0x7d7   :  { %v2811_v4 = vand.u32 4294901760, %v2810_v27 }
 0x7d8   :  { %v2803_v1 = vand.u32 4294901760, %v7646_v39 }
 0x7d9   :  { %2427 = vmatmul.f32.gmra.mxu3 %v2387_v30  ;;  %2516 = vmatmul.f32.vlgmr.msra.gmra.mxu2 %v2379_v10 }
 0x7da   :  { %2767 = vmatpush.xpose.msra.mxu2 %v7642_v62  ;;  %v2804_v37 = vsub.f32 %v7646_v39, %v2803_v1 }
 0x7dc   :  { %v2805_v20 = vand.u32 4294901760, %v2804_v37 }
 0x7de   :  { %2769 = vmatpush.xpose.msra.mxu2 %v7640_v0 }
 0x7e1   :  { %2520 = vmatmul.f32.gmra.mxu2 %v2387_v30  ;;  %2543 = vmatmul.f32.vlgmr.msra.gmra.mxu3 %v2379_v10 }
 0x7e2   :  { %2806 = vmatpush.xpose.msra.mxu3 %v2805_v20 }
 0x7e6   :  { %2812 = vmatpush.xpose.msra.mxu3 %v2811_v4  ;;  %v2737_v4 = vpop.permute.xlu2 %2736 }
 0x7e7   :  { %v2744_v3 = vsel %vm897_vm11, %v2737_v4, 0 }
 0x7e8   :  { %v2770_v56 = vand.u32 4294901760, %v2744_v3 }
 0x7e9   :  { %2547 = vmatmul.f32.gmra.mxu3 %v2387_v30 }
 0x846   :  { %v2484_v11 = vpop.f32.mrf.mxu1 }
 0x848   :  { %v2454_v6 = vpop.f32.mrf.mxu0 }
 0x84c   :  { %v2385_v16 = vpop.f32.mrf.mxu2 }
 0x84f   :  { %v2490_v25 = vpop.f32.mrf.mxu1 }
 0x850   :  { %v2459_v47 = vpop.f32.mrf.mxu0 }
 0x854   :  { %v2393_v10 = vpop.f32.mrf.mxu2  ;;  %v2424_v63 = vpop.f32.mrf.mxu3 }
 0x855   :  { %v2425_v54 = vadd.f32 %v2424_v63, %v2385_v16 }
 0x857   :  { %v2455_v12 = vadd.f32 %v2454_v6, %v2425_v54 }
 0x859   :  { %v2485_v27 = vadd.f32 %v2484_v11, %v2455_v12 }
 0x85c   :  { %v2428_v30 = vpop.f32.mrf.mxu3  ;;  %v2517_v37 = vpop.f32.mrf.mxu2 }
 0x85d   :  { %v2429_v20 = vadd.f32 %v2428_v30, %v2393_v10  ;;  %v2518_v52 = vadd.f32 %v2517_v37, %v2485_v27  ;;  %v2739_v10 = vpop.permute.xlu1 %2738 }
 0x85f   :  { %v2460_v49 = vadd.f32 %v2459_v47, %v2429_v20 }
 0x861   :  { %v2491_v63 = vadd.f32 %v2490_v25, %v2460_v49 }
 0x864   :  { %v2544_v7 = vpop.f32.mrf.mxu3  ;;  %v2521_v22 = vpop.f32.mrf.mxu2 }
 0x865   :  { %v2545_v60 = vadd.f32 %v2544_v7, %v2518_v52  ;;  %v2522_v6 = vadd.f32 %v2521_v22, %v2491_v63  ;;  %v2771_v52 = vsub.f32 %v2744_v3, %v2770_v56 }
 0x867   :  { %v2552_v45 = vsel %vm897_vm11, %v2545_v60, 0  ;;  %v2746_v60 = vsel %vm897_vm11, %v2739_v10, 0  ;;  %v2772_v22 = vand.u32 4294901760, %v2771_v52 }
 0x868   :  { %v2574_v16 = vand.u32 4294901760, %v2552_v45  ;;  %v2778_v25 = vand.u32 4294901760, %v2746_v60 }
 0x86a   :  { %v2575_v54 = vsub.f32 %v2552_v45, %v2574_v16  ;;  %2613 = vmatmul.f32.vlgmr.msrb.gmra.mxu1 %v2574_v16  ;;  %v2779_v27 = vsub.f32 %v2746_v60, %v2778_v25 }
 0x86b   :  { %2868 = vmatpush.xpose.msrb.mxu1 %v7642_v62 }
 0x86c   :  { %v2576_v30 = vand.u32 4294901760, %v2575_v54  ;;  %v2548_v12 = vpop.f32.mrf.mxu3  ;;  %2641 = vmatmul.f32.vlgmr.msrb.gmra.mxu2 %v2575_v54 }
 0x86d   :  { %v2549_v47 = vadd.f32 %v2548_v12, %v2522_v6  ;;  %2901 = vmatpush.xpose.msrb.mxu2 %v2803_v1  ;;  %v2773_v1 = vsub.f32 %v2771_v52, %v2772_v22 }
 0x86e   :  { %v2577_v11 = vsub.f32 %v2575_v54, %v2576_v30  ;;  %2670 = vmatmul.f32.vlgmr.msrb.gmra.mxu3 %v2576_v30 }
 0x86f   :  { %v2555_v37 = vsel %vm897_vm11, %v2549_v47, 0  ;;  %2870 = vmatpush.xpose.msrb.mxu1 %v7640_v0  ;;  %2930 = vmatpush.xpose.msrb.mxu3 %v7642_v62  ;;  %v2774_v7 = vand.u32 4294901760, %v2773_v1 }
 0x870   :  { %v2578_v45 = vand.u32 4294901760, %v2577_v11  ;;  %v2582_v49 = vand.u32 4294901760, %v2555_v37 }
 0x871   :  { %2905 = vmatpush.xpose.msrb.mxu2 %v2809_v43  ;;  %v2780_v43 = vand.u32 4294901760, %v2779_v27 }
 0x872   :  { %2579 = vmatmul.f32.vlgmr.msrb.gmra.mxu0 %v2578_v45  ;;  %2617 = vmatmul.f32.gmra.mxu1 %v2582_v49  ;;  %v2583_v20 = vsub.f32 %v2555_v37, %v2582_v49 }
 0x873   :  { %2838 = vmatpush.xpose.msrb.mxu0 %v7646_v39  ;;  %2932 = vmatpush.xpose.msrb.mxu3 %v7640_v0  ;;  %v2781_v63 = vsub.f32 %v2779_v27, %v2780_v43 }
 0x874   :  { %2646 = vmatmul.f32.gmra.mxu2 %v2583_v20  ;;  %v2584_v3 = vand.u32 4294901760, %v2583_v20 }
 0x875   :  { %v2782_v39 = vand.u32 4294901760, %v2781_v63 }
 0x876   :  { %2676 = vmatmul.f32.gmra.mxu3 %v2584_v3  ;;  %v2585_v4 = vsub.f32 %v2583_v20, %v2584_v3 }
 0x877   :  { %2841 = vmatpush.xpose.msrb.mxu0 %v7649_v5 }
 0x878   :  { %v2586_v62 = vand.u32 4294901760, %v2585_v4 }
 0x87a   :  { %2587 = vmatmul.f32.gmra.mxu0 %v2586_v62  ;;  %2726 = vmatmul.f32.vlgmr.msra.gmra.mxu1 %v2574_v16 }
 0x87c   :  { %2775 = vmatmul.f32.vlgmr.msra.gmra.mxu2 %v2774_v7 }
 0x87e   :  { %2814 = vmatmul.f32.vlgmr.msra.gmra.mxu3 %v2770_v56 }
 0x882   :  { %2700 = vmatmul.f32.vlgmr.msra.gmra.mxu0 %v2574_v16  ;;  %2730 = vmatmul.f32.gmra.mxu1 %v2582_v49 }
 0x884   :  { %2783 = vmatmul.f32.gmra.mxu2 %v2782_v39 }
 0x886   :  { %2818 = vmatmul.f32.gmra.mxu3 %v2778_v25 }
 0x88a   :  { %2704 = vmatmul.f32.gmra.mxu0 %v2582_v49  ;;  %2874 = vmatmul.f32.vlgmr.msrb.gmra.mxu1 %v2772_v22 }
 0x88c   :  { %2907 = vmatmul.f32.vlgmr.msrb.gmra.mxu2 %v2770_v56 }
 0x88e   :  { %2934 = vmatmul.f32.vlgmr.msrb.gmra.mxu3 %v2770_v56 }
 0x892   :  { %2844 = vmatmul.f32.vlgmr.msrb.gmra.mxu0 %v2771_v52  ;;  %2880 = vmatmul.f32.gmra.mxu1 %v2780_v43 }
 0x894   :  { %2911 = vmatmul.f32.gmra.mxu2 %v2778_v25 }
 0x896   :  { %2938 = vmatmul.f32.gmra.mxu3 %v2778_v25 }
 0x89a   :  { %2849 = vmatmul.f32.gmra.mxu0 %v2779_v27 }
 0x8e7   :  { %v7677_v0 = vpop.f32.mrf.mxu1 }
 0x8ef   :  { %v7679_v5 = vpop.f32.mrf.mxu0  ;;  %v7681_v54 = vpop.f32.mrf.mxu2 }
 0x8f0   :  { %v7683_v16 = vpop.f32.mrf.mxu1 }
 0x8f1   :  { %v7685_v6 = vpop.f32.mrf.mxu3 }
 0x8f7   :  { %v7687_v10 = vpop.f32.mrf.mxu0  ;;  %v7689_v30 = vpop.f32.mrf.mxu2 }
 0x8f8   :  { %8530 = vst [vmem:[#allocation47_spill] sm:$0xff] %v7689_v30  ;;  %v7693_v12 = vpop.f32.mrf.mxu1 }
 0x8f9   :  { %v7691_v56 = vpop.f32.mrf.mxu3  ;;  %8532 = vst [vmem:[#allocation49_spill] sm:$0xff] %v7693_v12 }
 0x8fa   :  { %8531 = vst [vmem:[#allocation48_spill] sm:$0xff] %v7691_v56 }
 0x8ff   :  { %v7695_v47 = vpop.f32.mrf.mxu0  ;;  %v2776_v52 = vpop.f32.mrf.mxu2 }
 0x900   :  { %8533 = vst [vmem:[#allocation50_spill] sm:$0xff] %v7695_v47  ;;  %v7697_v60 = vpop.f32.mrf.mxu1 }
 0x901   :  { %v2815_v11 = vpop.f32.mrf.mxu3  ;;  %8534 = vst [vmem:[#allocation51_spill] sm:$0xff] %v7697_v60 }
 0x902   :  { %v2816_v22 = vadd.f32 %v2815_v11, %v2776_v52 }
 0x907   :  { %v7699_v37 = vpop.f32.mrf.mxu0  ;;  %v2784_v45 = vpop.f32.mrf.mxu2 }
 0x908   :  { %8535 = vst [vmem:[#allocation52_spill] sm:$0xff] %v7699_v37  ;;  %v2875_v25 = vpop.f32.mrf.mxu1 }
 0x909   :  { %v2819_v49 = vpop.f32.mrf.mxu3 }
 0x90a   :  { %v2820_v7 = vadd.f32 %v2819_v49, %v2784_v45 }
 0x90f   :  { %v2845_v20 = vpop.f32.mrf.mxu0  ;;  %v2908_v1 = vpop.f32.mrf.mxu2 }
 0x910   :  { %v2846_v3 = vadd.f32 %v2845_v20, %v2816_v22  ;;  %v2881_v12 = vpop.f32.mrf.mxu1 }
 0x911   :  { %v2935_v4 = vpop.f32.mrf.mxu3 }
 0x912   :  { %v2876_v27 = vadd.f32 %v2875_v25, %v2846_v3 }
 0x914   :  { %v2909_v62 = vadd.f32 %v2908_v1, %v2876_v27 }
 0x916   :  { %v2936_v43 = vadd.f32 %v2935_v4, %v2909_v62  ;;  %v6802_v62 = vld [vmem:[%s8467_s7] ss:$0 sm:$0xff] }
 0x917   :  { %v2850_v63 = vpop.f32.mrf.mxu0  ;;  %v2912_v37 = vpop.f32.mrf.mxu2 }
 0x918   :  { %v2851_v39 = vadd.f32 %v2850_v63, %v2820_v7  ;;  %v2942_v56 = vsel %vm1100_vm12, %v2936_v43, -inf  ;;  %v658_v7 = vadd.f32 %v6802_v62, %v7377_v51 }
 0x919   :  { %2943 = vmax.xlane.f32.xlu0 %v2942_v56  ;;  %v2939_v47 = vpop.f32.mrf.mxu3 }
 0x91a   :  { %v2882_v60 = vadd.f32 %v2881_v12, %v2851_v39  ;;  %v666_v39 = vadd.f32 %v6802_v62, %v7392_v33 }
 0x91c   :  { %v2913_v30 = vadd.f32 %v2912_v37, %v2882_v60 }
 0x91e   :  { %v2940_v52 = vadd.f32 %v2939_v47, %v2913_v30 }
 0x920   :  { %v2945_v11 = vsel %vm1100_vm12, %v2940_v52, -inf }
 0x921   :  { %2946 = vmax.xlane.f32.xlu2 %v2945_v11  ;;  %v719_v11 = vadd.f32 %v7394_v19, %v666_v39  ;;  %v368_v19 = vadd.f32 %v7369_v26, %v7373_v46 }
 0x939   :  { %2966 = vrot.lane.b32.xlu2 %v7410_v48, %s6946_s18 }
 0x98c   :  { %v2944_v45 = vpop.xlane.xlu0 %2943 }
 0x98d   :  { %v2948_v49 = vsub.f32 %v2936_v43, %v2944_v45  ;;  %v715_v43 = vadd.f32 %v7382_v61, %v658_v7 }
 0x98f   :  { %v2950_v22 = vmul.f32 1.442695, %v2948_v49  ;;  %v759_v63 = vadd.f32 %v7414_v32, %v715_v43  ;;  %v764_v49 = vadd.f32 %v7418_v13, %v719_v11 }
 0x991   :  { %6746 = vpow2.f32 %v2950_v22  ;;  %v809_v61 = vadd.f32 %v7422_v14, %v764_v49 }
 0x993   :  { %v854_v33 = vadd.f32 %v7426_v42, %v809_v61 }
 0x994   :  { %v2947_v25 = vpop.xlane.xlu2 %2946 }
 0x995   :  { %v2949_v20 = vsub.f32 %v2940_v52, %v2947_v25  ;;  %v803_v52 = vadd.f32 %v7416_v28, %v759_v63  ;;  %v7735_v32 = vadd.f32 %v7428_v23, %v854_v33 }
 0x997   :  { %v6747_v3 = vpop.eup %6746  ;;  %v2952_v56 = vmul.f32 1.442695, %v2949_v20  ;;  %v850_v45 = vadd.f32 %v7420_v59, %v803_v52  ;;  %v3364_v39 = vsel %vm897_vm11, %v7735_v32, 0 }
 0x998   :  { %v2954_v12 = vsel %vm1100_vm12, %v6747_v3, 0.0 }
 0x999   :  { %6748 = vpow2.f32 %v2952_v56  ;;  %2955 = vadd.xlane.f32.xlu1 %v2954_v12  ;;  %v7726_v51 = vadd.f32 %v7424_v17, %v850_v45  ;;  %v896_v56 = vld [vmem:[#allocation5 + $0x18] sm:$0xff]  ;;  %v7761_v45 = vand.u32 4294901760, %v3364_v39 }
 0x99b   :  { %v7767_v49 = vsub.f32 %v3364_v39, %v7761_v45 }
 0x99c   :  { %v2967_v30 = vpop.permute.xlu2 %2966 }
 0x99d   :  { %v7706_v47 = vand.u32 4294901760, %v2967_v30  ;;  %v3417_v33 = vand.u32 4294901760, %v7767_v49 }
 0x99f   :  { %v6749_v60 = vpop.eup %6748  ;;  %v3026_v37 = vsub.f32 %v2967_v30, %v7706_v47  ;;  %2991 = vmatpush.msra.mxu0 %v7706_v47  ;;  %3092 = vmatpush.msra.mxu3 %v7706_v47 }
 0x9a0   :  { %v2957_v48 = vsel %vm1100_vm12, %v6749_v60, 0.0 }
 0x9a1   :  { %v3027_v1 = vand.u32 4294901760, %v3026_v37  ;;  %2958 = vadd.xlane.f32.xlu0 %v2957_v48  ;;  %3062 = vmatpush.msra.mxu2 %v3026_v37  ;;  %v7752_v48 = vand.u32 4294901760, %v896_v56 }
 0x9a3   :  { %v3028_v27 = vsub.f32 %v3026_v37, %v3027_v1  ;;  %8536 = vst [vmem:[#allocation53_spill] sm:$0xff] %v7752_v48 }
 0x9a5   :  { %v3029_v4 = vand.u32 4294901760, %v3028_v27 }
 0x9a7   :  { %3030 = vmatpush.msra.mxu1 %v3029_v4 }
 0x9b2   :  { %2964 = vrot.lane.b32.xlu1 %v7400_v21, %s6946_s18  ;;  %v421_v21 = vadd.f32 %v7359_v31, %v368_v19 }
 0x9b4   :  { %v466_v28 = vadd.f32 %v7367_v36, %v421_v21 }
 0x9b6   :  { %v511_v13 = vadd.f32 %v7371_v38, %v466_v28 }
 0x9b8   :  { %v556_v59 = vadd.f32 %v7390_v2, %v511_v13 }
 0x9ba   :  { %3578 = vrot.lane.b32.xlu1 %v7726_v51, %s6940_s12  ;;  %v7746_v14 = vadd.f32 %v7384_v58, %v556_v59 }
 0x9c2   :  { %3786 = vrot.lane.b32.xlu1 %v7735_v32, %s6941_s13 }
 0x9ca   :  { %3784 = vrot.lane.b32.xlu1 %v7726_v51, %s6941_s13 }
 0x9d2   :  { %3782 = vrot.lane.b32.xlu1 %v7746_v14, %s6941_s13 }
 0xa0c   :  { %v2956_v26 = vpop.xlane.xlu1 %2955 }
 0xa0d   :  { %6750 = vrcp.f32 %v2956_v26 }
 0xa13   :  { %v6751_v31 = vpop.eup %6750 }
 0xa14   :  { %v2962_v17 = vmul.f32 %v6751_v31, %v6747_v3  ;;  %v2959_v42 = vpop.xlane.xlu0 %2958 }
 0xa15   :  { %6752 = vrcp.f32 %v2959_v42 }
 0xa16   :  { %v2971_v36 = vsel %vm1100_vm12, %v2962_v17, 0 }
 0xa17   :  { %v2994_v38 = vand.u32 4294901760, %v2971_v36 }
 0xa19   :  { %v2995_v23 = vsub.f32 %v2971_v36, %v2994_v38  ;;  %v360_v36 = vadd.f32 %v7363_v35, %v7373_v46 }
 0xa1b   :  { %v6753_v22 = vpop.eup %6752  ;;  %v2996_v20 = vand.u32 4294901760, %v2995_v23 }
 0xa1c   :  { %v2963_v25 = vmul.f32 %v6753_v22, %v6749_v60  ;;  %v7755_v60 = vsub.f32 %v896_v56, %v7752_v48  ;;  %v417_v22 = vadd.f32 %v7357_v24, %v360_v36  ;;  %v3358_v36 = vsel %vm897_vm11, %v7746_v14, 0 }
 0xa1d   :  { %v2997_v12 = vsub.f32 %v2995_v23, %v2996_v20 }
 0xa1e   :  { %v2974_v2 = vsel %vm1100_vm12, %v2963_v25, 0  ;;  %8537 = vst [vmem:[#allocation54_spill] sm:$0xff] %v7755_v60  ;;  %v7782_v26 = vand.u32 4294901760, %v7755_v60  ;;  %v461_v25 = vadd.f32 %v7361_v34, %v417_v22 }
 0xa1f   :  { %v3002_v58 = vand.u32 4294901760, %v2974_v2  ;;  %v2998_v3 = vand.u32 4294901760, %v2997_v12 }
 0xa20   :  { %8538 = vst [vmem:[#allocation55_spill] sm:$0xff] %v7782_v26  ;;  %v3224_v31 = vsub.f32 %v7755_v60, %v7782_v26  ;;  %v505_v56 = vadd.f32 %v7365_v9, %v461_v25 }
 0xa21   :  { %v3003_v30 = vsub.f32 %v2974_v2, %v3002_v58 }
 0xa22   :  { %v7787_v17 = vand.u32 4294901760, %v3224_v31 }
 0xa23   :  { %v3004_v4 = vand.u32 4294901760, %v3003_v30 }
 0xa24   :  { %v2965_v37 = vpop.permute.xlu1 %2964  ;;  %8539 = vst [vmem:[#allocation56_spill] sm:$0xff] %v7787_v17 }
 0xa25   :  { %v2992_v27 = vand.u32 4294901760, %v2965_v37  ;;  %v3005_v43 = vsub.f32 %v3003_v30, %v3004_v4 }
 0xa27   :  { %v3032_v62 = vsub.f32 %v2965_v37, %v2992_v27  ;;  %2993 = vmatpush.msra.mxu0 %v2992_v27  ;;  %3094 = vmatpush.msra.mxu3 %v2992_v27  ;;  %v3006_v11 = vand.u32 4294901760, %v3005_v43 }
 0xa28   :  { %2999 = vmatmul.f32.vlgmr.msra.gmra.mxu0 %v2998_v3  ;;  %3098 = vmatmul.f32.vlgmr.msra.gmra.mxu3 %v2996_v20 }
 0xa29   :  { %3125 = vmatpush.msrb.mxu0 %v3027_v1  ;;  %3065 = vmatpush.msra.mxu2 %v3032_v62  ;;  %v3033_v7 = vand.u32 4294901760, %v3032_v62  ;;  %v3361_v1 = vsel %vm897_vm11, %v7726_v51, 0 }
 0xa2a   :  { %3068 = vmatmul.f32.vlgmr.msra.gmra.mxu2 %v2995_v23  ;;  %v7769_v61 = vand.u32 4294901760, %v3361_v1  ;;  %3226 = vmatpush.msrb.mxu3 %v7787_v17 }
 0xa2b   :  { %3129 = vmatpush.msrb.mxu0 %v3033_v7  ;;  %v3034_v63 = vsub.f32 %v3032_v62, %v3033_v7  ;;  %3188 = vmatpush.msrb.mxu2 %v7752_v48 }
 0xa2c   :  { %v7774_v19 = vsub.f32 %v3361_v1, %v7769_v61  ;;  %3339 = vmatpush.msra.mxu3 %v7752_v48 }
 0xa2d   :  { %3253 = vmatpush.msra.mxu0 %v7755_v60  ;;  %v3035_v52 = vand.u32 4294901760, %v3034_v63  ;;  %3313 = vmatpush.msra.mxu2 %v7782_v26 }
 0xa2e   :  { %v3423_v21 = vand.u32 4294901760, %v7774_v19 }
 0xa2f   :  { %3036 = vmatpush.msra.mxu1 %v3035_v52 }
 0xa30   :  { %3007 = vmatmul.f32.gmra.mxu0 %v3006_v11  ;;  %3038 = vmatmul.f32.vlgmr.msra.gmra.mxu1 %v2994_v38  ;;  %v3424_v13 = vsub.f32 %v7774_v19, %v3423_v21 }
 0xa31   :  { %3104 = vmatmul.f32.gmra.mxu3 %v3004_v4  ;;  %3154 = vmatpush.msrb.mxu1 %v7706_v47  ;;  %v3418_v47 = vsub.f32 %v7767_v49, %v3417_v33 }
 0xa32   :  { %3073 = vmatmul.f32.gmra.mxu2 %v3003_v30  ;;  %v3425_v59 = vand.u32 4294901760, %v3424_v13 }
 0xa33   :  { %3156 = vmatpush.msrb.mxu1 %v2992_v27  ;;  %v3419_v28 = vand.u32 4294901760, %v3418_v47  ;;  %v552_v27 = vadd.f32 %v7380_v41, %v505_v56 }
 0xa35   :  { %3281 = vmatpush.msra.mxu1 %v7752_v48  ;;  %v7798_v35 = vadd.f32 %v7375_v50, %v552_v27 }
 0xa37   :  { %v3355_v43 = vsel %vm897_vm11, %v7798_v35, 0 }
 0xa38   :  { %3042 = vmatmul.f32.gmra.mxu1 %v3002_v58  ;;  %3131 = vmatmul.f32.vlgmr.msrb.gmra.mxu0 %v2994_v38  ;;  %v3384_v41 = vand.u32 4294901760, %v3355_v43 }
 0xa39   :  { %3381 = vmatpush.xpose.msrb.mxu0 %v7761_v45 }
 0xa3d   :  { %3383 = vmatpush.xpose.msrb.mxu0 %v7769_v61 }
 0xa40   :  { %3135 = vmatmul.f32.gmra.mxu0 %v3002_v58  ;;  %3158 = vmatmul.f32.vlgmr.msrb.gmra.mxu1 %v2994_v38 }
 0xa41   :  { %3420 = vmatpush.xpose.msrb.mxu1 %v3419_v28 }
 0xa45   :  { %3426 = vmatpush.xpose.msrb.mxu1 %v3425_v59  ;;  %v3385_v59 = vsub.f32 %v3355_v43, %v3384_v41 }
 0xa47   :  { %v3386_v25 = vand.u32 4294901760, %v3385_v59 }
 0xa48   :  { %3162 = vmatmul.f32.gmra.mxu1 %v3002_v58 }
 0xaa5   :  { %v3000_v42 = vpop.f32.mrf.mxu0 }
 0xaab   :  { %v3099_v30 = vpop.f32.mrf.mxu3 }
 0xaad   :  { %v3008_v38 = vpop.f32.mrf.mxu0  ;;  %v3039_v23 = vpop.f32.mrf.mxu1 }
 0xaae   :  { %v3040_v2 = vadd.f32 %v3039_v23, %v3000_v42  ;;  %v3069_v20 = vpop.f32.mrf.mxu2 }
 0xab0   :  { %v3070_v12 = vadd.f32 %v3069_v20, %v3040_v2 }
 0xab2   :  { %v3100_v4 = vadd.f32 %v3099_v30, %v3070_v12 }
 0xab4   :  { %v3105_v63 = vpop.f32.mrf.mxu3 }
 0xab5   :  { %v3043_v58 = vpop.f32.mrf.mxu1  ;;  %v3132_v37 = vpop.f32.mrf.mxu0 }
 0xab6   :  { %v3044_v3 = vadd.f32 %v3043_v58, %v3008_v38  ;;  %v3133_v46 = vadd.f32 %v3132_v37, %v3100_v4  ;;  %v3074_v62 = vpop.f32.mrf.mxu2 }
 0xab8   :  { %v3075_v7 = vadd.f32 %v3074_v62, %v3044_v3 }
 0xaba   :  { %v3106_v11 = vadd.f32 %v3105_v63, %v3075_v7 }
 0xabd   :  { %v3159_v24 = vpop.f32.mrf.mxu1  ;;  %v3136_v39 = vpop.f32.mrf.mxu0 }
 0xabe   :  { %v3160_v34 = vadd.f32 %v3159_v24, %v3133_v46  ;;  %v3137_v47 = vadd.f32 %v3136_v39, %v3106_v11 }
 0xac0   :  { %v3167_v9 = vsel %vm897_vm11, %v3160_v34, 0 }
 0xac1   :  { %v3189_v52 = vand.u32 4294901760, %v3167_v9 }
 0xac3   :  { %v3190_v1 = vsub.f32 %v3167_v9, %v3189_v52  ;;  %3228 = vmatmul.f32.vlgmr.msrb.gmra.mxu3 %v3189_v52 }
 0xac4   :  { %3482 = vmatpush.xpose.msrb.mxu3 %v7761_v45 }
 0xac5   :  { %v3191_v50 = vand.u32 4294901760, %v3190_v1  ;;  %v3163_v28 = vpop.f32.mrf.mxu1  ;;  %3256 = vmatmul.f32.vlgmr.msra.gmra.mxu0 %v3190_v1 }
 0xac6   :  { %v3164_v13 = vadd.f32 %v3163_v28, %v3137_v47  ;;  %3515 = vmatpush.xpose.msra.mxu0 %v3417_v33  ;;  %v3392_v33 = vand.u32 4294901760, %v3358_v36 }
 0xac7   :  { %v3192_v31 = vsub.f32 %v3190_v1, %v3191_v50  ;;  %3285 = vmatmul.f32.vlgmr.msra.gmra.mxu1 %v3191_v50 }
 0xac8   :  { %v3170_v42 = vsel %vm897_vm11, %v3164_v13, 0  ;;  %3484 = vmatpush.xpose.msrb.mxu3 %v7769_v61  ;;  %3544 = vmatpush.xpose.msra.mxu1 %v7761_v45  ;;  %v3387_v45 = vsub.f32 %v3385_v59, %v3386_v25  ;;  %v3393_v58 = vsub.f32 %v3358_v36, %v3392_v33 }
 0xac9   :  { %v3193_v38 = vand.u32 4294901760, %v3192_v31  ;;  %v3197_v23 = vand.u32 4294901760, %v3170_v42 }
 0xaca   :  { %3519 = vmatpush.xpose.msra.mxu0 %v3423_v21  ;;  %v3388_v21 = vand.u32 4294901760, %v3387_v45  ;;  %v3394_v12 = vand.u32 4294901760, %v3393_v58 }
 0xacb   :  { %3194 = vmatmul.f32.vlgmr.msrb.gmra.mxu2 %v3193_v38  ;;  %3232 = vmatmul.f32.gmra.mxu3 %v3197_v23  ;;  %v3198_v22 = vsub.f32 %v3170_v42, %v3197_v23 }
 0xacc   :  { %3452 = vmatpush.xpose.msrb.mxu2 %v7767_v49  ;;  %3546 = vmatpush.xpose.msra.mxu1 %v7769_v61  ;;  %v3395_v30 = vsub.f32 %v3393_v58, %v3394_v12 }
 0xacd   :  { %3261 = vmatmul.f32.gmra.mxu0 %v3198_v22  ;;  %v3199_v2 = vand.u32 4294901760, %v3198_v22 }
 0xace   :  { %v3396_v49 = vand.u32 4294901760, %v3395_v30 }
 0xacf   :  { %3291 = vmatmul.f32.gmra.mxu1 %v3199_v2  ;;  %v3200_v20 = vsub.f32 %v3198_v22, %v3199_v2 }
 0xad0   :  { %3455 = vmatpush.xpose.msrb.mxu2 %v7774_v19 }
 0xad1   :  { %v3201_v56 = vand.u32 4294901760, %v3200_v20 }
 0xad3   :  { %3202 = vmatmul.f32.gmra.mxu2 %v3201_v56  ;;  %3341 = vmatmul.f32.vlgmr.msra.gmra.mxu3 %v3189_v52 }
 0xad5   :  { %3389 = vmatmul.f32.vlgmr.msrb.gmra.mxu0 %v3388_v21 }
 0xad7   :  { %3428 = vmatmul.f32.vlgmr.msrb.gmra.mxu1 %v3384_v41 }
 0xadb   :  { %3315 = vmatmul.f32.vlgmr.msra.gmra.mxu2 %v3189_v52  ;;  %3345 = vmatmul.f32.gmra.mxu3 %v3197_v23 }
 0xadd   :  { %3397 = vmatmul.f32.gmra.mxu0 %v3396_v49 }
 0xadf   :  { %3432 = vmatmul.f32.gmra.mxu1 %v3392_v33 }
 0xae3   :  { %3319 = vmatmul.f32.gmra.mxu2 %v3197_v23  ;;  %3488 = vmatmul.f32.vlgmr.msrb.gmra.mxu3 %v3386_v25 }
 0xae5   :  { %3521 = vmatmul.f32.vlgmr.msra.gmra.mxu0 %v3384_v41 }
 0xae7   :  { %3548 = vmatmul.f32.vlgmr.msra.gmra.mxu1 %v3384_v41 }
 0xaeb   :  { %3458 = vmatmul.f32.vlgmr.msrb.gmra.mxu2 %v3385_v59  ;;  %3494 = vmatmul.f32.gmra.mxu3 %v3394_v12 }
 0xaed   :  { %3525 = vmatmul.f32.gmra.mxu0 %v3392_v33 }
 0xaef   :  { %3552 = vmatmul.f32.gmra.mxu1 %v3392_v33 }
 0xaf3   :  { %3463 = vmatmul.f32.gmra.mxu2 %v3393_v58 }
 0xb42   :  { %v7814_v19 = vpop.f32.mrf.mxu0 }
 0xb44   :  { %v7816_v37 = vpop.f32.mrf.mxu1 }
 0xb46   :  { %v7812_v61 = vpop.f32.mrf.mxu3 }
 0xb4a   :  { %v7822_v4 = vpop.f32.mrf.mxu0 }
 0xb4c   :  { %v7824_v46 = vpop.f32.mrf.mxu1 }
 0xb4e   :  { %v7818_v27 = vpop.f32.mrf.mxu2  ;;  %v7820_v3 = vpop.f32.mrf.mxu3 }
 0xb52   :  { %v3390_v7 = vpop.f32.mrf.mxu0 }
 0xb54   :  { %v3429_v34 = vpop.f32.mrf.mxu1 }
 0xb55   :  { %v3430_v11 = vadd.f32 %v3429_v34, %v3390_v7 }
 0xb56   :  { %v7826_v62 = vpop.f32.mrf.mxu2  ;;  %v7828_v24 = vpop.f32.mrf.mxu3 }
 0xb5a   :  { %v3398_v63 = vpop.f32.mrf.mxu0 }
 0xb5c   :  { %v3433_v52 = vpop.f32.mrf.mxu1 }
 0xb5d   :  { %v3434_v31 = vadd.f32 %v3433_v52, %v3398_v63 }
 0xb5e   :  { %v7830_v43 = vpop.f32.mrf.mxu2  ;;  %v7832_v9 = vpop.f32.mrf.mxu3 }
 0xb5f   :  { %8540 = vst [vmem:[#allocation57_spill] sm:$0xff] %v7832_v9 }
 0xb62   :  { %v3522_v50 = vpop.f32.mrf.mxu0 }
 0xb64   :  { %v3549_v13 = vpop.f32.mrf.mxu1 }
 0xb66   :  { %v7834_v39 = vpop.f32.mrf.mxu2  ;;  %v3489_v41 = vpop.f32.mrf.mxu3 }
 0xb67   :  { %8541 = vst [vmem:[#allocation58_spill] sm:$0xff] %v7834_v39 }
 0xb6a   :  { %v3526_v33 = vpop.f32.mrf.mxu0 }
 0xb6c   :  { %v3553_v20 = vpop.f32.mrf.mxu1 }
 0xb6e   :  { %v3459_v1 = vpop.f32.mrf.mxu2  ;;  %v3495_v22 = vpop.f32.mrf.mxu3 }
 0xb6f   :  { %v3460_v47 = vadd.f32 %v3459_v1, %v3430_v11 }
 0xb71   :  { %v3490_v28 = vadd.f32 %v3489_v41, %v3460_v47  ;;  %v3579_v41 = vpop.permute.xlu1 %3578 }
 0xb73   :  { %v3523_v59 = vadd.f32 %v3522_v50, %v3490_v28 }
 0xb75   :  { %v3550_v42 = vadd.f32 %v3549_v13, %v3523_v59 }
 0xb76   :  { %v3464_v36 = vpop.f32.mrf.mxu2 }
 0xb77   :  { %v3465_v38 = vadd.f32 %v3464_v36, %v3434_v31  ;;  %v3556_v23 = vsel %vm1100_vm12, %v3550_v42, -inf }
 0xb78   :  { %3557 = vmax.xlane.f32.xlu0 %v3556_v23 }
 0xb79   :  { %v3496_v25 = vadd.f32 %v3495_v22, %v3465_v38  ;;  %v3787_v1 = vpop.permute.xlu1 %3786 }
 0xb7a   :  { %v3794_v50 = vsel %vm897_vm11, %v3787_v1, 0 }
 0xb7b   :  { %v3527_v2 = vadd.f32 %v3526_v33, %v3496_v25 }
 0xb7d   :  { %v3554_v45 = vadd.f32 %v3553_v20, %v3527_v2  ;;  %v7855_v2 = vand.u32 4294901760, %v3579_v41 }
 0xb7f   :  { %v3559_v58 = vsel %vm1100_vm12, %v3554_v45, -inf }
 0xb80   :  { %3560 = vmax.xlane.f32.xlu0 %v3559_v58 }
 0xb81   :  { %v3785_v13 = vpop.permute.xlu1 %3784 }
 0xb82   :  { %v3792_v36 = vsel %vm897_vm11, %v3785_v13, 0 }
 0xb83   :  { %v7852_v25 = vand.u32 4294901760, %v3792_v36 }
 0xbeb   :  { %v3558_v56 = vpop.xlane.xlu0 %3557 }
 0xbec   :  { %v3562_v21 = vsub.f32 %v3550_v42, %v3558_v56  ;;  %v7845_v42 = vand.u32 4294901760, %v3794_v50 }
 0xbee   :  { %v3564_v12 = vmul.f32 1.442695, %v3562_v21  ;;  %v3846_v22 = vsub.f32 %v3794_v50, %v7845_v42  ;;  %v3852_v21 = vsub.f32 %v3792_v36, %v7852_v25 }
 0xbf0   :  { %6754 = vpow2.f32 %v3564_v12  ;;  %v3847_v56 = vand.u32 4294901760, %v3846_v22  ;;  %v3646_v12 = vsub.f32 %v3579_v41, %v7855_v2  ;;  %v3853_v1 = vand.u32 4294901760, %v3852_v21 }
 0xbf3   :  { %v3561_v30 = vpop.xlane.xlu0 %3560 }
 0xbf4   :  { %v3563_v49 = vsub.f32 %v3554_v45, %v3561_v30 }
 0xbf6   :  { %v6755_v7 = vpop.eup %6754  ;;  %v3566_v34 = vmul.f32 1.442695, %v3563_v49 }
 0xbf7   :  { %v3568_v63 = vsel %vm1100_vm12, %v6755_v7, 0.0 }
 0xbf8   :  { %6756 = vpow2.f32 %v3566_v34  ;;  %3569 = vadd.xlane.f32.xlu0 %v3568_v63 }
 0xbfe   :  { %v6757_v52 = vpop.eup %6756 }
 0xbff   :  { %v3571_v11 = vsel %vm1100_vm12, %v6757_v52, 0.0 }
 0xc00   :  { %3572 = vadd.xlane.f32.xlu2 %v3571_v11  ;;  %v3848_v11 = vsub.f32 %v3846_v22, %v3847_v56 }
 0xc02   :  { %v3849_v41 = vand.u32 4294901760, %v3848_v11 }
 0xc0c   :  { %3580 = vrot.lane.b32.xlu0 %v7735_v32, %s6940_s12 }
 0xc14   :  { %3780 = vrot.lane.b32.xlu0 %v7798_v35, %s6941_s13 }
 0xc6b   :  { %v3570_v47 = vpop.xlane.xlu0 %3569 }
 0xc6c   :  { %6758 = vrcp.f32 %v3570_v47 }
 0xc72   :  { %v6759_v28 = vpop.eup %6758 }
 0xc73   :  { %v3576_v59 = vmul.f32 %v6759_v28, %v6755_v7  ;;  %v3573_v31 = vpop.xlane.xlu2 %3572 }
 0xc74   :  { %6760 = vrcp.f32 %v3573_v31  ;;  %v3854_v31 = vsub.f32 %v3852_v21, %v3853_v1 }
 0xc75   :  { %v3585_v38 = vsel %vm1100_vm12, %v3576_v59, 0 }
 0xc76   :  { %v7849_v23 = vand.u32 4294901760, %v3585_v38  ;;  %v3855_v26 = vand.u32 4294901760, %v3854_v31 }
 0xc78   :  { %v3609_v33 = vsub.f32 %v3585_v38, %v7849_v23 }
 0xc7a   :  { %v6761_v20 = vpop.eup %6760  ;;  %v3610_v45 = vand.u32 4294901760, %v3609_v33 }
 0xc7b   :  { %v3577_v58 = vmul.f32 %v6761_v20, %v6757_v52  ;;  %v3647_v52 = vand.u32 4294901760, %v3646_v12 }
 0xc7c   :  { %v3611_v34 = vsub.f32 %v3609_v33, %v3610_v45 }
 0xc7d   :  { %v3588_v30 = vsel %vm1100_vm12, %v3577_v58, 0  ;;  %v3648_v38 = vsub.f32 %v3646_v12, %v3647_v52 }
 0xc7e   :  { %v7860_v49 = vand.u32 4294901760, %v3588_v30  ;;  %v3581_v7 = vpop.permute.xlu0 %3580  ;;  %v3612_v28 = vand.u32 4294901760, %v3611_v34  ;;  %v3783_v34 = vpop.permute.xlu1 %3782 }
 0xc7f   :  { %v3604_v63 = vand.u32 4294901760, %v3581_v7 }
 0xc80   :  { %v3617_v47 = vsub.f32 %v3588_v30, %v7860_v49 }
 0xc81   :  { %v3640_v50 = vsub.f32 %v3581_v7, %v3604_v63  ;;  %3605 = vmatpush.msra.mxu2 %v3604_v63  ;;  %3706 = vmatpush.msrb.mxu1 %v3604_v63 }
 0xc82   :  { %v3618_v13 = vand.u32 4294901760, %v3617_v47 }
 0xc83   :  { %v3641_v59 = vand.u32 4294901760, %v3640_v50  ;;  %3607 = vmatpush.msra.mxu2 %v7855_v2  ;;  %3676 = vmatpush.msrb.mxu0 %v3640_v50 }
 0xc84   :  { %3708 = vmatpush.msrb.mxu1 %v7855_v2  ;;  %3613 = vmatmul.f32.vlgmr.msra.gmra.mxu2 %v3612_v28  ;;  %v3619_v58 = vsub.f32 %v3617_v47, %v3618_v13  ;;  %v3790_v28 = vsel %vm897_vm11, %v3783_v34, 0 }
 0xc85   :  { %v3642_v36 = vsub.f32 %v3640_v50, %v3641_v59  ;;  %3712 = vmatmul.f32.vlgmr.msrb.gmra.mxu1 %v3610_v45  ;;  %3679 = vmatpush.msrb.mxu0 %v3646_v12  ;;  %v3649_v50 = vand.u32 4294901760, %v3648_v38 }
 0xc86   :  { %3850 = vmatpush.xpose.msra.mxu1 %v3849_v41  ;;  %3739 = vmatpush.msrb.mxu2 %v3641_v59  ;;  %v3781_v20 = vpop.permute.xlu0 %3780  ;;  %v3620_v12 = vand.u32 4294901760, %v3619_v58 }
 0xc87   :  { %v3643_v30 = vand.u32 4294901760, %v3642_v36  ;;  %3682 = vmatmul.f32.vlgmr.msrb.gmra.mxu0 %v3609_v33  ;;  %v3788_v7 = vsel %vm897_vm11, %v3781_v20, 0  ;;  %v3822_v33 = vand.u32 4294901760, %v3790_v28 }
 0xc88   :  { %3811 = vmatpush.xpose.msra.mxu0 %v7845_v42  ;;  %v3814_v11 = vand.u32 4294901760, %v3788_v7  ;;  %3743 = vmatpush.msrb.mxu2 %v3647_v52 }
 0xc89   :  { %3644 = vmatpush.msra.mxu3 %v3643_v30 }
 0xc8a   :  { %3882 = vmatpush.xpose.msra.mxu2 %v3846_v22  ;;  %v3815_v45 = vsub.f32 %v3788_v7, %v3814_v11  ;;  %3856 = vmatpush.xpose.msra.mxu1 %v3855_v26  ;;  %v3823_v26 = vsub.f32 %v3790_v28, %v3822_v33 }
 0xc8b   :  { %3650 = vmatpush.msra.mxu3 %v3649_v50 }
 0xc8c   :  { %3813 = vmatpush.xpose.msra.mxu0 %v7852_v25  ;;  %3621 = vmatmul.f32.gmra.mxu2 %v3620_v12  ;;  %v3816_v52 = vand.u32 4294901760, %v3815_v45 }
 0xc8d   :  { %3652 = vmatmul.f32.vlgmr.msra.gmra.mxu3 %v7849_v23  ;;  %3718 = vmatmul.f32.gmra.mxu1 %v3618_v13 }
 0xc8e   :  { %3974 = vmatpush.xpose.msrb.mxu1 %v7845_v42  ;;  %3768 = vmatpush.msrb.mxu3 %v3604_v63  ;;  %v3817_v22 = vsub.f32 %v3815_v45, %v3816_v52 }
 0xc8f   :  { %3885 = vmatpush.xpose.msra.mxu2 %v3852_v21  ;;  %3687 = vmatmul.f32.gmra.mxu0 %v3617_v47 }
 0xc90   :  { %3945 = vmatpush.xpose.msrb.mxu0 %v3847_v56  ;;  %3770 = vmatpush.msrb.mxu3 %v7855_v2  ;;  %v3824_v56 = vand.u32 4294901760, %v3823_v26  ;;  %v3818_v59 = vand.u32 4294901760, %v3817_v22 }
 0xc92   :  { %3976 = vmatpush.xpose.msrb.mxu1 %v7852_v25  ;;  %3912 = vmatpush.xpose.msra.mxu3 %v7845_v42  ;;  %v3825_v21 = vsub.f32 %v3823_v26, %v3824_v56 }
 0xc94   :  { %3949 = vmatpush.xpose.msrb.mxu0 %v3853_v1  ;;  %3745 = vmatmul.f32.vlgmr.msrb.gmra.mxu2 %v7849_v23  ;;  %v3826_v42 = vand.u32 4294901760, %v3825_v21 }
 0xc95   :  { %3656 = vmatmul.f32.gmra.mxu3 %v7860_v49  ;;  %3858 = vmatmul.f32.vlgmr.msra.gmra.mxu1 %v3814_v11 }
 0xc96   :  { %3914 = vmatpush.xpose.msra.mxu3 %v7852_v25 }
 0xc97   :  { %3819 = vmatmul.f32.vlgmr.msra.gmra.mxu0 %v3818_v59 }
 0xc9c   :  { %3749 = vmatmul.f32.gmra.mxu2 %v7860_v49 }
 0xc9d   :  { %3772 = vmatmul.f32.vlgmr.msrb.gmra.mxu3 %v7849_v23  ;;  %3862 = vmatmul.f32.gmra.mxu1 %v3822_v33 }
 0xc9f   :  { %3827 = vmatmul.f32.gmra.mxu0 %v3826_v42 }
 0xca4   :  { %3888 = vmatmul.f32.vlgmr.msra.gmra.mxu2 %v3815_v45 }
 0xca5   :  { %3776 = vmatmul.f32.gmra.mxu3 %v7860_v49  ;;  %3978 = vmatmul.f32.vlgmr.msrb.gmra.mxu1 %v3814_v11 }
 0xca7   :  { %3951 = vmatmul.f32.vlgmr.msrb.gmra.mxu0 %v3814_v11 }
 0xcac   :  { %3893 = vmatmul.f32.gmra.mxu2 %v3823_v26 }
 0xcad   :  { %3918 = vmatmul.f32.vlgmr.msra.gmra.mxu3 %v3816_v52  ;;  %3982 = vmatmul.f32.gmra.mxu1 %v3822_v33 }
 0xcaf   :  { %3955 = vmatmul.f32.gmra.mxu0 %v3822_v33 }
 0xcb5   :  { %3924 = vmatmul.f32.gmra.mxu3 %v3824_v56 }
 0xd02   :  { %v7884_v63 = vpop.f32.mrf.mxu1 }
 0xd04   :  { %v7882_v2 = vpop.f32.mrf.mxu0 }
 0xd07   :  { %v7880_v25 = vpop.f32.mrf.mxu2 }
 0xd0a   :  { %v7892_v49 = vpop.f32.mrf.mxu1 }
 0xd0c   :  { %v7890_v47 = vpop.f32.mrf.mxu0 }
 0xd0f   :  { %v7886_v23 = vpop.f32.mrf.mxu2 }
 0xd10   :  { %v7888_v1 = vpop.f32.mrf.mxu3 }
 0xd12   :  { %v3859_v36 = vpop.f32.mrf.mxu1 }
 0xd14   :  { %v3820_v31 = vpop.f32.mrf.mxu0 }
 0xd15   :  { %v3860_v11 = vadd.f32 %v3859_v36, %v3820_v31 }
 0xd17   :  { %v7894_v13 = vpop.f32.mrf.mxu2 }
 0xd18   :  { %v7896_v41 = vpop.f32.mrf.mxu3 }
 0xd1a   :  { %v3863_v30 = vpop.f32.mrf.mxu1 }
 0xd1c   :  { %v3828_v58 = vpop.f32.mrf.mxu0 }
 0xd1d   :  { %v3864_v22 = vadd.f32 %v3863_v30, %v3828_v58 }
 0xd1f   :  { %v7898_v38 = vpop.f32.mrf.mxu2 }
 0xd20   :  { %v7900_v20 = vpop.f32.mrf.mxu3 }
 0xd22   :  { %v3979_v33 = vpop.f32.mrf.mxu1 }
 0xd24   :  { %v3952_v45 = vpop.f32.mrf.mxu0 }
 0xd27   :  { %v3889_v34 = vpop.f32.mrf.mxu2 }
 0xd28   :  { %v7902_v7 = vpop.f32.mrf.mxu3  ;;  %v3890_v50 = vadd.f32 %v3889_v34, %v3860_v11 }
 0xd2a   :  { %v3983_v9 = vpop.f32.mrf.mxu1 }
 0xd2c   :  { %v3956_v48 = vpop.f32.mrf.mxu0 }
 0xd2f   :  { %v3894_v26 = vpop.f32.mrf.mxu2 }
 0xd30   :  { %v3919_v12 = vpop.f32.mrf.mxu3  ;;  %v3895_v59 = vadd.f32 %v3894_v26, %v3864_v22 }
 0xd31   :  { %v3920_v28 = vadd.f32 %v3919_v12, %v3890_v50 }
 0xd33   :  { %v3953_v52 = vadd.f32 %v3952_v45, %v3920_v28 }
 0xd35   :  { %v3980_v56 = vadd.f32 %v3979_v33, %v3953_v52 }
 0xd37   :  { %v3986_v21 = vsel %vm1100_vm12, %v3980_v56, -inf }
 0xd38   :  { %v3925_v42 = vpop.f32.mrf.mxu3  ;;  %3987 = vmax.xlane.f32.xlu0 %v3986_v21 }
 0xd39   :  { %v3926_v60 = vadd.f32 %v3925_v42, %v3895_v59 }
 0xd3b   :  { %v3957_v17 = vadd.f32 %v3956_v48, %v3926_v60 }
 0xd3d   :  { %v3984_v39 = vadd.f32 %v3983_v9, %v3957_v17 }
 0xd3f   :  { %v3989_v31 = vsel %vm1100_vm12, %v3984_v39, -inf }
 0xd40   :  { %3990 = vmax.xlane.f32.xlu1 %v3989_v31 }
 0xd4c   :  { %4008 = vrot.lane.b32.xlu0 %v7726_v51, %s6942_s14 }
 0xd54   :  { %4578 = vrot.lane.b32.xlu0 %v7746_v14, %s6943_s15 }
 0xd59   :  { %4582 = vrot.lane.b32.xlu1 %v7735_v32, %s6943_s15 }
 0xdab   :  { %v3988_v36 = vpop.xlane.xlu0 %3987 }
 0xdac   :  { %v3992_v58 = vsub.f32 %v3980_v56, %v3988_v36 }
 0xdae   :  { %v3994_v30 = vmul.f32 1.442695, %v3992_v58 }
 0xdb0   :  { %6762 = vpow2.f32 %v3994_v30 }
 0xdb3   :  { %v3991_v34 = vpop.xlane.xlu1 %3990 }
 0xdb4   :  { %v3993_v48 = vsub.f32 %v3984_v39, %v3991_v34 }
 0xdb6   :  { %v6763_v60 = vpop.eup %6762  ;;  %v3996_v17 = vmul.f32 1.442695, %v3993_v48 }
 0xdb7   :  { %v3998_v9 = vsel %vm1100_vm12, %v6763_v60, 0.0 }
 0xdb8   :  { %6764 = vpow2.f32 %v3996_v17  ;;  %3999 = vadd.xlane.f32.xlu2 %v3998_v9 }
 0xdbe   :  { %v6765_v11 = vpop.eup %6764  ;;  %v4009_v12 = vpop.permute.xlu0 %4008 }
 0xdbf   :  { %v4001_v50 = vsel %vm1100_vm12, %v6765_v11, 0.0  ;;  %v4036_v26 = vand.u32 4294901760, %v4009_v12 }
 0xdc0   :  { %4002 = vadd.xlane.f32.xlu2 %v4001_v50 }
 0xdc1   :  { %v4076_v21 = vsub.f32 %v4009_v12, %v4036_v26 }
 0xdc3   :  { %v4077_v9 = vand.u32 4294901760, %v4076_v21 }
 0xdd8   :  { %4010 = vrot.lane.b32.xlu2 %v7735_v32, %s6942_s14 }
 0xde0   :  { %4580 = vrot.lane.b32.xlu2 %v7726_v51, %s6943_s15 }
 0xde8   :  { %4576 = vrot.lane.b32.xlu2 %v7798_v35, %s6943_s15  ;;  %s6672_s15 = sshll.u32 %s8470_s10, 4  ;;  %s6673_s15 = int_to_ptr.hbm [resolvable:$true] %s6672_s15 }
 0xe2b   :  { %v4000_v39 = vpop.xlane.xlu2 %3999 }
 0xe2c   :  { %6766 = vrcp.f32 %v4000_v39 }
 0xe32   :  { %v6767_v45 = vpop.eup %6766 }
 0xe33   :  { %v4006_v28 = vmul.f32 %v6767_v45, %v6763_v60  ;;  %v4003_v33 = vpop.xlane.xlu2 %4002 }
 0xe34   :  { %6768 = vrcp.f32 %v4003_v33 }
 0xe35   :  { %v4015_v52 = vsel %vm1100_vm12, %v4006_v28, 0 }
 0xe36   :  { %v4038_v22 = vand.u32 4294901760, %v4015_v52 }
 0xe38   :  { %v4039_v56 = vsub.f32 %v4015_v52, %v4038_v22 }
 0xe3a   :  { %v6769_v59 = vpop.eup %6768  ;;  %v4040_v42 = vand.u32 4294901760, %v4039_v56 }
 0xe3b   :  { %v4007_v31 = vmul.f32 %v6769_v59, %v6765_v11  ;;  %v4011_v36 = vpop.permute.xlu2 %4010  ;;  %v4078_v11 = vsub.f32 %v4076_v21, %v4077_v9 }
 0xe3c   :  { %v4034_v58 = vand.u32 4294901760, %v4011_v36  ;;  %v4041_v30 = vsub.f32 %v4039_v56, %v4040_v42 }
 0xe3d   :  { %v4018_v34 = vsel %vm1100_vm12, %v4007_v31, 0  ;;  %v4079_v52 = vand.u32 4294901760, %v4078_v11 }
 0xe3e   :  { %v4046_v48 = vand.u32 4294901760, %v4018_v34  ;;  %v4070_v17 = vsub.f32 %v4011_v36, %v4034_v58  ;;  %4035 = vmatpush.msrb.mxu2 %v4034_v58  ;;  %4136 = vmatpush.msra.mxu1 %v4034_v58  ;;  %v4042_v60 = vand.u32 4294901760, %v4041_v30 }
 0xe40   :  { %v4071_v50 = vand.u32 4294901760, %v4070_v17  ;;  %4037 = vmatpush.msrb.mxu2 %v4036_v26  ;;  %4106 = vmatpush.msra.mxu0 %v4070_v17  ;;  %v4047_v39 = vsub.f32 %v4018_v34, %v4046_v48 }
 0xe41   :  { %4138 = vmatpush.msra.mxu1 %v4036_v26  ;;  %4043 = vmatmul.f32.vlgmr.msrb.gmra.mxu2 %v4042_v60 }
 0xe42   :  { %v4072_v45 = vsub.f32 %v4070_v17, %v4071_v50  ;;  %4142 = vmatmul.f32.vlgmr.msra.gmra.mxu1 %v4040_v42  ;;  %4109 = vmatpush.msra.mxu0 %v4076_v21  ;;  %v4048_v12 = vand.u32 4294901760, %v4047_v39 }
 0xe43   :  { %4169 = vmatpush.msra.mxu2 %v4071_v50  ;;  %4112 = vmatmul.f32.vlgmr.msra.gmra.mxu0 %v4039_v56  ;;  %v3654_v56 = vadd.f32 %v7888_v1, %v7880_v25  ;;  %v4583_v1 = vpop.permute.xlu1 %4582 }
 0xe44   :  { %v4073_v28 = vand.u32 4294901760, %v4072_v45  ;;  %v4049_v33 = vsub.f32 %v4047_v39, %v4048_v12  ;;  %4270 = vmatpush.msrb.mxu1 %v7506_v40  ;;  %4232 = vmatpush.msrb.mxu0 %v7492_v29  ;;  %v4590_v45 = vsel %vm897_vm11, %v4583_v1, 0 }
 0xe45   :  { %4173 = vmatpush.msra.mxu2 %v4077_v9 }
 0xe46   :  { %4383 = vmatpush.msra.mxu1 %v7492_v29  ;;  %4074 = vmatpush.msrb.mxu3 %v4073_v28  ;;  %v4050_v59 = vand.u32 4294901760, %v4049_v33  ;;  %v7944_v28 = vand.u32 4294901760, %v4590_v45 }
 0xe47   :  { %4297 = vmatpush.msrb.mxu2 %v7495_v53  ;;  %4357 = vmatpush.msra.mxu0 %v7500_v55 }
 0xe48   :  { %4080 = vmatpush.msrb.mxu3 %v4079_v52 }
 0xe49   :  { %4051 = vmatmul.f32.gmra.mxu2 %v4050_v59  ;;  %4082 = vmatmul.f32.vlgmr.msrb.gmra.mxu3 %v4038_v22 }
 0xe4a   :  { %4148 = vmatmul.f32.gmra.mxu1 %v4048_v12  ;;  %4198 = vmatpush.msra.mxu3 %v4034_v58 }
 0xe4b   :  { %4117 = vmatmul.f32.gmra.mxu0 %v4047_v39 }
 0xe4c   :  { %4200 = vmatpush.msra.mxu3 %v4036_v26  ;;  %v3684_v26 = vadd.f32 %v7882_v2, %v3654_v56 }
 0xe4e   :  { %4325 = vmatpush.msrb.mxu3 %v7492_v29 }
 0xe51   :  { %4086 = vmatmul.f32.gmra.mxu3 %v4046_v48  ;;  %4175 = vmatmul.f32.vlgmr.msra.gmra.mxu2 %v4038_v22 }
 0xe52   :  { %4415 = vmatpush.msra.mxu2 %v7512_v44 }
 0xe59   :  { %4179 = vmatmul.f32.gmra.mxu2 %v4046_v48  ;;  %4202 = vmatmul.f32.vlgmr.msra.gmra.mxu3 %v4038_v22  ;;  %v3658_v22 = vadd.f32 %v7896_v41, %v7886_v23  ;;  %v4581_v41 = vpop.permute.xlu2 %4580 }
 0xe5a   :  { %4453 = vmatpush.msra.mxu3 %v7528_v18  ;;  %v3714_v18 = vadd.f32 %v7884_v63, %v3684_v26  ;;  %v4588_v59 = vsel %vm897_vm11, %v4581_v41, 0 }
 0xe5b   :  { %v3689_v17 = vadd.f32 %v7890_v47, %v3658_v22 }
 0xe5c   :  { %v3747_v30 = vadd.f32 %v7894_v13, %v3714_v18 }
 0xe5d   :  { %v3720_v23 = vadd.f32 %v7892_v49, %v3689_v17 }
 0xe5e   :  { %v3774_v25 = vadd.f32 %v7900_v20, %v3747_v30 }
 0xe5f   :  { %v3751_v20 = vadd.f32 %v7898_v38, %v3720_v23  ;;  %v4608_v38 = vand.u32 4294901760, %v4588_v59 }
 0xe60   :  { %v4394_v63 = vsel %vm897_vm11, %v3774_v25, 0 }
 0xe61   :  { %4206 = vmatmul.f32.gmra.mxu3 %v4046_v48  ;;  %v7946_v52 = vand.u32 4294901760, %v4394_v63  ;;  %v3778_v49 = vadd.f32 %v7902_v7, %v3751_v20  ;;  %v4648_v18 = vsub.f32 %v4588_v59, %v4608_v38  ;;  %v4577_v41 = vpop.permute.xlu2 %4576 }
 0xe63   :  { %v4417_v26 = vsub.f32 %v4394_v63, %v7946_v52  ;;  %v4649_v25 = vand.u32 4294901760, %v4648_v18 }
 0xe65   :  { %v4418_v30 = vand.u32 4294901760, %v4417_v26 }
 0xe67   :  { %v4419_v1 = vsub.f32 %v4417_v26, %v4418_v30 }
 0xebf   :  { %v4143_v36 = vpop.f32.mrf.mxu1 }
 0xec0   :  { %v4113_v42 = vpop.f32.mrf.mxu0 }
 0xec4   :  { %v4044_v53 = vpop.f32.mrf.mxu2 }
 0xec7   :  { %v4149_v11 = vpop.f32.mrf.mxu1 }
 0xec8   :  { %v4118_v2 = vpop.f32.mrf.mxu0 }
 0xecc   :  { %v4052_v55 = vpop.f32.mrf.mxu2  ;;  %v4083_v40 = vpop.f32.mrf.mxu3 }
 0xecd   :  { %v4084_v21 = vadd.f32 %v4083_v40, %v4044_v53 }
 0xecf   :  { %v4114_v31 = vadd.f32 %v4113_v42, %v4084_v21  ;;  %v7952_v21 = vsub.f32 %v4590_v45, %v7944_v28 }
 0xed1   :  { %v4144_v48 = vadd.f32 %v4143_v36, %v4114_v31  ;;  %v4397_v31 = vsel %vm897_vm11, %v3778_v49, 0  ;;  %v4643_v22 = vand.u32 4294901760, %v7952_v21 }
 0xed3   :  { %v4644_v17 = vsub.f32 %v7952_v21, %v4643_v22 }
 0xed4   :  { %v4087_v29 = vpop.f32.mrf.mxu3  ;;  %v4176_v58 = vpop.f32.mrf.mxu2 }
 0xed5   :  { %v4088_v34 = vadd.f32 %v4087_v29, %v4052_v55  ;;  %v4177_v60 = vadd.f32 %v4176_v58, %v4144_v48 }
 0xed7   :  { %v4119_v50 = vadd.f32 %v4118_v2, %v4088_v34  ;;  %v4424_v34 = vand.u32 4294901760, %v4397_v31 }
 0xed9   :  { %v4150_v33 = vadd.f32 %v4149_v11, %v4119_v50  ;;  %v4650_v50 = vsub.f32 %v4648_v18, %v4649_v25 }
 0xedc   :  { %v4203_v9 = vpop.f32.mrf.mxu3  ;;  %v4180_v12 = vpop.f32.mrf.mxu2 }
 0xedd   :  { %v4204_v39 = vadd.f32 %v4203_v9, %v4177_v60  ;;  %v4181_v55 = vadd.f32 %v4180_v12, %v4150_v33  ;;  %v4425_v60 = vsub.f32 %v4397_v31, %v4424_v34  ;;  %v4645_v9 = vand.u32 4294901760, %v4644_v17  ;;  %v4579_v12 = vpop.permute.xlu0 %4578 }
 0xede   :  { %v4586_v20 = vsel %vm897_vm11, %v4579_v12, 0 }
 0xedf   :  { %v4211_v13 = vsel %vm897_vm11, %v4204_v39, 0  ;;  %v4420_v39 = vand.u32 4294901760, %v4419_v1  ;;  %v4426_v45 = vand.u32 4294901760, %v4425_v60  ;;  %v4618_v33 = vand.u32 4294901760, %v4586_v20 }
 0xee0   :  { %v4233_v47 = vand.u32 4294901760, %v4211_v13 }
 0xee1   :  { %v4427_v23 = vsub.f32 %v4425_v60, %v4426_v45  ;;  %v4619_v59 = vsub.f32 %v4586_v20, %v4618_v33 }
 0xee2   :  { %v4234_v53 = vsub.f32 %v4211_v13, %v4233_v47  ;;  %4272 = vmatmul.f32.vlgmr.msrb.gmra.mxu1 %v4233_v47  ;;  %v4584_v13 = vsel %vm897_vm11, %v4577_v41, 0 }
 0xee3   :  { %4508 = vmatpush.msrb.mxu1 %v7512_v44  ;;  %v4428_v63 = vand.u32 4294901760, %v4427_v23  ;;  %v4610_v11 = vand.u32 4294901760, %v4584_v13  ;;  %v4620_v49 = vand.u32 4294901760, %v4619_v59 }
 0xee4   :  { %v4235_v40 = vand.u32 4294901760, %v4234_v53  ;;  %v4207_v56 = vpop.f32.mrf.mxu3  ;;  %4300 = vmatmul.f32.vlgmr.msrb.gmra.mxu2 %v4234_v53 }
 0xee5   :  { %v4208_v42 = vadd.f32 %v4207_v56, %v4181_v55  ;;  %4540 = vmatpush.msrb.mxu2 %v7520_v57  ;;  %v4621_v55 = vsub.f32 %v4619_v59, %v4620_v49 }
 0xee6   :  { %v4236_v29 = vsub.f32 %v4234_v53, %v4235_v40  ;;  %4329 = vmatmul.f32.vlgmr.msrb.gmra.mxu3 %v4235_v40 }
 0xee7   :  { %v4214_v7 = vsel %vm897_vm11, %v4208_v42, 0  ;;  %4566 = vmatpush.msrb.mxu3 %v7512_v44  ;;  %v4622_v40 = vand.u32 4294901760, %v4621_v55 }
 0xee8   :  { %v4237_v36 = vand.u32 4294901760, %v4236_v29  ;;  %v4241_v58 = vand.u32 4294901760, %v4214_v7 }
 0xeea   :  { %4238 = vmatmul.f32.vlgmr.msrb.gmra.mxu0 %v4237_v36  ;;  %4276 = vmatmul.f32.gmra.mxu1 %v4241_v58  ;;  %v4242_v57 = vsub.f32 %v4214_v7, %v4241_v58 }
 0xeeb   :  { %4480 = vmatpush.msrb.mxu0 %v7517_v8  ;;  %v4651_v8 = vand.u32 4294901760, %v4650_v50 }
 0xeec   :  { %4305 = vmatmul.f32.gmra.mxu2 %v4242_v57  ;;  %v4243_v48 = vand.u32 4294901760, %v4242_v57 }
 0xeee   :  { %4335 = vmatmul.f32.gmra.mxu3 %v4243_v48  ;;  %v4244_v44 = vsub.f32 %v4242_v57, %v4243_v48 }
 0xef0   :  { %v4245_v2 = vand.u32 4294901760, %v4244_v44 }
 0xef2   :  { %4246 = vmatmul.f32.gmra.mxu0 %v4245_v2  ;;  %4385 = vmatmul.f32.vlgmr.msra.gmra.mxu1 %v4233_v47 }
 0xef3   :  { %4646 = vmatpush.xpose.msra.mxu1 %v4645_v9 }
 0xef4   :  { %4421 = vmatmul.f32.vlgmr.msra.gmra.mxu2 %v4420_v39 }
 0xef5   :  { %4678 = vmatpush.xpose.msra.mxu2 %v7952_v21 }
 0xef6   :  { %4455 = vmatmul.f32.vlgmr.msra.gmra.mxu3 %v7946_v52 }
 0xef7   :  { %4652 = vmatpush.xpose.msra.mxu1 %v4651_v8  ;;  %4708 = vmatpush.xpose.msra.mxu3 %v7944_v28 }
 0xef9   :  { %4681 = vmatpush.xpose.msra.mxu2 %v4648_v18 }
 0xefa   :  { %4359 = vmatmul.f32.vlgmr.msra.gmra.mxu0 %v4233_v47  ;;  %4389 = vmatmul.f32.gmra.mxu1 %v4241_v58  ;;  %v4611_v47 = vsub.f32 %v4584_v13, %v4610_v11 }
 0xefb   :  { %4607 = vmatpush.xpose.msra.mxu0 %v7944_v28  ;;  %4710 = vmatpush.xpose.msra.mxu3 %v4608_v38 }
 0xefc   :  { %4429 = vmatmul.f32.gmra.mxu2 %v4428_v63 }
 0xefe   :  { %4459 = vmatmul.f32.gmra.mxu3 %v4424_v34 }
 0xeff   :  { %4609 = vmatpush.xpose.msra.mxu0 %v4608_v38 }
 0xf02   :  { %4363 = vmatmul.f32.gmra.mxu0 %v4241_v58  ;;  %4512 = vmatmul.f32.vlgmr.msrb.gmra.mxu1 %v4418_v30 }
 0xf03   :  { %4770 = vmatpush.xpose.msrb.mxu1 %v7944_v28  ;;  %v4612_v28 = vand.u32 4294901760, %v4611_v47 }
 0xf04   :  { %4542 = vmatmul.f32.vlgmr.msrb.gmra.mxu2 %v7946_v52 }
 0xf05   :  { %v4613_v53 = vsub.f32 %v4611_v47, %v4612_v28 }
 0xf06   :  { %4568 = vmatmul.f32.vlgmr.msrb.gmra.mxu3 %v7946_v52 }
 0xf07   :  { %4772 = vmatpush.xpose.msrb.mxu1 %v4608_v38  ;;  %v4614_v52 = vand.u32 4294901760, %v4613_v53 }
 0xf0a   :  { %4483 = vmatmul.f32.vlgmr.msrb.gmra.mxu0 %v4417_v26  ;;  %4518 = vmatmul.f32.gmra.mxu1 %v4426_v45 }
 0xf0b   :  { %4741 = vmatpush.xpose.msrb.mxu0 %v4643_v22 }
 0xf0c   :  { %4546 = vmatmul.f32.gmra.mxu2 %v4424_v34 }
 0xf0e   :  { %4572 = vmatmul.f32.gmra.mxu3 %v4424_v34 }
 0xf0f   :  { %4745 = vmatpush.xpose.msrb.mxu0 %v4649_v25 }
 0xf12   :  { %4488 = vmatmul.f32.gmra.mxu0 %v4425_v60  ;;  %4654 = vmatmul.f32.vlgmr.msra.gmra.mxu1 %v4610_v11 }
 0xf14   :  { %4684 = vmatmul.f32.vlgmr.msra.gmra.mxu2 %v4611_v47 }
 0xf16   :  { %4714 = vmatmul.f32.vlgmr.msra.gmra.mxu3 %v4612_v28 }
 0xf1a   :  { %4615 = vmatmul.f32.vlgmr.msra.gmra.mxu0 %v4614_v52  ;;  %4658 = vmatmul.f32.gmra.mxu1 %v4618_v33 }
 0xf1c   :  { %4689 = vmatmul.f32.gmra.mxu2 %v4619_v59 }
 0xf1e   :  { %4720 = vmatmul.f32.gmra.mxu3 %v4620_v49 }
 0xf22   :  { %4623 = vmatmul.f32.gmra.mxu0 %v4622_v40  ;;  %4774 = vmatmul.f32.vlgmr.msrb.gmra.mxu1 %v4610_v11 }
 0xf2a   :  { %4747 = vmatmul.f32.vlgmr.msrb.gmra.mxu0 %v4610_v11  ;;  %4778 = vmatmul.f32.gmra.mxu1 %v4618_v33 }
 0xf32   :  { %4751 = vmatmul.f32.gmra.mxu0 %v4618_v33 }
 0xf5f   :  { %v7971_v56 = vpop.f32.mrf.mxu1 }
 0xf67   :  { %v7973_v21 = vpop.f32.mrf.mxu0  ;;  %v7975_v38 = vpop.f32.mrf.mxu1 }
 0xf68   :  { %v7977_v42 = vpop.f32.mrf.mxu2 }
 0xf69   :  { %v7979_v26 = vpop.f32.mrf.mxu3 }
 0xf6f   :  { %v7981_v29 = vpop.f32.mrf.mxu0  ;;  %v7983_v31 = vpop.f32.mrf.mxu1 }
 0xf70   :  { %v7985_v7 = vpop.f32.mrf.mxu2 }
 0xf71   :  { %v7987_v36 = vpop.f32.mrf.mxu3 }
 0xf77   :  { %v7989_v58 = vpop.f32.mrf.mxu0  ;;  %v7991_v22 = vpop.f32.mrf.mxu1 }
 0xf78   :  { %v7993_v18 = vpop.f32.mrf.mxu2 }
 0xf79   :  { %v7995_v30 = vpop.f32.mrf.mxu3 }
 0xf7f   :  { %v7997_v34 = vpop.f32.mrf.mxu0  ;;  %v7999_v57 = vpop.f32.mrf.mxu1 }
 0xf80   :  { %v8001_v48 = vpop.f32.mrf.mxu2 }
 0xf81   :  { %v8003_v17 = vpop.f32.mrf.mxu3 }
 0xf87   :  { %v8005_v25 = vpop.f32.mrf.mxu0  ;;  %v8007_v1 = vpop.f32.mrf.mxu1 }
 0xf88   :  { %8542 = vst [vmem:[#allocation59_spill] sm:$0xff] %v8007_v1  ;;  %v8009_v60 = vpop.f32.mrf.mxu2 }
 0xf89   :  { %8543 = vst [vmem:[#allocation60_spill] sm:$0xff] %v8009_v60  ;;  %v8011_v44 = vpop.f32.mrf.mxu3 }
 0xf8a   :  { %8544 = vst [vmem:[#allocation61_spill] sm:$0xff] %v8011_v44 }
 0xf8f   :  { %v8013_v2 = vpop.f32.mrf.mxu0  ;;  %v4655_v9 = vpop.f32.mrf.mxu1 }
 0xf90   :  { %8545 = vst [vmem:[#allocation62_spill] sm:$0xff] %v8013_v2  ;;  %v8015_v50 = vpop.f32.mrf.mxu2 }
 0xf91   :  { %8546 = vst [vmem:[#allocation63_spill] sm:$0xff] %v8015_v50  ;;  %v8017_v45 = vpop.f32.mrf.mxu3 }
 0xf92   :  { %8547 = vst [vmem:[#allocation64_spill] sm:$0xff] %v8017_v45 }
 0xf97   :  { %v4616_v39 = vpop.f32.mrf.mxu0  ;;  %v4659_v8 = vpop.f32.mrf.mxu1 }
 0xf98   :  { %v4656_v23 = vadd.f32 %v4655_v9, %v4616_v39  ;;  %v4685_v63 = vpop.f32.mrf.mxu2 }
 0xf99   :  { %v4715_v11 = vpop.f32.mrf.mxu3 }
 0xf9a   :  { %v4686_v13 = vadd.f32 %v4685_v63, %v4656_v23 }
 0xf9c   :  { %v4716_v12 = vadd.f32 %v4715_v11, %v4686_v13 }
 0xf9f   :  { %v4624_v41 = vpop.f32.mrf.mxu0  ;;  %v4775_v20 = vpop.f32.mrf.mxu1 }
 0xfa0   :  { %v4660_v47 = vadd.f32 %v4659_v8, %v4624_v41  ;;  %v4690_v59 = vpop.f32.mrf.mxu2 }
 0xfa1   :  { %v4721_v55 = vpop.f32.mrf.mxu3 }
 0xfa2   :  { %v4691_v53 = vadd.f32 %v4690_v59, %v4660_v47 }
 0xfa4   :  { %v4722_v40 = vadd.f32 %v4721_v55, %v4691_v53 }
 0xfa7   :  { %v4748_v33 = vpop.f32.mrf.mxu0  ;;  %v4779_v9 = vpop.f32.mrf.mxu1 }
 0xfa8   :  { %v4749_v28 = vadd.f32 %v4748_v33, %v4716_v12 }
 0xfaa   :  { %v4776_v52 = vadd.f32 %v4775_v20, %v4749_v28 }
 0xfac   :  { %v4782_v49 = vsel %vm1100_vm12, %v4776_v52, -inf }
 0xfad   :  { %4783 = vmax.xlane.f32.xlu2 %v4782_v49 }
 0xfaf   :  { %v4752_v45 = vpop.f32.mrf.mxu0 }
 0xfb0   :  { %v4753_v50 = vadd.f32 %v4752_v45, %v4722_v40 }
 0xfb2   :  { %v4780_v39 = vadd.f32 %v4779_v9, %v4753_v50 }
 0xfb4   :  { %v4785_v23 = vsel %vm1100_vm12, %v4780_v39, -inf }
 0xfb5   :  { %4786 = vmax.xlane.f32.xlu0 %v4785_v23 }
 0xfc9   :  { %4804 = vrot.lane.b32.xlu0 %v7726_v51, %s6944_s16 }
 0xfd1   :  { %5195 = vrot.lane.b32.xlu0 %v7726_v51, %s6945_s17 }
0x1020   :  { %v4784_v8 = vpop.xlane.xlu2 %4783 }
0x1021   :  { %v4788_v63 = vsub.f32 %v4776_v52, %v4784_v8 }
0x1023   :  { %v4790_v41 = vmul.f32 1.442695, %v4788_v63 }
0x1025   :  { %6770 = vpow2.f32 %v4790_v41 }
0x1028   :  { %v4787_v13 = vpop.xlane.xlu0 %4786 }
0x1029   :  { %v4789_v11 = vsub.f32 %v4780_v39, %v4787_v13 }
0x102b   :  { %v6771_v12 = vpop.eup %6770  ;;  %v4792_v47 = vmul.f32 1.442695, %v4789_v11 }
0x102c   :  { %v4794_v45 = vsel %vm1100_vm12, %v6771_v12, 0.0 }
0x102d   :  { %6772 = vpow2.f32 %v4792_v47  ;;  %4795 = vadd.xlane.f32.xlu1 %v4794_v45 }
0x1033   :  { %v6773_v50 = vpop.eup %6772 }
0x1034   :  { %v4797_v20 = vsel %vm1100_vm12, %v6773_v50, 0.0 }
0x1035   :  { %4798 = vadd.xlane.f32.xlu2 %v4797_v20 }
0x103b   :  { %v4805_v59 = vpop.permute.xlu0 %4804 }
0x103c   :  { %v4832_v55 = vand.u32 4294901760, %v4805_v59 }
0x103e   :  { %v4872_v23 = vsub.f32 %v4805_v59, %v4832_v55 }
0x1040   :  { %v4873_v45 = vand.u32 4294901760, %v4872_v23 }
0x1046   :  { %5197 = vrot.lane.b32.xlu1 %v7735_v32, %s6945_s17 }
0x104d   :  { %4806 = vrot.lane.b32.xlu2 %v7735_v32, %s6944_s16 }
0x104e   :  { %5193 = vrot.lane.b32.xlu1 %v7746_v14, %s6945_s17 }
0x1055   :  { %5191 = vrot.lane.b32.xlu2 %v7798_v35, %s6945_s17 }
0x10a0   :  { %v4796_v33 = vpop.xlane.xlu1 %4795 }
0x10a1   :  { %6774 = vrcp.f32 %v4796_v33 }
0x10a7   :  { %v6775_v28 = vpop.eup %6774 }
0x10a8   :  { %v4802_v53 = vmul.f32 %v6775_v28, %v6771_v12  ;;  %v4799_v52 = vpop.xlane.xlu2 %4798 }
0x10a9   :  { %6776 = vrcp.f32 %v4799_v52 }
0x10aa   :  { %v4811_v49 = vsel %vm1100_vm12, %v4802_v53, 0 }
0x10ab   :  { %v8036_v40 = vand.u32 4294901760, %v4811_v49 }
0x10ad   :  { %v4835_v9 = vsub.f32 %v4811_v49, %v8036_v40 }
0x10af   :  { %v6777_v39 = vpop.eup %6776  ;;  %v4836_v14 = vand.u32 4294901760, %v4835_v9 }
0x10b0   :  { %v4803_v8 = vmul.f32 %v6777_v39, %v6773_v50  ;;  %v4807_v63 = vpop.permute.xlu2 %4806  ;;  %v4874_v50 = vsub.f32 %v4872_v23, %v4873_v45  ;;  %v8548_v39 = vld [vmem:[#allocation44_spill] sm:$0xff] }
0x10b1   :  { %v4830_v35 = vand.u32 4294901760, %v4807_v63  ;;  %v4837_v41 = vsub.f32 %v4835_v9, %v4836_v14 }
0x10b2   :  { %v4814_v13 = vsel %vm1100_vm12, %v4803_v8, 0 }
0x10b3   :  { %v4842_v11 = vand.u32 4294901760, %v4814_v13  ;;  %v4866_v12 = vsub.f32 %v4807_v63, %v4830_v35  ;;  %4831 = vmatpush.msrb.mxu2 %v4830_v35  ;;  %4932 = vmatpush.msra.mxu1 %v4830_v35  ;;  %v4838_v47 = vand.u32 4294901760, %v4837_v41  ;;  %v5196_v63 = vpop.permute.xlu0 %5195 }
0x10b5   :  { %v4867_v20 = vand.u32 4294901760, %v4866_v12  ;;  %4833 = vmatpush.msrb.mxu2 %v4832_v55  ;;  %4902 = vmatpush.msra.mxu0 %v4866_v12  ;;  %v4843_v33 = vsub.f32 %v4814_v13, %v4842_v11  ;;  %v8550_v13 = vld [vmem:[#allocation46_spill] sm:$0xff] }
0x10b6   :  { %4934 = vmatpush.msra.mxu1 %v4832_v55  ;;  %4839 = vmatmul.f32.vlgmr.msrb.gmra.mxu2 %v4838_v47 }
0x10b7   :  { %v4868_v28 = vsub.f32 %v4866_v12, %v4867_v20  ;;  %4938 = vmatmul.f32.vlgmr.msra.gmra.mxu1 %v4836_v14  ;;  %4905 = vmatpush.msra.mxu0 %v4872_v23  ;;  %v4844_v59 = vand.u32 4294901760, %v4843_v33  ;;  %v4875_v14 = vand.u32 4294901760, %v4874_v50  ;;  %v8549_v23 = vld [vmem:[#allocation45_spill] sm:$0xff] }
0x10b8   :  { %4965 = vmatpush.msra.mxu2 %v4867_v20  ;;  %v5198_v53 = vpop.permute.xlu1 %5197  ;;  %4908 = vmatmul.f32.vlgmr.msra.gmra.mxu0 %v4835_v9 }
0x10b9   :  { %v4869_v52 = vand.u32 4294901760, %v4868_v28  ;;  %v4845_v49 = vsub.f32 %v4843_v33, %v4844_v59  ;;  %5066 = vmatpush.msrb.mxu1 %v7663_v15  ;;  %5028 = vmatpush.msrb.mxu0 %v8548_v39  ;;  %v5205_v8 = vsel %vm897_vm11, %v5198_v53, 0  ;;  %v5203_v15 = vsel %vm897_vm11, %v5196_v63, 0 }
0x10ba   :  { %4969 = vmatpush.msra.mxu2 %v4873_v45  ;;  %v8046_v9 = vand.u32 4294901760, %v5205_v8  ;;  %v8050_v12 = vand.u32 4294901760, %v5203_v15 }
0x10bb   :  { %5179 = vmatpush.msra.mxu1 %v8548_v39  ;;  %4870 = vmatpush.msrb.mxu3 %v4869_v52  ;;  %v4846_v41 = vand.u32 4294901760, %v4845_v49 }
0x10bc   :  { %5093 = vmatpush.msrb.mxu2 %v8549_v23  ;;  %5153 = vmatpush.msra.mxu0 %v8550_v13  ;;  %v8053_v47 = vsub.f32 %v5205_v8, %v8046_v9  ;;  %v8057_v45 = vsub.f32 %v5203_v15, %v8050_v12  ;;  %v5192_v15 = vpop.permute.xlu2 %5191 }
0x10bd   :  { %4876 = vmatpush.msrb.mxu3 %v4875_v14 }
0x10be   :  { %4847 = vmatmul.f32.gmra.mxu2 %v4846_v41  ;;  %4878 = vmatmul.f32.vlgmr.msrb.gmra.mxu3 %v8036_v40  ;;  %v5258_v20 = vand.u32 4294901760, %v8053_v47 }
0x10bf   :  { %4944 = vmatmul.f32.gmra.mxu1 %v4844_v59  ;;  %4994 = vmatpush.msra.mxu3 %v4830_v35  ;;  %v5264_v35 = vand.u32 4294901760, %v8057_v45 }
0x10c0   :  { %4913 = vmatmul.f32.gmra.mxu0 %v4843_v33  ;;  %v5259_v33 = vsub.f32 %v8053_v47, %v5258_v20 }
0x10c1   :  { %4996 = vmatpush.msra.mxu3 %v4832_v55  ;;  %v5265_v55 = vsub.f32 %v8057_v45, %v5264_v35 }
0x10c2   :  { %v5260_v28 = vand.u32 4294901760, %v5259_v33 }
0x10c3   :  { %5121 = vmatpush.msrb.mxu3 %v8548_v39  ;;  %v5266_v50 = vand.u32 4294901760, %v5265_v55  ;;  %v5199_v55 = vsel %vm897_vm11, %v5192_v15, 0 }
0x10c4   :  { %v5225_v60 = vand.u32 4294901760, %v5199_v55 }
0x10c6   :  { %4882 = vmatmul.f32.gmra.mxu3 %v4842_v11  ;;  %4971 = vmatmul.f32.vlgmr.msra.gmra.mxu2 %v8036_v40 }
0x10c7   :  { %5222 = vmatpush.xpose.msra.mxu2 %v8046_v9 }
0x10cb   :  { %5224 = vmatpush.xpose.msra.mxu2 %v8050_v12 }
0x10ce   :  { %4975 = vmatmul.f32.gmra.mxu2 %v4842_v11  ;;  %4998 = vmatmul.f32.vlgmr.msra.gmra.mxu3 %v8036_v40 }
0x10cf   :  { %5261 = vmatpush.xpose.msra.mxu3 %v5260_v28 }
0x10d3   :  { %5267 = vmatpush.xpose.msra.mxu3 %v5266_v50 }
0x10d6   :  { %5002 = vmatmul.f32.gmra.mxu3 %v4842_v11 }
0x1134   :  { %v4939_v14 = vpop.f32.mrf.mxu1 }
0x1135   :  { %v4909_v39 = vpop.f32.mrf.mxu0 }
0x1139   :  { %v4840_v59 = vpop.f32.mrf.mxu2 }
0x113c   :  { %v4945_v50 = vpop.f32.mrf.mxu1 }
0x113d   :  { %v4914_v1 = vpop.f32.mrf.mxu0 }
0x1141   :  { %v4848_v53 = vpop.f32.mrf.mxu2  ;;  %v4879_v52 = vpop.f32.mrf.mxu3 }
0x1142   :  { %v4880_v49 = vadd.f32 %v4879_v52, %v4840_v59 }
0x1144   :  { %v4910_v63 = vadd.f32 %v4909_v39, %v4880_v49 }
0x1146   :  { %v4940_v13 = vadd.f32 %v4939_v14, %v4910_v63 }
0x1149   :  { %v4883_v8 = vpop.f32.mrf.mxu3  ;;  %v4972_v41 = vpop.f32.mrf.mxu2 }
0x114a   :  { %v4884_v23 = vadd.f32 %v4883_v8, %v4848_v53  ;;  %v4973_v33 = vadd.f32 %v4972_v41, %v4940_v13  ;;  %v5194_v53 = vpop.permute.xlu1 %5193 }
0x114b   :  { %v5201_v41 = vsel %vm897_vm11, %v5194_v53, 0 }
0x114c   :  { %v4915_v40 = vadd.f32 %v4914_v1, %v4884_v23 }
0x114e   :  { %v4946_v52 = vadd.f32 %v4945_v50, %v4915_v40 }
0x1151   :  { %v4999_v44 = vpop.f32.mrf.mxu3  ;;  %v4976_v2 = vpop.f32.mrf.mxu2 }
0x1152   :  { %v5000_v28 = vadd.f32 %v4999_v44, %v4973_v33  ;;  %v4977_v39 = vadd.f32 %v4976_v2, %v4946_v52  ;;  %v5226_v44 = vsub.f32 %v5199_v55, %v5225_v60  ;;  %v5233_v33 = vand.u32 4294901760, %v5201_v41 }
0x1154   :  { %v5007_v11 = vsel %vm897_vm11, %v5000_v28, 0  ;;  %v5227_v15 = vand.u32 4294901760, %v5226_v44  ;;  %v5234_v55 = vsub.f32 %v5201_v41, %v5233_v33 }
0x1155   :  { %v5029_v59 = vand.u32 4294901760, %v5007_v11 }
0x1156   :  { %v5228_v28 = vsub.f32 %v5226_v44, %v5227_v15 }
0x1157   :  { %v5030_v49 = vsub.f32 %v5007_v11, %v5029_v59  ;;  %5068 = vmatmul.f32.vlgmr.msrb.gmra.mxu1 %v5029_v59 }
0x1158   :  { %5323 = vmatpush.xpose.msrb.mxu1 %v8046_v9  ;;  %v5229_v50 = vand.u32 4294901760, %v5228_v28 }
0x1159   :  { %v5031_v8 = vand.u32 4294901760, %v5030_v49  ;;  %v5003_v63 = vpop.f32.mrf.mxu3  ;;  %5096 = vmatmul.f32.vlgmr.msrb.gmra.mxu2 %v5030_v49 }
0x115a   :  { %v5004_v1 = vadd.f32 %v5003_v63, %v4977_v39  ;;  %5356 = vmatpush.xpose.msrb.mxu2 %v5258_v20 }
0x115b   :  { %v5032_v14 = vsub.f32 %v5030_v49, %v5031_v8  ;;  %5125 = vmatmul.f32.vlgmr.msrb.gmra.mxu3 %v5031_v8 }
0x115c   :  { %v5010_v23 = vsel %vm897_vm11, %v5004_v1, 0  ;;  %5325 = vmatpush.xpose.msrb.mxu1 %v8050_v12  ;;  %5385 = vmatpush.xpose.msrb.mxu3 %v8046_v9 }
0x115d   :  { %v5033_v2 = vand.u32 4294901760, %v5032_v14  ;;  %v5037_v13 = vand.u32 4294901760, %v5010_v23 }
0x115e   :  { %5360 = vmatpush.xpose.msrb.mxu2 %v5264_v35  ;;  %v5235_v35 = vand.u32 4294901760, %v5234_v55 }
0x115f   :  { %5034 = vmatmul.f32.vlgmr.msrb.gmra.mxu0 %v5033_v2  ;;  %5072 = vmatmul.f32.gmra.mxu1 %v5037_v13  ;;  %v5038_v40 = vsub.f32 %v5010_v23, %v5037_v13 }
0x1160   :  { %5293 = vmatpush.xpose.msrb.mxu0 %v8053_v47  ;;  %5387 = vmatpush.xpose.msrb.mxu3 %v8050_v12  ;;  %v5236_v52 = vsub.f32 %v5234_v55, %v5235_v35 }
0x1161   :  { %5101 = vmatmul.f32.gmra.mxu2 %v5038_v40  ;;  %v5039_v20 = vand.u32 4294901760, %v5038_v40 }
0x1162   :  { %v5237_v47 = vand.u32 4294901760, %v5236_v52 }
0x1163   :  { %5131 = vmatmul.f32.gmra.mxu3 %v5039_v20  ;;  %v5040_v11 = vsub.f32 %v5038_v40, %v5039_v20 }
0x1164   :  { %5296 = vmatpush.xpose.msrb.mxu0 %v8057_v45 }
0x1165   :  { %v5041_v9 = vand.u32 4294901760, %v5040_v11 }
0x1167   :  { %5042 = vmatmul.f32.gmra.mxu0 %v5041_v9  ;;  %5181 = vmatmul.f32.vlgmr.msra.gmra.mxu1 %v5029_v59 }
0x1169   :  { %5230 = vmatmul.f32.vlgmr.msra.gmra.mxu2 %v5229_v50 }
0x116b   :  { %5269 = vmatmul.f32.vlgmr.msra.gmra.mxu3 %v5225_v60 }
0x116f   :  { %5155 = vmatmul.f32.vlgmr.msra.gmra.mxu0 %v5029_v59  ;;  %5185 = vmatmul.f32.gmra.mxu1 %v5037_v13 }
0x1171   :  { %5238 = vmatmul.f32.gmra.mxu2 %v5237_v47 }
0x1173   :  { %5273 = vmatmul.f32.gmra.mxu3 %v5233_v33 }
0x1177   :  { %5159 = vmatmul.f32.gmra.mxu0 %v5037_v13  ;;  %5329 = vmatmul.f32.vlgmr.msrb.gmra.mxu1 %v5227_v15 }
0x1179   :  { %5362 = vmatmul.f32.vlgmr.msrb.gmra.mxu2 %v5225_v60 }
0x117b   :  { %5389 = vmatmul.f32.vlgmr.msrb.gmra.mxu3 %v5225_v60 }
0x117f   :  { %5299 = vmatmul.f32.vlgmr.msrb.gmra.mxu0 %v5226_v44  ;;  %5335 = vmatmul.f32.gmra.mxu1 %v5235_v35 }
0x1181   :  { %5366 = vmatmul.f32.gmra.mxu2 %v5233_v33 }
0x1183   :  { %5393 = vmatmul.f32.gmra.mxu3 %v5233_v33 }
0x1187   :  { %5304 = vmatmul.f32.gmra.mxu0 %v5234_v55 }
0x11d4   :  { %v5069_v12 = vpop.f32.mrf.mxu1 }
0x11dc   :  { %v5035_v45 = vpop.f32.mrf.mxu0  ;;  %v5097_v39 = vpop.f32.mrf.mxu2 }
0x11dd   :  { %v5070_v49 = vadd.f32 %v5069_v12, %v5035_v45  ;;  %v5073_v53 = vpop.f32.mrf.mxu1 }
0x11de   :  { %v5126_v8 = vpop.f32.mrf.mxu3 }
0x11df   :  { %v5098_v59 = vadd.f32 %v5097_v39, %v5070_v49 }
0x11e1   :  { %v5127_v63 = vadd.f32 %v5126_v8, %v5098_v59 }
0x11e4   :  { %v5043_v1 = vpop.f32.mrf.mxu0  ;;  %v5102_v41 = vpop.f32.mrf.mxu2 }
0x11e5   :  { %v5074_v14 = vadd.f32 %v5073_v53, %v5043_v1  ;;  %v5182_v13 = vpop.f32.mrf.mxu1 }
0x11e6   :  { %v5132_v23 = vpop.f32.mrf.mxu3 }
0x11e7   :  { %v5103_v2 = vadd.f32 %v5102_v41, %v5074_v14 }
0x11e9   :  { %v5133_v60 = vadd.f32 %v5132_v23, %v5103_v2 }
0x11ec   :  { %v5156_v44 = vpop.f32.mrf.mxu0  ;;  %v5231_v40 = vpop.f32.mrf.mxu2 }
0x11ed   :  { %v5157_v15 = vadd.f32 %v5156_v44, %v5127_v63  ;;  %v5186_v28 = vpop.f32.mrf.mxu1 }
0x11ee   :  { %v5270_v33 = vpop.f32.mrf.mxu3 }
0x11ef   :  { %v8077_v20 = vadd.f32 %v5182_v13, %v5157_v15  ;;  %v5271_v52 = vadd.f32 %v5270_v33, %v5231_v40  ;;  %v8551_v33 = vld [vmem:[#allocation21_spill] sm:$0xff] }
0x11f4   :  { %v5160_v55 = vpop.f32.mrf.mxu0  ;;  %v5239_v9 = vpop.f32.mrf.mxu2 }
0x11f5   :  { %v5161_v11 = vadd.f32 %v5160_v55, %v5133_v60  ;;  %v5330_v47 = vpop.f32.mrf.mxu1 }
0x11f6   :  { %v5274_v50 = vpop.f32.mrf.mxu3 }
0x11f7   :  { %v8079_v35 = vadd.f32 %v5186_v28, %v5161_v11  ;;  %v5275_v59 = vadd.f32 %v5274_v50, %v5239_v9  ;;  %v8552_v28 = vld [vmem:[#allocation20_spill] sm:$0xff]  ;;  %v8553_v11 = vld [vmem:[#allocation23_spill] sm:$0xff] }
0x11f8   :  { %v1819_v55 = vadd.f32 %v8552_v28, %v8551_v33  ;;  %v8554_v50 = vld [vmem:[#allocation24_spill] sm:$0xff]  ;;  %v8564_v33 = vld [vmem:[#allocation30_spill] sm:$0xff] }
0x11fa   :  { %v1847_v9 = vadd.f32 %v8553_v11, %v1819_v55  ;;  %v3230_v55 = vadd.f32 %v7812_v61, %v7818_v27  ;;  %v8565_v11 = vld [vmem:[#allocation37_spill] sm:$0xff]  ;;  %v8568_v61 = vld [vmem:[#allocation36_spill] sm:$0xff] }
0x11fc   :  { %v5300_v12 = vpop.f32.mrf.mxu0  ;;  %v5363_v49 = vpop.f32.mrf.mxu2 }
0x11fd   :  { %v5301_v45 = vadd.f32 %v5300_v12, %v5271_v52  ;;  %v5336_v23 = vpop.f32.mrf.mxu1  ;;  %v1876_v52 = vadd.f32 %v8554_v50, %v1847_v9  ;;  %v8556_v12 = vld [vmem:[#allocation22_spill] sm:$0xff] }
0x11fe   :  { %v5390_v53 = vpop.f32.mrf.mxu3 }
0x11ff   :  { %v5331_v39 = vadd.f32 %v5330_v47, %v5301_v45  ;;  %v8555_v47 = vld [vmem:[#allocation25_spill] sm:$0xff] }
0x1200   :  { %v1823_v45 = vadd.f32 %v8556_v12, %v8555_v47  ;;  %v8566_v12 = vld [vmem:[#allocation35_spill] sm:$0xff] }
0x1201   :  { %v5364_v8 = vadd.f32 %v5363_v49, %v5331_v39  ;;  %v8557_v49 = vld [vmem:[#allocation29_spill] sm:$0xff] }
0x1202   :  { %v1906_v39 = vadd.f32 %v8557_v49, %v1876_v52  ;;  %v3258_v49 = vadd.f32 %v7814_v19, %v3230_v55  ;;  %v8576_v55 = vld [vmem:[#allocation48_spill] sm:$0xff] }
0x1203   :  { %v5391_v63 = vadd.f32 %v5390_v53, %v5364_v8  ;;  %v8558_v53 = vld [vmem:[#allocation27_spill] sm:$0xff] }
0x1204   :  { %v5305_v1 = vpop.f32.mrf.mxu0  ;;  %v5367_v13 = vpop.f32.mrf.mxu2  ;;  %v1852_v8 = vadd.f32 %v8558_v53, %v1823_v45 }
0x1205   :  { %v5306_v14 = vadd.f32 %v5305_v1, %v5275_v59  ;;  %v5397_v41 = vsel %vm1100_vm12, %v5391_v63, -inf  ;;  %v8559_v59 = vld [vmem:[#allocation26_spill] sm:$0xff] }
0x1206   :  { %5398 = vmax.xlane.f32.xlu0 %v5397_v41  ;;  %v5394_v44 = vpop.f32.mrf.mxu3  ;;  %v1932_v1 = vadd.f32 %v8559_v59, %v1906_v39  ;;  %v8567_v39 = vld [vmem:[#allocation34_spill] sm:$0xff] }
0x1207   :  { %v5337_v2 = vadd.f32 %v5336_v23, %v5306_v14  ;;  %v8560_v14 = vld [vmem:[#allocation28_spill] sm:$0xff]  ;;  %v8561_v23 = vld [vmem:[#allocation31_spill] sm:$0xff]  ;;  %v8569_v59 = vld [vmem:[#allocation50_spill] sm:$0xff] }
0x1208   :  { %v1882_v41 = vadd.f32 %v8560_v14, %v1852_v8  ;;  %v2619_v8 = vadd.f32 %v7683_v16, %v7687_v10  ;;  %v8570_v14 = vld [vmem:[#allocation39_spill] sm:$0xff]  ;;  %v8573_v10 = vld [vmem:[#allocation49_spill] sm:$0xff] }
0x1209   :  { %v5368_v60 = vadd.f32 %v5367_v13, %v5337_v2  ;;  %v8562_v2 = vld [vmem:[#allocation33_spill] sm:$0xff] }
0x120a   :  { %v1910_v13 = vadd.f32 %v8562_v2, %v1882_v41  ;;  %v8571_v41 = vld [vmem:[#allocation41_spill] sm:$0xff] }
0x120b   :  { %v5395_v15 = vadd.f32 %v5394_v44, %v5368_v60  ;;  %v2615_v60 = vadd.f32 %v7677_v0, %v7679_v5  ;;  %v8563_v44 = vld [vmem:[#allocation32_spill] sm:$0xff] }
0x120c   :  { %v1936_v28 = vadd.f32 %v8564_v33, %v1910_v13  ;;  %v8574_v33 = vld [vmem:[#allocation40_spill] sm:$0xff] }
0x120d   :  { %v5400_v40 = vsel %vm1100_vm12, %v5395_v15, -inf  ;;  %v2643_v50 = vadd.f32 %v7681_v54, %v2615_v60  ;;  %v3234_v54 = vadd.f32 %v7820_v3, %v7826_v62  ;;  %v8575_v62 = vld [vmem:[#allocation38_spill] sm:$0xff] }
0x120e   :  { %5401 = vmax.xlane.f32.xlu2 %v5400_v40  ;;  %v1976_v45 = vadd.f32 %v8566_v12, %v1936_v28 }
0x120f   :  { %v2672_v5 = vadd.f32 %v7685_v6, %v2643_v50 }
0x1210   :  { %v2006_v27 = vadd.f32 %v8568_v61, %v1976_v45  ;;  %v8578_v45 = vld [vmem:[#allocation42_spill] sm:$0xff] }
0x1226   :  { %5421 = vrot.lane.b32.xlu2 %v7735_v32, %s6946_s18  ;;  %v1968_v32 = vadd.f32 %v8561_v23, %v1932_v1  ;;  %v2702_v1 = vadd.f32 %v8569_v59, %v2672_v5  ;;  %v2035_v23 = vadd.f32 %v8571_v41, %v2006_v27  ;;  %v8580_v27 = vld [vmem:[#allocation51_spill] sm:$0xff]  ;;  %v8583_v41 = vld [vmem:[#allocation57_spill] sm:$0xff] }
0x1228   :  { %v2002_v40 = vadd.f32 %v8563_v44, %v1968_v32  ;;  %v8572_v32 = vld [vmem:[#allocation47_spill] sm:$0xff]  ;;  %v2728_v60 = vadd.f32 %v8573_v10, %v2702_v1  ;;  %v3263_v44 = vadd.f32 %v7822_v4, %v3234_v54  ;;  %v8581_v1 = vld [vmem:[#allocation16_spill] sm:$0xff] }
0x1229   :  { %v2648_v2 = vadd.f32 %v8572_v32, %v2619_v8 }
0x122a   :  { %v2030_v9 = vadd.f32 %v8565_v11, %v2002_v40  ;;  %v3293_v12 = vadd.f32 %v7824_v46, %v3263_v44 }
0x122b   :  { %v2678_v11 = vadd.f32 %v8576_v55, %v2648_v2 }
0x122c   :  { %v2059_v53 = vadd.f32 %v8567_v39, %v2030_v9 }
0x122e   :  { %v2089_v19 = vadd.f32 %v8570_v14, %v2059_v53  ;;  %v8579_v53 = vld [vmem:[#allocation58_spill] sm:$0xff]  ;;  %v8582_v14 = vld [vmem:[#allocation43_spill] sm:$0xff] }
0x1230   :  { %v2115_v28 = vadd.f32 %v8574_v33, %v2089_v19 }
0x1279   :  { %v5399_v52 = vpop.xlane.xlu0 %5398 }
0x127a   :  { %v5403_v47 = vsub.f32 %v5391_v63, %v5399_v52  ;;  %v3287_v63 = vadd.f32 %v7816_v37, %v3258_v49  ;;  %v2065_v37 = vadd.f32 %v8575_v62, %v2035_v23  ;;  %v2734_v52 = vadd.f32 %v2728_v60, %v2115_v28  ;;  %v8584_v28 = vld [vmem:[#allocation17_spill] sm:$0xff] }
0x127c   :  { %v5405_v0 = vmul.f32 1.442695, %v5403_v47  ;;  %v3317_v6 = vadd.f32 %v7830_v43, %v3287_v63  ;;  %v6803_v43 = vld [vmem:[#allocation8] sm:$0x1f]  ;;  %v8577_v47 = vld [vmem:[#allocation52_spill] sm:$0xff]  ;;  %v2093_v49 = vadd.f32 %v8578_v45, %v2065_v37 }
0x127d   :  { %v2706_v4 = vadd.f32 %v8577_v47, %v2678_v11  ;;  %v8133_v8 = vperm.slane %v6803_v43, 3  ;;  %v8137_v61 = vperm.slane %v6803_v43, 1 }
0x127e   :  { %6778 = vpow2.f32 %v5405_v0  ;;  %v3343_v9 = vadd.f32 %v7828_v24, %v3317_v6  ;;  %v3321_v0 = vadd.f32 %v8579_v53, %v3293_v12  ;;  %v2119_v19 = vadd.f32 %v8582_v14, %v2093_v49 }
0x127f   :  { %v2732_v59 = vadd.f32 %v8580_v27, %v2706_v4 }
0x1280   :  { %v3349_v39 = vadd.f32 %v3343_v9, %v2734_v52  ;;  %v3347_v23 = vadd.f32 %v8583_v41, %v3321_v0  ;;  %v8585_v0 = vld [vmem:[#allocation15_spill] sm:$0xff] }
0x1281   :  { %v5402_v13 = vpop.xlane.xlu2 %5401 }
0x1282   :  { %v5404_v16 = vsub.f32 %v5395_v15, %v5402_v13  ;;  %v8127_v15 = vperm.slane %v6803_v43, 0  ;;  %v3352_v2 = vadd.f32 %v8133_v8, %v3349_v39  ;;  %v2735_v13 = vadd.f32 %v2732_v59, %v2119_v19 }
0x1284   :  { %v6779_v40 = vpop.eup %6778  ;;  %v5407_v3 = vmul.f32 1.442695, %v5404_v16  ;;  %v291_v54 = vmul.f32 %v8127_v15, %v8581_v1  ;;  %v3350_v60 = vadd.f32 %v3347_v23, %v2735_v13 }
0x1285   :  { %v5409_v50 = vsel %vm1100_vm12, %v6779_v40, 0.0 }
0x1286   :  { %6780 = vpow2.f32 %v5407_v3  ;;  %5410 = vadd.xlane.f32.xlu1 %v5409_v50  ;;  %v296_v16 = vadd.f32 %v8137_v61, %v291_v54  ;;  %v292_v3 = vmul.f32 %v8127_v15, %v8584_v28  ;;  %v3353_v37 = vadd.f32 %v8133_v8, %v3350_v60  ;;  %v8587_v60 = vld [vmem:[#allocation53_spill] sm:$0xff]  ;;  %v8589_v28 = vld [vmem:[#allocation55_spill] sm:$0xff] }
0x1288   :  { %v5808_v44 = vadd.f32 %v3352_v2, %v296_v16  ;;  %v297_v55 = vadd.f32 %v8137_v61, %v292_v3  ;;  %v8586_v16 = vld [vmem:[#allocation56_spill] sm:$0xff] }
0x1289   :  { %v5422_v5 = vpop.permute.xlu2 %5421 }
0x128a   :  { %v8135_v24 = vand.u32 4294901760, %v5422_v5  ;;  %v5812_v62 = vsel %vm106_vm0, %v5808_v44, 0.0  ;;  %v8155_v11 = vadd.f32 %v3353_v37, %v297_v55 }
0x128c   :  { %v6781_v63 = vpop.eup %6780  ;;  %v5481_v46 = vsub.f32 %v5422_v5, %v8135_v24  ;;  %5446 = vmatpush.msra.mxu0 %v8135_v24  ;;  %5547 = vmatpush.msra.mxu3 %v8135_v24  ;;  %v5815_v9 = vsel %vm106_vm0, %v8155_v11, 0.0 }
0x128d   :  { %v5412_v32 = vsel %vm1100_vm12, %v6781_v63, 0.0 }
0x128e   :  { %v5482_v6 = vand.u32 4294901760, %v5481_v46  ;;  %5413 = vadd.xlane.f32.xlu0 %v5412_v32  ;;  %5517 = vmatpush.msra.mxu2 %v5481_v46 }
0x1290   :  { %v5483_v10 = vsub.f32 %v5481_v46, %v5482_v6 }
0x1292   :  { %v5484_v33 = vand.u32 4294901760, %v5483_v10 }
0x1294   :  { %5485 = vmatpush.msra.mxu1 %v5484_v33 }
0x1296   :  { %5813 = vadd.xlane.f32.xlu0 %v5812_v62 }
0x129e   :  { %5816 = vadd.xlane.f32.xlu0 %v5815_v9 }
0x129f   :  { %5419 = vrot.lane.b32.xlu1 %v7726_v51, %s6946_s18 }
0x12f9   :  { %v5411_v50 = vpop.xlane.xlu1 %5410 }
0x12fa   :  { %6782 = vrcp.f32 %v5411_v50 }
0x1300   :  { %v6783_v43 = vpop.eup %6782 }
0x1301   :  { %v5417_v52 = vmul.f32 %v6783_v43, %v6779_v40  ;;  %v5414_v47 = vpop.xlane.xlu0 %5413 }
0x1302   :  { %6784 = vrcp.f32 %v5414_v47  ;;  %v5910_v47 = vld [vmem:[#allocation7 + $0x10] sm:$0xff] }
0x1303   :  { %v5426_v4 = vsel %vm1100_vm12, %v5417_v52, 0  ;;  %v5911_v52 = vld [vmem:[#allocation7 + $0x18] sm:$0xff] }
0x1304   :  { %v5449_v12 = vand.u32 4294901760, %v5426_v4 }
0x1306   :  { %v5450_v45 = vsub.f32 %v5426_v4, %v5449_v12 }
0x1308   :  { %v6785_v49 = vpop.eup %6784  ;;  %v5451_v59 = vand.u32 4294901760, %v5450_v45 }
0x1309   :  { %v5418_v39 = vmul.f32 %v6785_v49, %v6781_v63  ;;  %v5814_v53 = vpop.xlane.xlu0 %5813 }
0x130a   :  { %v5824_v5 = vmul.f32 %v5814_v53, %v8585_v0  ;;  %v5452_v54 = vsub.f32 %v5450_v45, %v5451_v59  ;;  %v5909_v53 = vld [vmem:[#allocation7 + $0x8] sm:$0xff] }
0x130b   :  { %v5429_v27 = vsel %vm1100_vm12, %v5418_v39, 0 }
0x130c   :  { %v5457_v1 = vand.u32 4294901760, %v5429_v27  ;;  %v8164_v51 = vsub.f32 %v5808_v44, %v5824_v5  ;;  %v5453_v63 = vand.u32 4294901760, %v5452_v54  ;;  %v8588_v44 = vld [vmem:[#allocation54_spill] sm:$0xff] }
0x130e   :  { %v5832_v40 = vmul.f32 %v8164_v51, %v8164_v51  ;;  %v5458_v46 = vsub.f32 %v5429_v27, %v5457_v1  ;;  %v8187_v27 = vand.u32 4294901760, %v5909_v53 }
0x1310   :  { %v5836_v14 = vsel %vm106_vm0, %v5832_v40, 0.0  ;;  %v5459_v23 = vand.u32 4294901760, %v5458_v46 }
0x1311   :  { %v5420_v19 = vpop.permute.xlu1 %5419  ;;  %5837 = vadd.xlane.f32.xlu1 %v5836_v14 }
0x1312   :  { %v5447_v41 = vand.u32 4294901760, %v5420_v19  ;;  %v5460_v13 = vsub.f32 %v5458_v46, %v5459_v23 }
0x1314   :  { %v5487_v32 = vsub.f32 %v5420_v19, %v5447_v41  ;;  %5448 = vmatpush.msra.mxu0 %v5447_v41  ;;  %5549 = vmatpush.msra.mxu3 %v5447_v41  ;;  %v5461_v3 = vand.u32 4294901760, %v5460_v13  ;;  %v8198_v19 = vsub.f32 %v5909_v53, %v8187_v27 }
0x1315   :  { %5454 = vmatmul.f32.vlgmr.msra.gmra.mxu0 %v5453_v63  ;;  %5553 = vmatmul.f32.vlgmr.msra.gmra.mxu3 %v5451_v59 }
0x1316   :  { %5580 = vmatpush.msrb.mxu0 %v5482_v6  ;;  %5520 = vmatpush.msra.mxu2 %v5487_v32  ;;  %v5488_v2 = vand.u32 4294901760, %v5487_v32  ;;  %v6007_v13 = vand.u32 4294901760, %v8198_v19 }
0x1317   :  { %5523 = vmatmul.f32.vlgmr.msra.gmra.mxu2 %v5450_v45  ;;  %5681 = vmatpush.msrb.mxu3 %v8586_v16 }
0x1318   :  { %5584 = vmatpush.msrb.mxu0 %v5488_v2  ;;  %v5489_v10 = vsub.f32 %v5487_v32, %v5488_v2  ;;  %5643 = vmatpush.msrb.mxu2 %v8587_v60 }
0x1319   :  { %5794 = vmatpush.msra.mxu3 %v8587_v60 }
0x131a   :  { %5708 = vmatpush.msra.mxu0 %v8588_v44  ;;  %v5490_v33 = vand.u32 4294901760, %v5489_v10  ;;  %5768 = vmatpush.msra.mxu2 %v8589_v28 }
0x131c   :  { %5491 = vmatpush.msra.mxu1 %v5490_v33  ;;  %v6008_v33 = vsub.f32 %v8198_v19, %v6007_v13 }
0x131d   :  { %5462 = vmatmul.f32.gmra.mxu0 %v5461_v3  ;;  %5493 = vmatmul.f32.vlgmr.msra.gmra.mxu1 %v5449_v12 }
0x131e   :  { %5559 = vmatmul.f32.gmra.mxu3 %v5459_v23  ;;  %5609 = vmatpush.msrb.mxu1 %v8135_v24  ;;  %v8177_v24 = vand.u32 4294901760, %v5911_v52 }
0x131f   :  { %5528 = vmatmul.f32.gmra.mxu2 %v5458_v46 }
0x1320   :  { %5611 = vmatpush.msrb.mxu1 %v5447_v41  ;;  %v8181_v4 = vsub.f32 %v5911_v52, %v8177_v24 }
0x1322   :  { %5736 = vmatpush.msra.mxu1 %v8587_v60  ;;  %v5995_v5 = vand.u32 4294901760, %v8181_v4 }
0x1324   :  { %v5996_v40 = vsub.f32 %v8181_v4, %v5995_v5 }
0x1325   :  { %5497 = vmatmul.f32.gmra.mxu1 %v5457_v1  ;;  %5586 = vmatmul.f32.vlgmr.msrb.gmra.mxu0 %v5449_v12 }
0x1326   :  { %5941 = vmatpush.msrb.mxu0 %v8177_v24  ;;  %v5997_v63 = vand.u32 4294901760, %v5996_v40 }
0x132d   :  { %5590 = vmatmul.f32.gmra.mxu0 %v5457_v1  ;;  %5613 = vmatmul.f32.vlgmr.msrb.gmra.mxu1 %v5449_v12  ;;  %v8183_v12 = vand.u32 4294901760, %v5910_v47 }
0x132e   :  { %5998 = vmatpush.msrb.mxu1 %v5997_v63 }
0x132f   :  { %5943 = vmatpush.msrb.mxu0 %v8183_v12  ;;  %v8190_v59 = vsub.f32 %v5910_v47, %v8183_v12 }
0x1331   :  { %5945 = vmatpush.msrb.mxu0 %v8187_v27  ;;  %v6001_v14 = vand.u32 4294901760, %v8190_v59 }
0x1333   :  { %v6002_v2 = vsub.f32 %v8190_v59, %v6001_v14 }
0x1335   :  { %5617 = vmatmul.f32.gmra.mxu1 %v5457_v1  ;;  %v5908_v1 = vld [vmem:[#allocation7] sm:$0xff]  ;;  %v6003_v44 = vand.u32 4294901760, %v6002_v2 }
0x1336   :  { %v8194_v54 = vand.u32 4294901760, %v5908_v1 }
0x1337   :  { %6004 = vmatpush.msrb.mxu1 %v6003_v44 }
0x1338   :  { %5947 = vmatpush.msrb.mxu0 %v8194_v54  ;;  %v8202_v23 = vsub.f32 %v5908_v1, %v8194_v54 }
0x133a   :  { %v6013_v16 = vand.u32 4294901760, %v8202_v23 }
0x133c   :  { %v6014_v3 = vsub.f32 %v8202_v23, %v6013_v16 }
0x1384   :  { %v5838_v6 = vpop.xlane.xlu1 %5837 }
0x1385   :  { %v5848_v62 = vmul.f32 %v5838_v6, %v8585_v0 }
0x1387   :  { %v5852_v37 = vadd.f32 1e-06, %v5848_v62 }
0x1389   :  { %6786 = vrsqrt.f32 %v5852_v37  ;;  %vm5862_vm14 = vweird.f32 %v5852_v37 }
0x138f   :  { %v6787_v55 = vpop.eup %6786 }
0x1390   :  { %v5857_v9 = vmul.f32 %v6787_v55, %v5852_v37  ;;  %vm5863_vm13 = vweird.f32 %v6787_v55 }
0x1391   :  { %vm5864_vm15 = vmor %vm5862_vm14, %vm5863_vm13 }
0x1392   :  { %v5455_v50 = vpop.f32.mrf.mxu0  ;;  %v5858_v43 = vmul.f32 %v6787_v55, %v5857_v9  ;;  %v6009_v9 = vand.u32 4294901760, %v6008_v33 }
0x1394   :  { %v5859_v45 = vmul.f32 0.5, %v5858_v43  ;;  %6010 = vmatpush.msrb.mxu1 %v6009_v9 }
0x1396   :  { %v5860_v46 = vsub.f32 1.5, %v5859_v45 }
0x1398   :  { %v5861_v10 = vmul.f32 %v6787_v55, %v5860_v46  ;;  %v5554_v6 = vpop.f32.mrf.mxu3 }
0x139a   :  { %v5463_v49 = vpop.f32.mrf.mxu0  ;;  %v5494_v39 = vpop.f32.mrf.mxu1  ;;  %v5865_v43 = vsel %vm5864_vm15, %v6787_v55, %v5861_v10 }
0x139b   :  { %v5495_v41 = vadd.f32 %v5494_v39, %v5455_v50  ;;  %v5524_v32 = vpop.f32.mrf.mxu2  ;;  %v6015_v50 = vand.u32 4294901760, %v6014_v3  ;;  %v8214_v45 = vmul.f32 %v5865_v43, %v8164_v51 }
0x139d   :  { %v5525_v28 = vadd.f32 %v5524_v32, %v5495_v41  ;;  %6016 = vmatpush.msrb.mxu1 %v6015_v50  ;;  %v5917_v37 = vsel %vm106_vm0, %v8214_v45, 0 }
0x139f   :  { %v5555_v47 = vadd.f32 %v5554_v6, %v5525_v28 }
0x13a1   :  { %v5560_v63 = vpop.f32.mrf.mxu3 }
0x13a2   :  { %v5498_v60 = vpop.f32.mrf.mxu1  ;;  %v5587_v62 = vpop.f32.mrf.mxu0 }
0x13a3   :  { %v5499_v52 = vadd.f32 %v5498_v60, %v5463_v49  ;;  %v5588_v39 = vadd.f32 %v5587_v62, %v5555_v47  ;;  %v5529_v53 = vpop.f32.mrf.mxu2  ;;  %v8219_v49 = vand.u32 4294901760, %v5917_v37 }
0x13a5   :  { %v5530_v40 = vadd.f32 %v5529_v53, %v5499_v52  ;;  %v5949_v28 = vsub.f32 %v5917_v37, %v8219_v49  ;;  %v8591_v37 = vld [vmem:[#allocation62_spill] sm:$0xff] }
0x13a7   :  { %v5561_v2 = vadd.f32 %v5560_v63, %v5530_v40 }
0x13aa   :  { %v5614_v1 = vpop.f32.mrf.mxu1  ;;  %v5591_v32 = vpop.f32.mrf.mxu0 }
0x13ab   :  { %v5615_v46 = vadd.f32 %v5614_v1, %v5588_v39  ;;  %v5592_v51 = vadd.f32 %v5591_v32, %v5561_v2  ;;  %v8592_v32 = vld [vmem:[#allocation61_spill] sm:$0xff] }
0x13ad   :  { %v5622_v41 = vsel %vm897_vm11, %v5615_v46, 0 }
0x13ae   :  { %v5644_v55 = vand.u32 4294901760, %v5622_v41 }
0x13b0   :  { %v5645_v10 = vsub.f32 %v5622_v41, %v5644_v55  ;;  %5683 = vmatmul.f32.vlgmr.msrb.gmra.mxu3 %v5644_v55 }
0x13b1   :  { %6092 = vmatpush.msrb.mxu3 %v8177_v24 }
0x13b2   :  { %v5646_v60 = vand.u32 4294901760, %v5645_v10  ;;  %v5618_v44 = vpop.f32.mrf.mxu1  ;;  %5711 = vmatmul.f32.vlgmr.msra.gmra.mxu0 %v5645_v10 }
0x13b3   :  { %v5619_v33 = vadd.f32 %v5618_v44, %v5592_v51  ;;  %6094 = vmatpush.msrb.mxu3 %v8183_v12  ;;  %6139 = vmatpush.msra.mxu0 %v5995_v5  ;;  %v5950_v5 = vand.u32 4294901760, %v5949_v28  ;;  %v8594_v44 = vld [vmem:[#allocation18_spill] sm:$0xff] }
0x13b4   :  { %v5647_v3 = vsub.f32 %v5645_v10, %v5646_v60  ;;  %5740 = vmatmul.f32.vlgmr.msra.gmra.mxu1 %v5646_v60 }
0x13b5   :  { %v5625_v6 = vsel %vm897_vm11, %v5619_v33, 0  ;;  %6096 = vmatpush.msrb.mxu3 %v8187_v27  ;;  %6182 = vmatpush.msra.mxu1 %v8177_v24  ;;  %v293_v33 = vmul.f32 %v8127_v15, %v8594_v44 }
0x13b6   :  { %v5648_v62 = vand.u32 4294901760, %v5647_v3  ;;  %v5652_v9 = vand.u32 4294901760, %v5625_v6  ;;  %6143 = vmatpush.msra.mxu0 %v6001_v14  ;;  %v5951_v14 = vsub.f32 %v5949_v28, %v5950_v5  ;;  %v8595_v3 = vld [vmem:[#allocation63_spill] sm:$0xff] }
0x13b7   :  { %6098 = vmatpush.msrb.mxu3 %v8194_v54  ;;  %6184 = vmatpush.msra.mxu1 %v8183_v12 }
0x13b8   :  { %v5653_v50 = vsub.f32 %v5625_v6, %v5652_v9  ;;  %5649 = vmatmul.f32.vlgmr.msrb.gmra.mxu2 %v5648_v62  ;;  %5687 = vmatmul.f32.gmra.mxu3 %v5652_v9 }
0x13b9   :  { %6048 = vmatpush.msrb.mxu2 %v8181_v4  ;;  %6186 = vmatpush.msra.mxu1 %v8187_v27  ;;  %v5952_v4 = vand.u32 4294901760, %v5951_v14  ;;  %v4274_v27 = vadd.f32 %v7971_v56, %v7973_v21 }
0x13ba   :  { %5716 = vmatmul.f32.gmra.mxu0 %v5653_v50  ;;  %v5654_v43 = vand.u32 4294901760, %v5653_v50 }
0x13bb   :  { %6051 = vmatpush.msrb.mxu2 %v8190_v59  ;;  %6188 = vmatpush.msra.mxu1 %v8194_v54  ;;  %v4302_v59 = vadd.f32 %v7977_v42, %v4274_v27 }
0x13bc   :  { %5746 = vmatmul.f32.gmra.mxu1 %v5654_v43  ;;  %v5655_v24 = vsub.f32 %v5653_v50, %v5654_v43  ;;  %6147 = vmatpush.msra.mxu0 %v6007_v13  ;;  %v298_v43 = vadd.f32 %v8137_v61, %v293_v33 }
0x13bd   :  { %6054 = vmatpush.msrb.mxu2 %v8198_v19  ;;  %v4331_v54 = vadd.f32 %v7979_v26, %v4302_v59  ;;  %v4278_v19 = vadd.f32 %v7975_v38, %v7981_v29 }
0x13be   :  { %v5656_v12 = vand.u32 4294901760, %v5655_v24  ;;  %6151 = vmatpush.msra.mxu0 %v6013_v16 }
0x13bf   :  { %6057 = vmatpush.msrb.mxu2 %v8202_v23  ;;  %v4361_v23 = vadd.f32 %v7989_v58, %v4331_v54  ;;  %v4307_v13 = vadd.f32 %v7985_v7, %v4278_v19  ;;  %v8597_v54 = vld [vmem:[#allocation19_spill] sm:$0xff] }
0x13c0   :  { %5657 = vmatmul.f32.gmra.mxu2 %v5656_v12  ;;  %5796 = vmatmul.f32.vlgmr.msra.gmra.mxu3 %v5644_v55  ;;  %v8596_v12 = vld [vmem:[#allocation64_spill] sm:$0xff]  ;;  %v294_v19 = vmul.f32 %v8127_v15, %v8597_v54 }
0x13c1   :  { %v4387_v16 = vadd.f32 %v7983_v31, %v4361_v23  ;;  %v4337_v47 = vadd.f32 %v7987_v36, %v4307_v13 }
0x13c2   :  { %5953 = vmatmul.f32.vlgmr.msrb.gmra.mxu0 %v5952_v4 }
0x13c3   :  { %v4423_v39 = vadd.f32 %v7993_v18, %v4387_v16  ;;  %v4365_v56 = vadd.f32 %v7997_v34, %v4337_v47  ;;  %v8590_v34 = vld [vmem:[#allocation60_spill] sm:$0xff] }
0x13c4   :  { %6018 = vmatmul.f32.vlgmr.msrb.gmra.mxu1 %v8219_v49 }
0x13c5   :  { %v4457_v42 = vadd.f32 %v7995_v30, %v4423_v39  ;;  %v4391_v26 = vadd.f32 %v7991_v22, %v4365_v56  ;;  %v299_v39 = vadd.f32 %v8137_v61, %v294_v19 }
0x13c7   :  { %v4485_v38 = vadd.f32 %v8005_v25, %v4457_v42  ;;  %v4431_v58 = vadd.f32 %v8001_v48, %v4391_v26  ;;  %v8593_v48 = vld [vmem:[#allocation59_spill] sm:$0xff] }
0x13c8   :  { %5770 = vmatmul.f32.vlgmr.msra.gmra.mxu2 %v5644_v55  ;;  %5800 = vmatmul.f32.gmra.mxu3 %v5652_v9 }
0x13c9   :  { %v4514_v1 = vadd.f32 %v7999_v57, %v4485_v38  ;;  %v4461_v36 = vadd.f32 %v8003_v17, %v4431_v58 }
0x13cb   :  { %v4544_v46 = vadd.f32 %v8590_v34, %v4514_v1  ;;  %v4490_v30 = vadd.f32 %v8591_v37, %v4461_v36 }
0x13cd   :  { %v4570_v55 = vadd.f32 %v8592_v32, %v4544_v46  ;;  %v4520_v2 = vadd.f32 %v8593_v48, %v4490_v30 }
0x13cf   :  { %v5189_v57 = vadd.f32 %v8077_v20, %v4570_v55  ;;  %v4548_v6 = vadd.f32 %v8595_v3, %v4520_v2 }
0x13d0   :  { %5774 = vmatmul.f32.gmra.mxu2 %v5652_v9  ;;  %6102 = vmatmul.f32.vlgmr.msrb.gmra.mxu3 %v5950_v5 }
0x13d1   :  { %v4574_v20 = vadd.f32 %v8596_v12, %v4548_v6 }
0x13d3   :  { %v5190_v23 = vadd.f32 %v8079_v35, %v4574_v20 }
0x13d8   :  { %6060 = vmatmul.f32.vlgmr.msrb.gmra.mxu2 %v5949_v28  ;;  %v5817_v28 = vpop.xlane.xlu0 %5816 }
0x13d9   :  { %v5825_v50 = vmul.f32 %v5817_v28, %v8585_v0 }
0x13db   :  { %v5829_v13 = vsub.f32 %v8155_v11, %v5825_v50 }
0x142f   :  { %v5712_v53 = vpop.f32.mrf.mxu0 }
0x1431   :  { %v5741_v40 = vpop.f32.mrf.mxu1 }
0x1433   :  { %v5684_v52 = vpop.f32.mrf.mxu3 }
0x1437   :  { %v5717_v51 = vpop.f32.mrf.mxu0 }
0x1439   :  { %v5747_v9 = vpop.f32.mrf.mxu1 }
0x143b   :  { %v5650_v21 = vpop.f32.mrf.mxu2  ;;  %v5688_v29 = vpop.f32.mrf.mxu3 }
0x143c   :  { %v5685_v7 = vadd.f32 %v5684_v52, %v5650_v21  ;;  %v5833_v21 = vmul.f32 %v5829_v13, %v5829_v13 }
0x143e   :  { %v5713_v18 = vadd.f32 %v5712_v53, %v5685_v7  ;;  %v5839_v38 = vsel %vm106_vm0, %v5833_v21, 0.0 }
0x1440   :  { %v5742_v22 = vadd.f32 %v5741_v40, %v5713_v18 }
0x1443   :  { %v5658_v31 = vpop.f32.mrf.mxu2  ;;  %v5797_v63 = vpop.f32.mrf.mxu3 }
0x1444   :  { %v5689_v41 = vadd.f32 %v5688_v29, %v5658_v31 }
0x1446   :  { %v5718_v60 = vadd.f32 %v5717_v51, %v5689_v41 }
0x1448   :  { %v5748_v5 = vadd.f32 %v5747_v9, %v5718_v60 }
0x144b   :  { %v5771_v25 = vpop.f32.mrf.mxu2  ;;  %v5801_v59 = vpop.f32.mrf.mxu3 }
0x144c   :  { %v5772_v10 = vadd.f32 %v5771_v25, %v5742_v22 }
0x144e   :  { %v5798_v17 = vadd.f32 %v5797_v63, %v5772_v10 }
0x1450   :  { %v5804_v62 = vadd.f32 %v5798_v17, %v5189_v57 }
0x1452   :  { %v5806_v24 = vadd.f32 %v5804_v62, %v8133_v8 }
0x1453   :  { %v5775_v14 = vpop.f32.mrf.mxu2 }
0x1454   :  { %v5776_v4 = vadd.f32 %v5775_v14, %v5748_v5  ;;  %v5810_v27 = vadd.f32 %v5806_v24, %v298_v43 }
0x1456   :  { %v5802_v16 = vadd.f32 %v5801_v59, %v5776_v4  ;;  %v5818_v52 = vsel %vm106_vm0, %v5810_v27, 0.0 }
0x1457   :  { %5819 = vadd.xlane.f32.xlu0 %v5818_v52 }
0x1458   :  { %v5805_v47 = vadd.f32 %v5802_v16, %v5190_v23 }
0x145a   :  { %v5807_v56 = vadd.f32 %v5805_v47, %v8133_v8 }
0x145c   :  { %v5811_v42 = vadd.f32 %v5807_v56, %v299_v39 }
0x145e   :  { %v5821_v26 = vsel %vm106_vm0, %v5811_v42, 0.0 }
0x145f   :  { %5822 = vadd.xlane.f32.xlu2 %v5821_v26  ;;  %5840 = vadd.xlane.f32.xlu0 %v5839_v38 }
0x14ca   :  { %v5820_v35 = vpop.xlane.xlu0 %5819 }
0x14cb   :  { %v5826_v11 = vmul.f32 %v5820_v35, %v8585_v0 }
0x14cd   :  { %v5830_v29 = vsub.f32 %v5810_v27, %v5826_v11 }
0x14cf   :  { %v5834_v58 = vmul.f32 %v5830_v29, %v5830_v29 }
0x14d1   :  { %v5842_v7 = vsel %vm106_vm0, %v5834_v58, 0.0  ;;  %v8303_v58 = vpop.f32.mrf.mxu1 }
0x14d2   :  { %v5823_v53 = vpop.xlane.xlu2 %5822  ;;  %5843 = vadd.xlane.f32.xlu0 %v5842_v7  ;;  %v5841_v31 = vpop.xlane.xlu0 %5840 }
0x14d3   :  { %v5827_v8 = vmul.f32 %v5823_v53, %v8585_v0  ;;  %v5849_v1 = vmul.f32 %v5841_v31, %v8585_v0  ;;  %v6216_v53 = vld [vmem:[%s8466_s6 + $0x30] sm:$0xff] }
0x14d4   :  { %v8313_v31 = vand.u32 4294901760, %v6216_v53 }
0x14d5   :  { %v5831_v36 = vsub.f32 %v5811_v42, %v5827_v8  ;;  %v5853_v18 = vadd.f32 1e-06, %v5849_v1  ;;  %v6215_v8 = vld [vmem:[%s8466_s6 + $0x28] sm:$0xff] }
0x14d7   :  { %6788 = vrsqrt.f32 %v5853_v18  ;;  %v5835_v40 = vmul.f32 %v5831_v36, %v5831_v36  ;;  %vm5872_vm2 = vweird.f32 %v5853_v18 }
0x14d9   :  { %v5845_v34 = vsel %vm106_vm0, %v5835_v40, 0.0  ;;  %v6214_v40 = vld [vmem:[%s8466_s6 + $0x20] sm:$0xff] }
0x14da   :  { %5846 = vadd.xlane.f32.xlu0 %v5845_v34 }
0x14dd   :  { %v6789_v46 = vpop.eup %6788 }
0x14de   :  { %v5867_v37 = vmul.f32 %v6789_v46, %v5853_v18  ;;  %vm5873_vm1 = vweird.f32 %v6789_v46  ;;  %v8325_v18 = vand.u32 4294901760, %v6215_v8 }
0x14df   :  { %vm5874_vm3 = vmor %vm5872_vm2, %vm5873_vm1 }
0x14e0   :  { %v5868_v30 = vmul.f32 %v6789_v46, %v5867_v37  ;;  %v8337_v37 = vsub.f32 %v6215_v8, %v8325_v18 }
0x14e2   :  { %v5869_v41 = vmul.f32 0.5, %v5868_v30  ;;  %v8340_v30 = vand.u32 4294901760, %v6214_v40 }
0x14e4   :  { %v5870_v22 = vsub.f32 1.5, %v5869_v41  ;;  %v6213_v41 = vld [vmem:[%s8466_s6 + $0x18] sm:$0xff] }
0x14e6   :  { %v5871_v63 = vmul.f32 %v6789_v46, %v5870_v22  ;;  %v8347_v22 = vpop.f32.mrf.mxu0 }
0x14e8   :  { %v5875_v25 = vsel %vm5874_vm3, %v6789_v46, %v5871_v63 }
0x14e9   :  { %v8284_v32 = vmul.f32 %v5875_v25, %v5829_v13 }
0x14eb   :  { %v5920_v55 = vsel %vm106_vm0, %v8284_v32, 0 }
0x14ec   :  { %v5956_v48 = vand.u32 4294901760, %v5920_v55 }
0x14ee   :  { %6022 = vmatmul.f32.gmra.mxu1 %v5956_v48  ;;  %v5957_v2 = vsub.f32 %v5920_v55, %v5956_v48 }
0x14f0   :  { %6065 = vmatmul.f32.gmra.mxu2 %v5957_v2  ;;  %v5958_v10 = vand.u32 4294901760, %v5957_v2 }
0x14f2   :  { %6108 = vmatmul.f32.gmra.mxu3 %v5958_v10  ;;  %v5959_v51 = vsub.f32 %v5957_v2, %v5958_v10  ;;  %v8356_v2 = vsub.f32 %v6214_v40, %v8340_v30  ;;  %v8360_v10 = vand.u32 4294901760, %v6213_v41 }
0x14f4   :  { %v5960_v57 = vand.u32 4294901760, %v5959_v51  ;;  %v6212_v51 = vld [vmem:[%s8466_s6 + $0x10] sm:$0xff] }
0x14f6   :  { %5961 = vmatmul.f32.gmra.mxu0 %v5960_v57 }
0x1545   :  { %v5844_v60 = vpop.xlane.xlu0 %5843 }
0x1546   :  { %v5850_v17 = vmul.f32 %v5844_v60, %v8585_v0 }
0x1548   :  { %v5854_v44 = vadd.f32 1e-06, %v5850_v17  ;;  %v6317_v17 = vand.u32 4294901760, %v8356_v2 }
0x154a   :  { %6790 = vrsqrt.f32 %v5854_v44  ;;  %vm5882_vm5 = vweird.f32 %v5854_v44 }
0x154d   :  { %v5847_v33 = vpop.xlane.xlu0 %5846 }
0x154e   :  { %v5851_v28 = vmul.f32 %v5847_v33, %v8585_v0  ;;  %v6322_v33 = vsub.f32 %v6213_v41, %v8360_v10 }
0x1550   :  { %v6791_v3 = vpop.eup %6790  ;;  %v5855_v6 = vadd.f32 1e-06, %v5851_v28  ;;  %v6211_v28 = vld [vmem:[%s8466_s6 + $0x8] sm:$0xff] }
0x1551   :  { %v5877_v62 = vmul.f32 %v6791_v3, %v5854_v44  ;;  %vm5883_vm4 = vweird.f32 %v6791_v3  ;;  %v8369_v44 = vand.u32 4294901760, %v6212_v51 }
0x1552   :  { %6792 = vrsqrt.f32 %v5855_v6  ;;  %vm5884_vm6 = vmor %vm5882_vm5, %vm5883_vm4  ;;  %vm5892_vm8 = vweird.f32 %v5855_v6 }
0x1553   :  { %v5878_v9 = vmul.f32 %v6791_v3, %v5877_v62  ;;  %v6328_v62 = vsub.f32 %v6212_v51, %v8369_v44 }
0x1555   :  { %v5879_v50 = vmul.f32 0.5, %v5878_v9  ;;  %v6252_v9 = vand.u32 4294901760, %v6211_v28 }
0x1557   :  { %v5880_v5 = vsub.f32 1.5, %v5879_v50  ;;  %v6323_v50 = vand.u32 4294901760, %v6322_v33 }
0x1558   :  { %v6793_v43 = vpop.eup %6792 }
0x1559   :  { %v5881_v24 = vmul.f32 %v6791_v3, %v5880_v5  ;;  %v5887_v14 = vmul.f32 %v6793_v43, %v5855_v6  ;;  %vm5893_vm7 = vweird.f32 %v6793_v43  ;;  %v6318_v6 = vsub.f32 %v8356_v2, %v6317_v17  ;;  %v6210_v5 = vld [vmem:[%s8466_s6] sm:$0xff] }
0x155a   :  { %vm5894_vm9 = vmor %vm5892_vm8, %vm5893_vm7 }
0x155b   :  { %v5885_v12 = vsel %vm5884_vm6, %v6791_v3, %v5881_v24  ;;  %v5888_v20 = vmul.f32 %v6793_v43, %v5887_v14  ;;  %v6329_v24 = vand.u32 4294901760, %v6328_v62  ;;  %v6334_v14 = vsub.f32 %v6211_v28, %v6252_v9 }
0x155c   :  { %v8290_v4 = vmul.f32 %v5885_v12, %v5830_v29  ;;  %v6217_v29 = vld [vmem:[%s8466_s6 + $0x38] sm:$0xff]  ;;  %v6254_v12 = vand.u32 4294901760, %v6210_v5 }
0x155d   :  { %v5889_v27 = vmul.f32 0.5, %v5888_v20  ;;  %v8305_v7 = vand.u32 4294901760, %v6217_v29  ;;  %v6324_v20 = vsub.f32 %v6322_v33, %v6323_v50 }
0x155e   :  { %v5923_v59 = vsel %vm106_vm0, %v8290_v4, 0 }
0x155f   :  { %v5890_v54 = vsub.f32 1.5, %v5889_v27  ;;  %v5964_v19 = vand.u32 4294901760, %v5923_v59  ;;  %6424 = vmatpush.msrb.mxu1 %v8305_v7  ;;  %6241 = vmatpush.msra.mxu2 %v8305_v7 }
0x1561   :  { %v5891_v23 = vmul.f32 %v6793_v43, %v5890_v54  ;;  %6026 = vmatmul.f32.gmra.mxu1 %v5964_v19  ;;  %v5965_v13 = vsub.f32 %v5923_v59, %v5964_v19  ;;  %6243 = vmatpush.msra.mxu2 %v8313_v31  ;;  %v6330_v54 = vsub.f32 %v6328_v62, %v6329_v24 }
0x1562   :  { %6426 = vmatpush.msrb.mxu1 %v8313_v31 }
0x1563   :  { %v5895_v16 = vsel %vm5894_vm9, %v6793_v43, %v5891_v23  ;;  %6070 = vmatmul.f32.gmra.mxu2 %v5965_v13  ;;  %v5966_v52 = vand.u32 4294901760, %v5965_v13  ;;  %v6319_v43 = vand.u32 4294901760, %v6318_v6  ;;  %v6340_v23 = vsub.f32 %v6210_v5, %v6254_v12 }
0x1564   :  { %v8294_v47 = vmul.f32 %v5895_v16, %v5831_v36  ;;  %v8322_v36 = vsub.f32 %v6216_v53, %v8313_v31  ;;  %6428 = vmatpush.msrb.mxu1 %v8325_v18  ;;  %6245 = vmatpush.msra.mxu2 %v8325_v18  ;;  %v6331_v16 = vand.u32 4294901760, %v6330_v54 }
0x1565   :  { %6114 = vmatmul.f32.gmra.mxu3 %v5966_v52  ;;  %v5967_v39 = vsub.f32 %v5965_v13, %v5966_v52  ;;  %v6325_v13 = vand.u32 4294901760, %v6324_v20 }
0x1566   :  { %v5926_v56 = vsel %vm106_vm0, %v8294_v47, 0  ;;  %v6305_v46 = vand.u32 4294901760, %v8322_v36  ;;  %6430 = vmatpush.msrb.mxu1 %v8340_v30  ;;  %6247 = vmatpush.msra.mxu2 %v8340_v30 }
0x1567   :  { %v5968_v21 = vand.u32 4294901760, %v5967_v39  ;;  %v5972_v42 = vand.u32 4294901760, %v5926_v56  ;;  %v6341_v39 = vand.u32 4294901760, %v6340_v23 }
0x1568   :  { %v6306_v55 = vsub.f32 %v8322_v36, %v6305_v46  ;;  %6432 = vmatpush.msrb.mxu1 %v8360_v10  ;;  %6249 = vmatpush.msra.mxu2 %v8360_v10 }
0x1569   :  { %5969 = vmatmul.f32.gmra.mxu0 %v5968_v21  ;;  %6030 = vmatmul.f32.gmra.mxu1 %v5972_v42  ;;  %v5973_v26 = vsub.f32 %v5926_v56, %v5972_v42  ;;  %v6342_v21 = vsub.f32 %v6340_v23, %v6341_v39 }
0x156a   :  { %v6307_v57 = vand.u32 4294901760, %v6306_v55  ;;  %6434 = vmatpush.msrb.mxu1 %v8369_v44  ;;  %6251 = vmatpush.msra.mxu2 %v8369_v44 }
0x156b   :  { %6075 = vmatmul.f32.gmra.mxu2 %v5973_v26  ;;  %v5974_v38 = vand.u32 4294901760, %v5973_v26  ;;  %v8349_v63 = vpop.f32.mrf.mxu1 }
0x156c   :  { %6436 = vmatpush.msrb.mxu1 %v6252_v9  ;;  %6253 = vmatpush.msra.mxu2 %v6252_v9 }
0x156d   :  { %6120 = vmatmul.f32.gmra.mxu3 %v5974_v38  ;;  %v5975_v35 = vsub.f32 %v5973_v26, %v5974_v38  ;;  %v6703_v38 = vld [vmem:[%s8468_s8] ss:$0 sm:$0xff]  ;;  %s6947_s8 = smov [#allocation10]  }
0x156e   :  { %6438 = vmatpush.msrb.mxu1 %v6254_v12  ;;  %6255 = vmatpush.msra.mxu2 %v6254_v12  ;;  %s6670_s12 = sshll.u32 %s6947_s8, 4  ;;  %s6671_s12 = int_to_ptr.vmem [resolvable:$true] %s6670_s12 }
0x156f   :  { %v5976_v11 = vand.u32 4294901760, %v5975_v35 }
0x1571   :  { %5977 = vmatmul.f32.gmra.mxu0 %v5976_v11  ;;  %6190 = vmatmul.f32.vlgmr.msra.gmra.mxu1 %v8219_v49  ;;  %v5955_v11 = vadd.f32 %v6703_v38, %v8347_v22 }
0x1573   :  { %v5962_v27 = vpop.f32.mrf.mxu0 }
0x1574   :  { %v5963_v8 = vadd.f32 %v6703_v38, %v5962_v27 }
0x1579   :  { %6153 = vmatmul.f32.vlgmr.msra.gmra.mxu0 %v8219_v49  ;;  %6194 = vmatmul.f32.gmra.mxu1 %v5956_v48  ;;  %v8311_v49 = vsub.f32 %v6217_v29, %v8305_v7  ;;  %v6061_v29 = vpop.f32.mrf.mxu2 }
0x157b   :  { %v6299_v1 = vand.u32 4294901760, %v8311_v49  ;;  %6372 = vmatpush.msrb.mxu0 %v8311_v49 }
0x157d   :  { %v6300_v34 = vsub.f32 %v8311_v49, %v6299_v1  ;;  %6375 = vmatpush.msrb.mxu0 %v8322_v36  ;;  %6475 = vmatpush.msrb.mxu2 %v6299_v1  ;;  %v6020_v49 = vadd.f32 %v8303_v58, %v5955_v11  ;;  %v6103_v1 = vpop.f32.mrf.mxu3  ;;  %v6024_v36 = vadd.f32 %v8349_v63, %v5963_v8 }
0x157f   :  { %v6301_v25 = vand.u32 4294901760, %v6300_v34  ;;  %6378 = vmatpush.msrb.mxu0 %v8337_v37  ;;  %6479 = vmatpush.msrb.mxu2 %v6305_v46 }
0x1581   :  { %6157 = vmatmul.f32.gmra.mxu0 %v5956_v48  ;;  %6198 = vmatmul.f32.gmra.mxu1 %v5964_v19  ;;  %v6311_v48 = vand.u32 4294901760, %v8337_v37  ;;  %v6066_v40 = vpop.f32.mrf.mxu2 }
0x1582   :  { %6302 = vmatpush.msra.mxu3 %v6301_v25  ;;  %6381 = vmatpush.msrb.mxu0 %v8356_v2 }
0x1583   :  { %v6312_v60 = vsub.f32 %v8337_v37, %v6311_v48  ;;  %6483 = vmatpush.msrb.mxu2 %v6311_v48  ;;  %v6067_v37 = vadd.f32 %v6066_v40, %v6024_v36 }
0x1584   :  { %6308 = vmatpush.msra.mxu3 %v6307_v57  ;;  %6384 = vmatpush.msrb.mxu0 %v6322_v33 }
0x1585   :  { %v6313_v3 = vand.u32 4294901760, %v6312_v60  ;;  %6487 = vmatpush.msrb.mxu2 %v6317_v17  ;;  %v6109_v41 = vpop.f32.mrf.mxu3 }
0x1586   :  { %6387 = vmatpush.msrb.mxu0 %v6328_v62  ;;  %v6110_v55 = vadd.f32 %v6109_v41, %v6067_v37 }
0x1587   :  { %6314 = vmatpush.msra.mxu3 %v6313_v3  ;;  %6491 = vmatpush.msrb.mxu2 %v6323_v50 }
0x1588   :  { %6390 = vmatpush.msrb.mxu0 %v6334_v14 }
0x1589   :  { %6161 = vmatmul.f32.gmra.mxu0 %v5964_v19  ;;  %6202 = vmatmul.f32.gmra.mxu1 %v5972_v42  ;;  %v6335_v19 = vand.u32 4294901760, %v6334_v14 }
0x158a   :  { %6320 = vmatpush.msra.mxu3 %v6319_v43  ;;  %6393 = vmatpush.msrb.mxu0 %v6340_v23 }
0x158b   :  { %v6336_v52 = vsub.f32 %v6334_v14, %v6335_v19  ;;  %6495 = vmatpush.msrb.mxu2 %v6329_v24 }
0x158c   :  { %6326 = vmatpush.msra.mxu3 %v6325_v13 }
0x158d   :  { %v6337_v56 = vand.u32 4294901760, %v6336_v52  ;;  %6499 = vmatpush.msrb.mxu2 %v6335_v19 }
0x158e   :  { %6332 = vmatpush.msra.mxu3 %v6331_v16 }
0x158f   :  { %6503 = vmatpush.msrb.mxu2 %v6341_v39 }
0x1590   :  { %6338 = vmatpush.msra.mxu3 %v6337_v56 }
0x1591   :  { %6165 = vmatmul.f32.gmra.mxu0 %v5972_v42  ;;  %v6343_v42 = vand.u32 4294901760, %v6342_v21 }
0x1593   :  { %6344 = vmatpush.msra.mxu3 %v6343_v42 }
0x1595   :  { %6530 = vmatpush.msrb.mxu3 %v8305_v7  ;;  %v6062_v7 = vadd.f32 %v6061_v29, %v6020_v49 }
0x1597   :  { %6532 = vmatpush.msrb.mxu3 %v8313_v31 }
0x1599   :  { %6534 = vmatpush.msrb.mxu3 %v8325_v18  ;;  %v6104_v18 = vadd.f32 %v6103_v1, %v6062_v7 }
0x159b   :  { %6536 = vmatpush.msrb.mxu3 %v8340_v30 }
0x159d   :  { %6538 = vmatpush.msrb.mxu3 %v8360_v10 }
0x159f   :  { %6540 = vmatpush.msrb.mxu3 %v8369_v44 }
0x15a1   :  { %6542 = vmatpush.msrb.mxu3 %v6252_v9 }
0x15a3   :  { %6544 = vmatpush.msrb.mxu3 %v6254_v12 }
0x15de   :  { %v6027_v59 = vpop.f32.mrf.mxu1 }
0x15e6   :  { %v5970_v26 = vpop.f32.mrf.mxu0  ;;  %v6031_v35 = vpop.f32.mrf.mxu1 }
0x15e7   :  { %v5971_v30 = vadd.f32 %v6703_v38, %v5970_v26  ;;  %v6071_v10 = vpop.f32.mrf.mxu2 }
0x15e8   :  { %v6115_v28 = vpop.f32.mrf.mxu3 }
0x15e9   :  { %v6028_v48 = vadd.f32 %v6027_v59, %v5971_v30 }
0x15eb   :  { %v6072_v17 = vadd.f32 %v6071_v10, %v6028_v48 }
0x15ed   :  { %v6116_v9 = vadd.f32 %v6115_v28, %v6072_v17 }
0x15ee   :  { %v5978_v53 = vpop.f32.mrf.mxu0  ;;  %v6191_v31 = vpop.f32.mrf.mxu1 }
0x15ef   :  { %v5979_v44 = vadd.f32 %v6703_v38, %v5978_v53  ;;  %v6076_v27 = vpop.f32.mrf.mxu2 }
0x15f0   :  { %v6121_v16 = vpop.f32.mrf.mxu3 }
0x15f1   :  { %v6032_v50 = vadd.f32 %v6031_v35, %v5979_v44 }
0x15f3   :  { %v6077_v54 = vadd.f32 %v6076_v27, %v6032_v50 }
0x15f5   :  { %v6122_v39 = vadd.f32 %v6121_v16, %v6077_v54 }
0x15f6   :  { %v6154_v34 = vpop.f32.mrf.mxu0  ;;  %v6195_v25 = vpop.f32.mrf.mxu1 }
0x15f7   :  { %v6155_v46 = vadd.f32 %v6154_v34, %v6104_v18 }
0x15f9   :  { %v6192_v58 = vadd.f32 %v6191_v31, %v6155_v46 }
0x15fb   :  { %v6206_v22 = vmax.f32 %v6192_v58, 0.0 }
0x15fd   :  { %v6221_v2 = vsel %vm6219_vm10, %v6206_v22, 0  ;;  %v6804_v22 = vld [vmem:[#allocation8] sm:$0x1f] }
0x15fe   :  { %v6256_v51 = vand.u32 4294901760, %v6221_v2  ;;  %v6158_v57 = vpop.f32.mrf.mxu0  ;;  %v6199_v14 = vpop.f32.mrf.mxu1 }
0x15ff   :  { %v6159_v63 = vadd.f32 %v6158_v57, %v6110_v55 }
0x1600   :  { %v6257_v60 = vsub.f32 %v6221_v2, %v6256_v51  ;;  %6346 = vmatmul.f32.vlgmr.msra.gmra.mxu3 %v6256_v51 }
0x1601   :  { %v6196_v33 = vadd.f32 %v6195_v25, %v6159_v63  ;;  %v6218_v25 = vperm.slane %v6804_v22, 4 }
0x1602   :  { %v6258_v3 = vand.u32 4294901760, %v6257_v60  ;;  %6396 = vmatmul.f32.vlgmr.msrb.gmra.mxu0 %v6257_v60 }
0x1603   :  { %v6207_v6 = vmax.f32 %v6196_v33, 0.0 }
0x1604   :  { %v6259_v62 = vsub.f32 %v6257_v60, %v6258_v3  ;;  %6442 = vmatmul.f32.vlgmr.msrb.gmra.mxu1 %v6258_v3 }
0x1605   :  { %v6224_v5 = vsel %vm6219_vm10, %v6207_v6, 0  ;;  %v5900_v6 = vmul.f32 %v8214_v45, %v8127_v15 }
0x1606   :  { %v6260_v43 = vand.u32 4294901760, %v6259_v62  ;;  %v6264_v24 = vand.u32 4294901760, %v6224_v5  ;;  %v6162_v12 = vpop.f32.mrf.mxu0  ;;  %v6203_v35 = vpop.f32.mrf.mxu1 }
0x1607   :  { %v6163_v20 = vadd.f32 %v6162_v12, %v6116_v9 }
0x1608   :  { %6261 = vmatmul.f32.vlgmr.msra.gmra.mxu2 %v6260_v43  ;;  %6350 = vmatmul.f32.gmra.mxu3 %v6264_v24  ;;  %v6265_v59 = vsub.f32 %v6224_v5, %v6264_v24 }
0x1609   :  { %v6200_v19 = vadd.f32 %v6199_v14, %v6163_v20  ;;  %v5904_v14 = vadd.f32 %v5900_v6, %v8137_v61 }
0x160a   :  { %6401 = vmatmul.f32.gmra.mxu0 %v6265_v59  ;;  %v6266_v23 = vand.u32 4294901760, %v6265_v59 }
0x160b   :  { %v6208_v13 = vmax.f32 %v6200_v19, 0.0  ;;  %v5901_v19 = vmul.f32 %v8284_v32, %v8127_v15 }
0x160c   :  { %6448 = vmatmul.f32.gmra.mxu1 %v6266_v23  ;;  %v6267_v52 = vsub.f32 %v6265_v59, %v6266_v23 }
0x160d   :  { %v6227_v56 = vsel %vm6219_vm10, %v6208_v13, 0 }
0x160e   :  { %v6272_v21 = vand.u32 4294901760, %v6227_v56  ;;  %v6166_v42 = vpop.f32.mrf.mxu0  ;;  %v6268_v26 = vand.u32 4294901760, %v6267_v52 }
0x160f   :  { %v6167_v38 = vadd.f32 %v6166_v42, %v6122_v39 }
0x1610   :  { %6269 = vmatmul.f32.gmra.mxu2 %v6268_v26  ;;  %6354 = vmatmul.f32.gmra.mxu3 %v6272_v21  ;;  %v6273_v11 = vsub.f32 %v6227_v56, %v6272_v21  ;;  %v5905_v56 = vadd.f32 %v5901_v19, %v8137_v61 }
0x1611   :  { %v6204_v29 = vadd.f32 %v6203_v35, %v6167_v38 }
0x1612   :  { %6406 = vmatmul.f32.gmra.mxu0 %v6273_v11  ;;  %v6274_v53 = vand.u32 4294901760, %v6273_v11 }
0x1613   :  { %v6209_v49 = vmax.f32 %v6204_v29, 0.0 }
0x1614   :  { %6454 = vmatmul.f32.gmra.mxu1 %v6274_v53  ;;  %v6275_v7 = vsub.f32 %v6273_v11, %v6274_v53  ;;  %v5902_v11 = vmul.f32 %v8290_v4, %v8127_v15 }
0x1615   :  { %v6230_v8 = vsel %vm6219_vm10, %v6209_v49, 0 }
0x1616   :  { %v6280_v1 = vand.u32 4294901760, %v6230_v8  ;;  %v6276_v31 = vand.u32 4294901760, %v6275_v7 }
0x1618   :  { %6277 = vmatmul.f32.gmra.mxu2 %v6276_v31  ;;  %6358 = vmatmul.f32.gmra.mxu3 %v6280_v1  ;;  %v6281_v36 = vsub.f32 %v6230_v8, %v6280_v1 }
0x161a   :  { %6411 = vmatmul.f32.gmra.mxu0 %v6281_v36  ;;  %v6282_v18 = vand.u32 4294901760, %v6281_v36 }
0x161c   :  { %6460 = vmatmul.f32.gmra.mxu1 %v6282_v18  ;;  %v6283_v40 = vsub.f32 %v6281_v36, %v6282_v18 }
0x161e   :  { %v6284_v34 = vand.u32 4294901760, %v6283_v40 }
0x1620   :  { %6285 = vmatmul.f32.gmra.mxu2 %v6284_v34  ;;  %6546 = vmatmul.f32.vlgmr.msrb.gmra.mxu3 %v6256_v51  ;;  %v5903_v34 = vmul.f32 %v8294_v47, %v8127_v15 }
0x1628   :  { %6505 = vmatmul.f32.vlgmr.msrb.gmra.mxu2 %v6256_v51  ;;  %6550 = vmatmul.f32.gmra.mxu3 %v6264_v24 }
0x1630   :  { %6509 = vmatmul.f32.gmra.mxu2 %v6264_v24  ;;  %6554 = vmatmul.f32.gmra.mxu3 %v6272_v21 }
0x1638   :  { %6513 = vmatmul.f32.gmra.mxu2 %v6272_v21  ;;  %6558 = vmatmul.f32.gmra.mxu3 %v6280_v1 }
0x1640   :  { %6517 = vmatmul.f32.gmra.mxu2 %v6280_v1  ;;  %v5906_v1 = vadd.f32 %v5902_v11, %v8137_v61 }
0x167f   :  { %v6397_v10 = vpop.f32.mrf.mxu0 }
0x1681   :  { %v6443_v63 = vpop.f32.mrf.mxu1 }
0x1683   :  { %v6347_v46 = vpop.f32.mrf.mxu3 }
0x1687   :  { %v6402_v33 = vpop.f32.mrf.mxu0 }
0x1689   :  { %v6449_v50 = vpop.f32.mrf.mxu1 }
0x168b   :  { %v6262_v37 = vpop.f32.mrf.mxu2  ;;  %v6351_v30 = vpop.f32.mrf.mxu3 }
0x168c   :  { %v6263_v2 = vadd.f32 %v6262_v37, %v6218_v25 }
0x168e   :  { %v6348_v57 = vadd.f32 %v6347_v46, %v6263_v2 }
0x168f   :  { %v6407_v23 = vpop.f32.mrf.mxu0 }
0x1690   :  { %v6398_v17 = vadd.f32 %v6397_v10, %v6348_v57 }
0x1691   :  { %v6455_v21 = vpop.f32.mrf.mxu1 }
0x1692   :  { %v6444_v3 = vadd.f32 %v6443_v63, %v6398_v17 }
0x1693   :  { %v6270_v58 = vpop.f32.mrf.mxu2  ;;  %v6355_v41 = vpop.f32.mrf.mxu3 }
0x1694   :  { %v6271_v60 = vadd.f32 %v6270_v58, %v6218_v25  ;;  %v5907_v58 = vadd.f32 %v5903_v34, %v8137_v61 }
0x1696   :  { %v6352_v28 = vadd.f32 %v6351_v30, %v6271_v60 }
0x1697   :  { %v6412_v49 = vpop.f32.mrf.mxu0 }
0x1698   :  { %v6403_v24 = vadd.f32 %v6402_v33, %v6352_v28 }
0x1699   :  { %v6461_v36 = vpop.f32.mrf.mxu1 }
0x169a   :  { %v6450_v59 = vadd.f32 %v6449_v50, %v6403_v24 }
0x169b   :  { %v6278_v55 = vpop.f32.mrf.mxu2  ;;  %v6359_v48 = vpop.f32.mrf.mxu3 }
0x169c   :  { %v6279_v5 = vadd.f32 %v6278_v55, %v6218_v25 }
0x169e   :  { %v6356_v27 = vadd.f32 %v6355_v41, %v6279_v5 }
0x16a0   :  { %v6408_v39 = vadd.f32 %v6407_v23, %v6356_v27 }
0x16a2   :  { %v6456_v38 = vadd.f32 %v6455_v21, %v6408_v39 }
0x16a3   :  { %v6286_v51 = vpop.f32.mrf.mxu2  ;;  %v6547_v44 = vpop.f32.mrf.mxu3 }
0x16a4   :  { %v6287_v16 = vadd.f32 %v6286_v51, %v6218_v25 }
0x16a6   :  { %v6360_v26 = vadd.f32 %v6359_v48, %v6287_v16 }
0x16a8   :  { %v6413_v8 = vadd.f32 %v6412_v49, %v6360_v26 }
0x16aa   :  { %v6462_v18 = vadd.f32 %v6461_v36, %v6413_v8 }
0x16ab   :  { %v6506_v62 = vpop.f32.mrf.mxu2  ;;  %v6551_v20 = vpop.f32.mrf.mxu3 }
0x16ac   :  { %v6507_v9 = vadd.f32 %v6506_v62, %v6444_v3 }
0x16ae   :  { %v6548_v43 = vadd.f32 %v6547_v44, %v6507_v9 }
0x16b0   :  { %v6562_v12 = vadd.f32 %v6548_v43, %v5904_v14 }
0x16b2   :  { %v6566_v54 = vsel %vm106_vm0, %v6562_v12, 0.0 }
0x16b3   :  { %v6510_v13 = vpop.f32.mrf.mxu2  ;;  %6567 = vadd.xlane.f32.xlu0 %v6566_v54  ;;  %v6555_v29 = vpop.f32.mrf.mxu3 }
0x16b4   :  { %v6511_v45 = vadd.f32 %v6510_v13, %v6450_v59 }
0x16b6   :  { %v6552_v52 = vadd.f32 %v6551_v20, %v6511_v45 }
0x16b8   :  { %v6563_v42 = vadd.f32 %v6552_v52, %v5905_v56 }
0x16ba   :  { %v6569_v35 = vsel %vm106_vm0, %v6563_v42, 0.0 }
0x16bb   :  { %v6514_v32 = vpop.f32.mrf.mxu2  ;;  %6570 = vadd.xlane.f32.xlu0 %v6569_v35  ;;  %v6559_v37 = vpop.f32.mrf.mxu3 }
0x16bc   :  { %v6515_v53 = vadd.f32 %v6514_v32, %v6456_v38 }
0x16be   :  { %v6556_v7 = vadd.f32 %v6555_v29, %v6515_v53 }
0x16c0   :  { %v6564_v31 = vadd.f32 %v6556_v7, %v5906_v1 }
0x16c2   :  { %v6572_v40 = vsel %vm106_vm0, %v6564_v31, 0.0 }
0x16c3   :  { %v6518_v46 = vpop.f32.mrf.mxu2  ;;  %6573 = vadd.xlane.f32.xlu2 %v6572_v40 }
0x16c4   :  { %v6519_v4 = vadd.f32 %v6518_v46, %v6462_v18 }
0x16c6   :  { %v6560_v30 = vadd.f32 %v6559_v37, %v6519_v4 }
0x16c8   :  { %v6565_v41 = vadd.f32 %v6560_v30, %v5907_v58 }
0x16ca   :  { %v6575_v22 = vsel %vm106_vm0, %v6565_v41, 0.0 }
0x16cb   :  { %6576 = vadd.xlane.f32.xlu0 %v6575_v22 }
0x1726   :  { %v6568_v25 = vpop.xlane.xlu0 %6567 }
0x1727   :  { %v6578_v55 = vmul.f32 %v6568_v25, %v8585_v0 }
0x1729   :  { %v6582_v48 = vsub.f32 %v6562_v12, %v6578_v55 }
0x172b   :  { %v6586_v2 = vmul.f32 %v6582_v48, %v6582_v48 }
0x172d   :  { %v6590_v10 = vsel %vm106_vm0, %v6586_v2, 0.0 }
0x172e   :  { %6591 = vadd.xlane.f32.xlu1 %v6590_v10  ;;  %v6571_v47 = vpop.xlane.xlu0 %6570 }
0x172f   :  { %v6579_v57 = vmul.f32 %v6571_v47, %v8585_v0 }
0x1731   :  { %v6583_v63 = vsub.f32 %v6563_v42, %v6579_v57 }
0x1733   :  { %v6587_v51 = vmul.f32 %v6583_v63, %v6583_v63 }
0x1735   :  { %v6593_v60 = vsel %vm106_vm0, %v6587_v51, 0.0 }
0x1736   :  { %v6574_v17 = vpop.xlane.xlu2 %6573  ;;  %6594 = vadd.xlane.f32.xlu2 %v6593_v60 }
0x1737   :  { %v6580_v44 = vmul.f32 %v6574_v17, %v8585_v0 }
0x1739   :  { %v8425_v33 = vsub.f32 %v6564_v31, %v6580_v44 }
0x173b   :  { %v6588_v28 = vmul.f32 %v8425_v33, %v8425_v33 }
0x173d   :  { %v6596_v3 = vsel %vm106_vm0, %v6588_v28, 0.0 }
0x173e   :  { %6597 = vadd.xlane.f32.xlu0 %v6596_v3  ;;  %v6577_v6 = vpop.xlane.xlu0 %6576 }
0x173f   :  { %v6581_v62 = vmul.f32 %v6577_v6, %v8585_v0 }
0x1741   :  { %v8431_v9 = vsub.f32 %v6565_v41, %v6581_v62 }
0x1743   :  { %v6589_v50 = vmul.f32 %v8431_v9, %v8431_v9 }
0x1745   :  { %v6599_v5 = vsel %vm106_vm0, %v6589_v50, 0.0 }
0x1746   :  { %6600 = vadd.xlane.f32.xlu1 %v6599_v5 }
0x17a1   :  { %v6592_v43 = vpop.xlane.xlu1 %6591 }
0x17a2   :  { %v6602_v24 = vmul.f32 %v6592_v43, %v8585_v0 }
0x17a4   :  { %v6606_v14 = vadd.f32 1e-06, %v6602_v24 }
0x17a6   :  { %6794 = vrsqrt.f32 %v6606_v14  ;;  %vm6616_vm12 = vweird.f32 %v6606_v14 }
0x17a9   :  { %v6595_v12 = vpop.xlane.xlu2 %6594 }
0x17aa   :  { %v6603_v20 = vmul.f32 %v6595_v12, %v8585_v0 }
0x17ac   :  { %v6795_v27 = vpop.eup %6794  ;;  %v6607_v59 = vadd.f32 1e-06, %v6603_v20 }
0x17ad   :  { %v6611_v54 = vmul.f32 %v6795_v27, %v6606_v14  ;;  %vm6617_vm11 = vweird.f32 %v6795_v27 }
0x17ae   :  { %6796 = vrsqrt.f32 %v6607_v59  ;;  %vm6618_vm13 = vmor %vm6616_vm12, %vm6617_vm11  ;;  %vm6626_vm15 = vweird.f32 %v6607_v59 }
0x17af   :  { %v6612_v19 = vmul.f32 %v6795_v27, %v6611_v54 }
0x17b1   :  { %v6613_v23 = vmul.f32 0.5, %v6612_v19  ;;  %v6598_v13 = vpop.xlane.xlu0 %6597 }
0x17b2   :  { %v6604_v45 = vmul.f32 %v6598_v13, %v8585_v0 }
0x17b3   :  { %v6614_v16 = vsub.f32 1.5, %v6613_v23 }
0x17b4   :  { %v6797_v52 = vpop.eup %6796  ;;  %v6608_v39 = vadd.f32 1e-06, %v6604_v45 }
0x17b5   :  { %v6615_v56 = vmul.f32 %v6795_v27, %v6614_v16  ;;  %v6621_v21 = vmul.f32 %v6797_v52, %v6607_v59  ;;  %vm6627_vm14 = vweird.f32 %v6797_v52 }
0x17b6   :  { %6798 = vrsqrt.f32 %v6608_v39  ;;  %vm6628_vm1 = vmor %vm6626_vm15, %vm6627_vm14  ;;  %vm6636_vm3 = vweird.f32 %v6608_v39 }
0x17b7   :  { %v6619_v42 = vsel %vm6618_vm13, %v6795_v27, %v6615_v56  ;;  %v6622_v26 = vmul.f32 %v6797_v52, %v6621_v21 }
0x17b8   :  { %v6650_v38 = vmul.f32 %v6619_v42, %v6582_v48 }
0x17b9   :  { %v6623_v35 = vmul.f32 0.5, %v6622_v26  ;;  %v6601_v11 = vpop.xlane.xlu1 %6600 }
0x17ba   :  { %v6654_v29 = vmul.f32 %v6650_v38, %v8127_v15  ;;  %v6605_v32 = vmul.f32 %v6601_v11, %v8585_v0 }
0x17bb   :  { %v6624_v53 = vsub.f32 1.5, %v6623_v35 }
0x17bc   :  { %v6799_v49 = vpop.eup %6798  ;;  %v6658_v7 = vadd.f32 %v6654_v29, %v8137_v61  ;;  %v6609_v8 = vadd.f32 1e-06, %v6605_v32 }
0x17bd   :  { %v6625_v1 = vmul.f32 %v6797_v52, %v6624_v53  ;;  %v6631_v31 = vmul.f32 %v6799_v49, %v6608_v39  ;;  %vm6637_vm2 = vweird.f32 %v6799_v49 }
0x17be   :  { %6662 = vst.msk [vmem:[#allocation10] sm:$0xff] %vm106_vm0, %v6658_v7  ;;  %6800 = vrsqrt.f32 %v6609_v8  ;;  %vm6638_vm4 = vmor %vm6636_vm3, %vm6637_vm2  ;;  %vm6646_vm6 = vweird.f32 %v6609_v8 }
0x17bf   :  { %v6629_v36 = vsel %vm6628_vm1, %v6797_v52, %v6625_v1  ;;  %v6632_v18 = vmul.f32 %v6799_v49, %v6631_v31 }
0x17c0   :  { %v6651_v40 = vmul.f32 %v6629_v36, %v6583_v63 }
0x17c1   :  { %v6633_v34 = vmul.f32 0.5, %v6632_v18 }
0x17c2   :  { %v6655_v46 = vmul.f32 %v6651_v40, %v8127_v15 }
0x17c3   :  { %v6634_v0 = vsub.f32 1.5, %v6633_v34 }
0x17c4   :  { %v6801_v4 = vpop.eup %6800  ;;  %v6659_v37 = vadd.f32 %v6655_v46, %v8137_v61 }
0x17c5   :  { %v6635_v30 = vmul.f32 %v6799_v49, %v6634_v0  ;;  %v6641_v58 = vmul.f32 %v6801_v4, %v6609_v8  ;;  %vm6647_vm5 = vweird.f32 %v6801_v4 }
0x17c6   :  { %6663 = vst.msk [vmem:[#allocation10 + $0x8] sm:$0xff] %vm106_vm0, %v6659_v37  ;;  %vm6648_vm7 = vmor %vm6646_vm6, %vm6647_vm5 }
0x17c7   :  { %v6639_v41 = vsel %vm6638_vm4, %v6799_v49, %v6635_v30  ;;  %v6642_v22 = vmul.f32 %v6801_v4, %v6641_v58 }
0x17c8   :  { %v6652_v25 = vmul.f32 %v6639_v41, %v8425_v33 }
0x17c9   :  { %v6643_v55 = vmul.f32 0.5, %v6642_v22 }
0x17ca   :  { %v6656_v48 = vmul.f32 %v6652_v25, %v8127_v15 }
0x17cb   :  { %v6644_v2 = vsub.f32 1.5, %v6643_v55 }
0x17cc   :  { %v6660_v10 = vadd.f32 %v6656_v48, %v8137_v61 }
0x17cd   :  { %v6645_v47 = vmul.f32 %v6801_v4, %v6644_v2 }
0x17ce   :  { %6664 = vst.msk [vmem:[#allocation10 + $0x10] sm:$0xff] %vm106_vm0, %v6660_v10 }
0x17cf   :  { %v6649_v57 = vsel %vm6648_vm7, %v6801_v4, %v6645_v47 }
0x17d0   :  { %v6653_v63 = vmul.f32 %v6649_v57, %v8431_v9 }
0x17d2   :  { %v6657_v51 = vmul.f32 %v6653_v63, %v8127_v15 }
0x17d4   :  { %v6661_v60 = vadd.f32 %v6657_v51, %v8137_v61 }
0x17d6   :  { %6665 = vst.msk [vmem:[#allocation10 + $0x18] sm:$0xff] %vm106_vm0, %v6661_v60 }
0x17d7   :  { %6678 = dma.vmem_to_hbm [thread:$0]  %s6671_s12, 512, %s6673_s15, [#allocation4], %s6934_s21, %s6934_s21, %s6935_s22  }
0x17d8   :  { %6931 = dma.done.wait [#allocation4], 512  }
0x17d9   :  { %6932 = vsyncadd [#allocation4], 4294966784 }
0x17da   :  { %6683 = vsyncpa [#allocation3], 1 }
0x17db   :  { %6684 = vsyncpa [#allocation6], 1 }
0x17dc   :  { %6685 = vsyncpa [#allocation9], 1 }
0x17dd   :  { %6686 = vsyncpa [#allocation4], 1 }

</bundles_post_ra>
